<compile_context>
chip_gen: v7x
topology: tpu7x:2x2x1
jax: 0.10.0
libtpu: 0.0.40
codegen_flags: <defaults>
</compile_context>

<pallas_src>
import functools
import math

import jax
import jax.numpy as jnp
import numpy as np
from jax.experimental import pallas as pl
from jax.experimental.pallas import tpu as pltpu


def _zero_halo(pad_ref, c):
    """Zero the 1-pixel halo strips of a lane-packed (H+2, (W+2)*c) pad buffer."""
    hp, wp = pad_ref.shape
    zrow = jnp.zeros((1, wp), pad_ref.dtype)
    zcol = jnp.zeros((hp, c), pad_ref.dtype)
    pad_ref[pl.ds(0, 1), :] = zrow
    pad_ref[pl.ds(hp - 1, 1), :] = zrow
    pad_ref[:, pl.ds(0, c)] = zcol
    pad_ref[:, pl.ds(wp - c, c)] = zcol


def _conv3x3_packed(pad_ref, lhs_ref, w_ref, b_ref, *, H, W, cin):
    """3x3 same-conv on a lane-packed activation, one MXU dot.

    pad_ref: (H+2, (W+2)*cin) f32, zero halo, interior already ReLU'd if needed
    lhs_ref: (H, 9*W*cin)     bf16 im2col scratch
    w_ref  : (9*W*cin, W*cout) bf16 block-diag expanded weight
    b_ref  : (1, W*cout)       f32  bias tiled across W
    returns (H, W*cout) f32
    """
    wc = W * cin
    for kh in range(3):
        for kw in range(3):
            t = kh * 3 + kw
            # kw tap shift == static lane-offset slice in the packed layout.
            tap = pad_ref[pl.ds(kh, H), pl.ds(kw * cin, wc)]
            lhs_ref[:, pl.ds(t * wc, wc)] = tap.astype(jnp.bfloat16)
    out = jnp.dot(lhs_ref[...], w_ref[...], preferred_element_type=jnp.float32)
    return out + b_ref[...]


def _refine_kernel(f_ref, pm_ref,
                   wfs_ref, bfs_ref,
                   w1f_ref, b1f_ref, w2f_ref, b2f_ref,
                   w1m_ref, b1m_ref, w2m_ref, b2m_ref,
                   uh_ref, uw_ref,
                   o_ref,
                   padf_ref, pada_ref, padb_ref, lhsf_ref, lhs_ref,
                   *, H, W, C, Cin):
    relu = lambda x: jnp.maximum(x, 0.0)

    # Halos must be zero for every conv; interiors are fully overwritten below.
    _zero_halo(padf_ref, Cin)
    _zero_halo(pada_ref, C)
    _zero_halo(padb_ref, C)

    # ---- convFS --------------------------------------------------------------
    padf_ref[pl.ds(1, H), pl.ds(Cin, W * Cin)] = f_ref[0]
    s0 = _conv3x3_packed(padf_ref, lhsf_ref, wfs_ref, bfs_ref, H=H, W=W, cin=Cin)

    # ---- ResFS: s = s0 + conv2(relu(conv1(relu(s0)))) -------------------------
    pada_ref[pl.ds(1, H), pl.ds(C, W * C)] = relu(s0)        # ReLU once, at the store
    r = _conv3x3_packed(pada_ref, lhs_ref, w1f_ref, b1f_ref, H=H, W=W, cin=C)
    padb_ref[pl.ds(1, H), pl.ds(C, W * C)] = relu(r)
    s = s0 + _conv3x3_packed(padb_ref, lhs_ref, w2f_ref, b2f_ref, H=H, W=W, cin=C)

    # ---- x2 bilinear upsample (align_corners=False) as two stencil matmuls ----
    pm = pm_ref[0].astype(jnp.bfloat16)                      # (Hh, Wh*C)
    up_h = jnp.dot(uh_ref[...], pm, preferred_element_type=jnp.float32)
    up = jnp.dot(up_h.astype(jnp.bfloat16), uw_ref[...],
                 preferred_element_type=jnp.float32)         # (H, W*C)
    m0 = s + up

    # ---- ResMM: m = m0 + conv2(relu(conv1(relu(m0)))) -------------------------
    pada_ref[pl.ds(1, H), pl.ds(C, W * C)] = relu(m0)        # single interior store
    rm = _conv3x3_packed(pada_ref, lhs_ref, w1m_ref, b1m_ref, H=H, W=W, cin=C)
    padb_ref[pl.ds(1, H), pl.ds(C, W * C)] = relu(rm)
    m = m0 + _conv3x3_packed(padb_ref, lhs_ref, w2m_ref, b2m_ref, H=H, W=W, cin=C)

    o_ref[0] = m.astype(o_ref.dtype)                         # lane-dense (H, W*C) store


def _expand_conv_weights(w_hwio, b, W):
    """(3,3,cin,cout) HWIO -> block-diag im2col weight (9*W*cin, W*cout) bf16
    plus lane-tiled bias (1, W*cout) f32."""
    cout = w_hwio.shape[3]
    eye = jnp.eye(W, dtype=jnp.float32)
    blocks = [jnp.kron(eye, w_hwio[kh, kw]) for kh in range(3) for kw in range(3)]
    w_bd = jnp.concatenate(blocks, axis=0).astype(jnp.bfloat16)
    b_row = jnp.tile(b, (W,)).reshape(1, W * cout).astype(jnp.float32)
    return w_bd, b_row


def _upsample_matrix_1d(n_in):
    """(n_in, 2*n_in) f32: x2 bilinear weights, align_corners=False, edge-clamped."""
    n_out = 2 * n_in
    m = np.zeros((n_in, n_out), np.float32)
    for o in range(n_out):
        src = (o + 0.5) / 2.0 - 0.5
        i0 = int(np.floor(src))
        frac = src - i0
        i0c = min(max(i0, 0), n_in - 1)
        i1c = min(max(i0 + 1, 0), n_in - 1)
        m[i0c, o] += 1.0 - frac
        m[i1c, o] += frac
    return m


def refine_forward(params, f_nchw, pm_nchw, scale_factor=2):
    """f_nchw: (B, inplanes, H, W); pm_nchw: (B, planes, H/2, W/2). Returns NCHW."""
    if scale_factor != 2:
        raise NotImplementedError("fused kernel implements the default scale_factor=2")

    B, Cin, H, W = f_nchw.shape
    _, C, Hh, Wh = pm_nchw.shape
    assert (H, W) == (2 * Hh, 2 * Wh), "pm must be exactly half resolution of f"

    # TODO(synk): NCHW<->NHWC transposes exist only to mimic the PyTorch interface;
    # in an end-to-end NHWC JAX model they disappear (the (W*C) packing is free).
    f = jnp.transpose(f_nchw, (0, 2, 3, 1)).reshape(B, H, W * Cin)
    pm = jnp.transpose(pm_nchw, (0, 2, 3, 1)).reshape(B, Hh, Wh * C)

    wfs, bfs = _expand_conv_weights(*params['convFS'], W)
    w1f, b1f = _expand_conv_weights(*params['resFS_conv1'], W)
    w2f, b2f = _expand_conv_weights(*params['resFS_conv2'], W)
    w1m, b1m = _expand_conv_weights(*params['resMM_conv1'], W)
    w2m, b2m = _expand_conv_weights(*params['resMM_conv2'], W)

    uh = jnp.asarray(_upsample_matrix_1d(Hh).T, jnp.bfloat16)                 # (H, Hh)
    uw = jnp.asarray(np.kron(_upsample_matrix_1d(Wh), np.eye(C, dtype=np.float32)),
                     jnp.bfloat16)                                            # (Wh*C, W*C)

    def full2d(a):
        return pl.BlockSpec(a.shape, lambda b: (0, 0))

    kernel = functools.partial(_refine_kernel, H=H, W=W, C=C, Cin=Cin)

    out = pl.pallas_call(
        kernel,
        out_shape=jax.ShapeDtypeStruct((B, H, W * C), jnp.float32),
        grid=(B,),
        in_specs=[
            pl.BlockSpec((1, H, W * Cin), lambda b: (b, 0, 0)),
            pl.BlockSpec((1, Hh, Wh * C), lambda b: (b, 0, 0)),
            full2d(wfs), full2d(bfs),
            full2d(w1f), full2d(b1f), full2d(w2f), full2d(b2f),
            full2d(w1m), full2d(b1m), full2d(w2m), full2d(b2m),
            full2d(uh), full2d(uw),
        ],
        out_specs=pl.BlockSpec((1, H, W * C), lambda b: (b, 0, 0)),
        scratch_shapes=[
            pltpu.VMEM((H + 2, (W + 2) * Cin), jnp.float32),  # zero-haloed f
            pltpu.VMEM((H + 2, (W + 2) * C), jnp.float32),    # relu(s0) / relu(m0)
            pltpu.VMEM((H + 2, (W + 2) * C), jnp.float32),    # relu(r)
            pltpu.VMEM((H, 9 * W * Cin), jnp.bfloat16),       # im2col LHS (convFS)
            pltpu.VMEM((H, 9 * W * C), jnp.bfloat16),         # im2col LHS (ResBlocks)
        ],
        compiler_params=pltpu.CompilerParams(
            dimension_semantics=("parallel",)),
    )(f, pm, wfs, bfs, w1f, b1f, w2f, b2f, w1m, b1m, w2m, b2m, uh, uw)

    return jnp.transpose(out.reshape(B, H, W, C), (0, 3, 1, 2))


# ----------------------------- reference & demo --------------------------------

def init_conv_params(key, cin, cout):
    """Deterministic PyTorch-Conv2d-style init (uniform +/- 1/sqrt(fan_in)); HWIO."""
    k_w, k_b = jax.random.split(key)
    fan_in = cin * 9
    bound = 1.0 / math.sqrt(fan_in)
    w = jax.random.uniform(k_w, (3, 3, cin, cout), jnp.float32, -bound, bound)
    b = jax.random.uniform(k_b, (cout,), jnp.float32, -bound, bound)
    return w, b


def _refine_reference(params, f, pm, scale_factor=2):
    """Pure-XLA f32 reference of the PyTorch forward."""
    def conv(x, wb):
        w, b = wb
        y = jax.lax.conv_general_dilated(
            x, w, window_strides=(1, 1), padding='SAME',
            dimension_numbers=('NCHW', 'HWIO', 'NCHW'))
        return y + b[None, :, None, None]

    def resblock(x, wb1, wb2):
        r = conv(jax.nn.relu(x), wb1)
        r = conv(jax.nn.relu(r), wb2)
        return x + r

    s = resblock(conv(f, params['convFS']),
                 params['resFS_conv1'], params['resFS_conv2'])
    B, C, Hh, Wh = pm.shape
    up = jax.image.resize(pm, (B, C, Hh * scale_factor, Wh * scale_factor),
                          method='bilinear')
    m0 = s + up
    return resblock(m0, params['resMM_conv1'], params['resMM_conv2'])


if __name__ == "__main__":
    key = jax.random.PRNGKey(0)
    keys = jax.random.split(key, 7)

    B, inplanes, planes, H, W = 2, 4, 8, 16, 16
    scale = 2

    params = {
        'convFS':      init_conv_params(keys[0], inplanes, planes),
        'resFS_conv1': init_conv_params(keys[1], planes, planes),
        'resFS_conv2': init_conv_params(keys[2], planes, planes),
        'resMM_conv1': init_conv_params(keys[3], planes, planes),
        'resMM_conv2': init_conv_params(keys[4], planes, planes),
    }

    f = jax.random.normal(keys[5], (B, inplanes, H, W), jnp.float32)
    pm = jax.random.normal(keys[6], (B, planes, H // scale, W // scale), jnp.float32)

    out = refine_forward(params, f, pm, scale_factor=scale)
    out = jax.block_until_ready(out)
    assert out.shape == (B, planes, H, W), out.shape

    ref = _refine_reference(params, f, pm, scale_factor=scale)
    max_err = float(jnp.max(jnp.abs(out - ref)))
    rel_err = float(jnp.linalg.norm(out - ref) / (jnp.linalg.norm(ref) + 1e-8))
    # bf16 matmul operands (f32 accumulation) vs the f32 XLA reference.
    assert max_err < 0.25 and rel_err < 0.03, (max_err, rel_err)

    print("KERNEL_OK")
</pallas_src>

<mosaic_0001>
module attributes {stable_mosaic.version = 11 : i64} {
  func.func @_refine_kernel(%arg0: i32, %arg1: memref<1x16x64xf32, #tpu.memory_space<vmem>>, %arg2: memref<1x8x64xf32, #tpu.memory_space<vmem>>, %arg3: memref<576x128xbf16, #tpu.memory_space<vmem>>, %arg4: memref<1x128xf32, #tpu.memory_space<vmem>>, %arg5: memref<1152x128xbf16, #tpu.memory_space<vmem>>, %arg6: memref<1x128xf32, #tpu.memory_space<vmem>>, %arg7: memref<1152x128xbf16, #tpu.memory_space<vmem>>, %arg8: memref<1x128xf32, #tpu.memory_space<vmem>>, %arg9: memref<1152x128xbf16, #tpu.memory_space<vmem>>, %arg10: memref<1x128xf32, #tpu.memory_space<vmem>>, %arg11: memref<1152x128xbf16, #tpu.memory_space<vmem>>, %arg12: memref<1x128xf32, #tpu.memory_space<vmem>>, %arg13: memref<16x8xbf16, #tpu.memory_space<vmem>>, %arg14: memref<64x128xbf16, #tpu.memory_space<vmem>>, %arg15: memref<1x16x128xf32, #tpu.memory_space<vmem>>, %arg16: memref<18x72xf32, #tpu.memory_space<vmem>>, %arg17: memref<18x144xf32, #tpu.memory_space<vmem>>, %arg18: memref<18x144xf32, #tpu.memory_space<vmem>>, %arg19: memref<16x576xbf16, #tpu.memory_space<vmem>>, %arg20: memref<16x1152xbf16, #tpu.memory_space<vmem>>) attributes {dimension_semantics = [#tpu.dimension_semantics<parallel>], iteration_bounds = array<i64: 2>, scalar_prefetch = 0 : i64, scratch_operands = 5 : i64, tpu.core_type = #tpu.core_type<tc>, window_params = [{transform_indices = @transform_0, window_bounds = array<i64: 1, 16, 64>}, {transform_indices = @transform_1, window_bounds = array<i64: 1, 8, 64>}, {pipeline_mode = #tpu.pipeline_mode<synchronous>, transform_indices = @transform_2, window_bounds = array<i64: 576, 128>}, {pipeline_mode = #tpu.pipeline_mode<synchronous>, transform_indices = @transform_3, window_bounds = array<i64: 1, 128>}, {pipeline_mode = #tpu.pipeline_mode<synchronous>, transform_indices = @transform_4, window_bounds = array<i64: 1152, 128>}, {pipeline_mode = #tpu.pipeline_mode<synchronous>, transform_indices = @transform_5, window_bounds = array<i64: 1, 128>}, {pipeline_mode = #tpu.pipeline_mode<synchronous>, transform_indices = @transform_6, window_bounds = array<i64: 1152, 128>}, {pipeline_mode = #tpu.pipeline_mode<synchronous>, transform_indices = @transform_7, window_bounds = array<i64: 1, 128>}, {pipeline_mode = #tpu.pipeline_mode<synchronous>, transform_indices = @transform_8, window_bounds = array<i64: 1152, 128>}, {pipeline_mode = #tpu.pipeline_mode<synchronous>, transform_indices = @transform_9, window_bounds = array<i64: 1, 128>}, {pipeline_mode = #tpu.pipeline_mode<synchronous>, transform_indices = @transform_10, window_bounds = array<i64: 1152, 128>}, {pipeline_mode = #tpu.pipeline_mode<synchronous>, transform_indices = @transform_11, window_bounds = array<i64: 1, 128>}, {pipeline_mode = #tpu.pipeline_mode<synchronous>, transform_indices = @transform_12, window_bounds = array<i64: 16, 8>}, {pipeline_mode = #tpu.pipeline_mode<synchronous>, transform_indices = @transform_13, window_bounds = array<i64: 64, 128>}, {transform_indices = @transform_14, window_bounds = array<i64: 1, 16, 128>}]} {
    %cst = arith.constant 0.000000e+00 : f32
    %0 = vector.broadcast %cst : f32 to vector<1x72xf32>
    %cst_0 = arith.constant 0.000000e+00 : f32
    %1 = vector.broadcast %cst_0 : f32 to vector<18x4xf32>
    %c0 = arith.constant 0 : index
    %c0_1 = arith.constant 0 : index
    %2 = vector.load %arg16[%c0, %c0_1] : memref<18x72xf32, #tpu.memory_space<vmem>>, vector<1x72xf32>
    tpu.vector_store %arg16[%c0, %c0_1], %0 {strides = array<i32>} : memref<18x72xf32, #tpu.memory_space<vmem>>, vector<1x72xf32>,
    %c17 = arith.constant 17 : index
    %c0_2 = arith.constant 0 : index
    %3 = vector.load %arg16[%c17, %c0_2] : memref<18x72xf32, #tpu.memory_space<vmem>>, vector<1x72xf32>
    tpu.vector_store %arg16[%c17, %c0_2], %0 {strides = array<i32>} : memref<18x72xf32, #tpu.memory_space<vmem>>, vector<1x72xf32>,
    %c0_3 = arith.constant 0 : index
    %c0_4 = arith.constant 0 : index
    %4 = vector.load %arg16[%c0_3, %c0_4] : memref<18x72xf32, #tpu.memory_space<vmem>>, vector<18x4xf32>
    tpu.vector_store %arg16[%c0_3, %c0_4], %1 {strides = array<i32>} : memref<18x72xf32, #tpu.memory_space<vmem>>, vector<18x4xf32>,
    %c0_5 = arith.constant 0 : index
    %c68 = arith.constant 68 : index
    %5 = vector.load %arg16[%c0_5, %c68] : memref<18x72xf32, #tpu.memory_space<vmem>>, vector<18x4xf32>
    tpu.vector_store %arg16[%c0_5, %c68], %1 {strides = array<i32>} : memref<18x72xf32, #tpu.memory_space<vmem>>, vector<18x4xf32>,
    %cst_6 = arith.constant 0.000000e+00 : f32
    %6 = vector.broadcast %cst_6 : f32 to vector<1x144xf32>
    %cst_7 = arith.constant 0.000000e+00 : f32
    %7 = vector.broadcast %cst_7 : f32 to vector<18x8xf32>
    %c0_8 = arith.constant 0 : index
    %c0_9 = arith.constant 0 : index
    %8 = vector.load %arg17[%c0_8, %c0_9] : memref<18x144xf32, #tpu.memory_space<vmem>>, vector<1x144xf32>
    tpu.vector_store %arg17[%c0_8, %c0_9], %6 {strides = array<i32>} : memref<18x144xf32, #tpu.memory_space<vmem>>, vector<1x144xf32>,
    %c17_10 = arith.constant 17 : index
    %c0_11 = arith.constant 0 : index
    %9 = vector.load %arg17[%c17_10, %c0_11] : memref<18x144xf32, #tpu.memory_space<vmem>>, vector<1x144xf32>
    tpu.vector_store %arg17[%c17_10, %c0_11], %6 {strides = array<i32>} : memref<18x144xf32, #tpu.memory_space<vmem>>, vector<1x144xf32>,
    %c0_12 = arith.constant 0 : index
    %c0_13 = arith.constant 0 : index
    %10 = vector.load %arg17[%c0_12, %c0_13] : memref<18x144xf32, #tpu.memory_space<vmem>>, vector<18x8xf32>
    tpu.vector_store %arg17[%c0_12, %c0_13], %7 {strides = array<i32>} : memref<18x144xf32, #tpu.memory_space<vmem>>, vector<18x8xf32>,
    %c0_14 = arith.constant 0 : index
    %c136 = arith.constant 136 : index
    %11 = vector.load %arg17[%c0_14, %c136] : memref<18x144xf32, #tpu.memory_space<vmem>>, vector<18x8xf32>
    tpu.vector_store %arg17[%c0_14, %c136], %7 {strides = array<i32>} : memref<18x144xf32, #tpu.memory_space<vmem>>, vector<18x8xf32>,
    %cst_15 = arith.constant 0.000000e+00 : f32
    %12 = vector.broadcast %cst_15 : f32 to vector<1x144xf32>
    %cst_16 = arith.constant 0.000000e+00 : f32
    %13 = vector.broadcast %cst_16 : f32 to vector<18x8xf32>
    %c0_17 = arith.constant 0 : index
    %c0_18 = arith.constant 0 : index
    %14 = vector.load %arg18[%c0_17, %c0_18] : memref<18x144xf32, #tpu.memory_space<vmem>>, vector<1x144xf32>
    tpu.vector_store %arg18[%c0_17, %c0_18], %12 {strides = array<i32>} : memref<18x144xf32, #tpu.memory_space<vmem>>, vector<1x144xf32>,
    %c17_19 = arith.constant 17 : index
    %c0_20 = arith.constant 0 : index
    %15 = vector.load %arg18[%c17_19, %c0_20] : memref<18x144xf32, #tpu.memory_space<vmem>>, vector<1x144xf32>
    tpu.vector_store %arg18[%c17_19, %c0_20], %12 {strides = array<i32>} : memref<18x144xf32, #tpu.memory_space<vmem>>, vector<1x144xf32>,
    %c0_21 = arith.constant 0 : index
    %c0_22 = arith.constant 0 : index
    %16 = vector.load %arg18[%c0_21, %c0_22] : memref<18x144xf32, #tpu.memory_space<vmem>>, vector<18x8xf32>
    tpu.vector_store %arg18[%c0_21, %c0_22], %13 {strides = array<i32>} : memref<18x144xf32, #tpu.memory_space<vmem>>, vector<18x8xf32>,
    %c0_23 = arith.constant 0 : index
    %c136_24 = arith.constant 136 : index
    %17 = vector.load %arg18[%c0_23, %c136_24] : memref<18x144xf32, #tpu.memory_space<vmem>>, vector<18x8xf32>
    tpu.vector_store %arg18[%c0_23, %c136_24], %13 {strides = array<i32>} : memref<18x144xf32, #tpu.memory_space<vmem>>, vector<18x8xf32>,
    %c0_25 = arith.constant 0 : index
    %c0_26 = arith.constant 0 : index
    %c0_27 = arith.constant 0 : index
    %18 = vector.load %arg1[%c0_25, %c0_26, %c0_27] : memref<1x16x64xf32, #tpu.memory_space<vmem>>, vector<1x16x64xf32>
    %19 = vector.shape_cast %18 : vector<1x16x64xf32> to vector<16x64xf32>
    %c1 = arith.constant 1 : index
    %c4 = arith.constant 4 : index
    %20 = vector.load %arg16[%c1, %c4] : memref<18x72xf32, #tpu.memory_space<vmem>>, vector<16x64xf32>
    tpu.vector_store %arg16[%c1, %c4], %19 {strides = array<i32>} : memref<18x72xf32, #tpu.memory_space<vmem>>, vector<16x64xf32>,
    %c0_28 = arith.constant 0 : index
    %c0_29 = arith.constant 0 : index
    %21 = vector.load %arg16[%c0_28, %c0_29] : memref<18x72xf32, #tpu.memory_space<vmem>>, vector<16x64xf32>
    %22 = arith.truncf %21 : vector<16x64xf32> to vector<16x64xbf16>
    %c0_30 = arith.constant 0 : index
    %c0_31 = arith.constant 0 : index
    %23 = vector.load %arg19[%c0_30, %c0_31] : memref<16x576xbf16, #tpu.memory_space<vmem>>, vector<16x64xbf16>
    tpu.vector_store %arg19[%c0_30, %c0_31], %22 {strides = array<i32>} : memref<16x576xbf16, #tpu.memory_space<vmem>>, vector<16x64xbf16>,
    %c0_32 = arith.constant 0 : index
    %c4_33 = arith.constant 4 : index
    %24 = vector.load %arg16[%c0_32, %c4_33] : memref<18x72xf32, #tpu.memory_space<vmem>>, vector<16x64xf32>
    %25 = arith.truncf %24 : vector<16x64xf32> to vector<16x64xbf16>
    %c0_34 = arith.constant 0 : index
    %c64 = arith.constant 64 : index
    %26 = vector.load %arg19[%c0_34, %c64] : memref<16x576xbf16, #tpu.memory_space<vmem>>, vector<16x64xbf16>
    tpu.vector_store %arg19[%c0_34, %c64], %25 {strides = array<i32>} : memref<16x576xbf16, #tpu.memory_space<vmem>>, vector<16x64xbf16>,
    %c0_35 = arith.constant 0 : index
    %c8 = arith.constant 8 : index
    %27 = vector.load %arg16[%c0_35, %c8] : memref<18x72xf32, #tpu.memory_space<vmem>>, vector<16x64xf32>
    %28 = arith.truncf %27 : vector<16x64xf32> to vector<16x64xbf16>
    %c0_36 = arith.constant 0 : index
    %c128 = arith.constant 128 : index
    %29 = vector.load %arg19[%c0_36, %c128] : memref<16x576xbf16, #tpu.memory_space<vmem>>, vector<16x64xbf16>
    tpu.vector_store %arg19[%c0_36, %c128], %28 {strides = array<i32>} : memref<16x576xbf16, #tpu.memory_space<vmem>>, vector<16x64xbf16>,
    %c1_37 = arith.constant 1 : index
    %c0_38 = arith.constant 0 : index
    %30 = vector.load %arg16[%c1_37, %c0_38] : memref<18x72xf32, #tpu.memory_space<vmem>>, vector<16x64xf32>
    %31 = arith.truncf %30 : vector<16x64xf32> to vector<16x64xbf16>
    %c0_39 = arith.constant 0 : index
    %c192 = arith.constant 192 : index
    %32 = vector.load %arg19[%c0_39, %c192] : memref<16x576xbf16, #tpu.memory_space<vmem>>, vector<16x64xbf16>
    tpu.vector_store %arg19[%c0_39, %c192], %31 {strides = array<i32>} : memref<16x576xbf16, #tpu.memory_space<vmem>>, vector<16x64xbf16>,
    %c1_40 = arith.constant 1 : index
    %c4_41 = arith.constant 4 : index
    %33 = vector.load %arg16[%c1_40, %c4_41] : memref<18x72xf32, #tpu.memory_space<vmem>>, vector<16x64xf32>
    %34 = arith.truncf %33 : vector<16x64xf32> to vector<16x64xbf16>
    %c0_42 = arith.constant 0 : index
    %c256 = arith.constant 256 : index
    %35 = vector.load %arg19[%c0_42, %c256] : memref<16x576xbf16, #tpu.memory_space<vmem>>, vector<16x64xbf16>
    tpu.vector_store %arg19[%c0_42, %c256], %34 {strides = array<i32>} : memref<16x576xbf16, #tpu.memory_space<vmem>>, vector<16x64xbf16>,
    %c1_43 = arith.constant 1 : index
    %c8_44 = arith.constant 8 : index
    %36 = vector.load %arg16[%c1_43, %c8_44] : memref<18x72xf32, #tpu.memory_space<vmem>>, vector<16x64xf32>
    %37 = arith.truncf %36 : vector<16x64xf32> to vector<16x64xbf16>
    %c0_45 = arith.constant 0 : index
    %c320 = arith.constant 320 : index
    %38 = vector.load %arg19[%c0_45, %c320] : memref<16x576xbf16, #tpu.memory_space<vmem>>, vector<16x64xbf16>
    tpu.vector_store %arg19[%c0_45, %c320], %37 {strides = array<i32>} : memref<16x576xbf16, #tpu.memory_space<vmem>>, vector<16x64xbf16>,
    %c2 = arith.constant 2 : index
    %c0_46 = arith.constant 0 : index
    %39 = vector.load %arg16[%c2, %c0_46] : memref<18x72xf32, #tpu.memory_space<vmem>>, vector<16x64xf32>
    %40 = arith.truncf %39 : vector<16x64xf32> to vector<16x64xbf16>
    %c0_47 = arith.constant 0 : index
    %c384 = arith.constant 384 : index
    %41 = vector.load %arg19[%c0_47, %c384] : memref<16x576xbf16, #tpu.memory_space<vmem>>, vector<16x64xbf16>
    tpu.vector_store %arg19[%c0_47, %c384], %40 {strides = array<i32>} : memref<16x576xbf16, #tpu.memory_space<vmem>>, vector<16x64xbf16>,
    %c2_48 = arith.constant 2 : index
    %c4_49 = arith.constant 4 : index
    %42 = vector.load %arg16[%c2_48, %c4_49] : memref<18x72xf32, #tpu.memory_space<vmem>>, vector<16x64xf32>
    %43 = arith.truncf %42 : vector<16x64xf32> to vector<16x64xbf16>
    %c0_50 = arith.constant 0 : index
    %c448 = arith.constant 448 : index
    %44 = vector.load %arg19[%c0_50, %c448] : memref<16x576xbf16, #tpu.memory_space<vmem>>, vector<16x64xbf16>
    tpu.vector_store %arg19[%c0_50, %c448], %43 {strides = array<i32>} : memref<16x576xbf16, #tpu.memory_space<vmem>>, vector<16x64xbf16>,
    %c2_51 = arith.constant 2 : index
    %c8_52 = arith.constant 8 : index
    %45 = vector.load %arg16[%c2_51, %c8_52] : memref<18x72xf32, #tpu.memory_space<vmem>>, vector<16x64xf32>
    %46 = arith.truncf %45 : vector<16x64xf32> to vector<16x64xbf16>
    %c0_53 = arith.constant 0 : index
    %c512 = arith.constant 512 : index
    %47 = vector.load %arg19[%c0_53, %c512] : memref<16x576xbf16, #tpu.memory_space<vmem>>, vector<16x64xbf16>
    tpu.vector_store %arg19[%c0_53, %c512], %46 {strides = array<i32>} : memref<16x576xbf16, #tpu.memory_space<vmem>>, vector<16x64xbf16>,
    %c0_54 = arith.constant 0 : index
    %c0_55 = arith.constant 0 : index
    %48 = vector.load %arg19[%c0_54, %c0_55] : memref<16x576xbf16, #tpu.memory_space<vmem>>, vector<16x576xbf16>
    %c0_56 = arith.constant 0 : index
    %c0_57 = arith.constant 0 : index
    %49 = vector.load %arg3[%c0_56, %c0_57] : memref<576x128xbf16, #tpu.memory_space<vmem>>, vector<576x128xbf16>
    %cst_58 = arith.constant dense<0.000000e+00> : vector<16x128xf32>
    %50 = tpu.matmul %48, %49, %cst_58 {dimension_numbers = #tpu.dot_dimension_numbers<[1], [0], [0], [1], [0, 0, 1, 1], [], []>} : vector<16x576xbf16>, vector<576x128xbf16>, vector<16x128xf32> -> vector<16x128xf32>
    %c0_59 = arith.constant 0 : index
    %c0_60 = arith.constant 0 : index
    %51 = vector.load %arg4[%c0_59, %c0_60] : memref<1x128xf32, #tpu.memory_space<vmem>>, vector<1x128xf32>
    %52 = vector.broadcast %51 : vector<1x128xf32> to vector<16x128xf32>
    %53 = arith.addf %50, %52 : vector<16x128xf32>
    %cst_61 = arith.constant 0.000000e+00 : f32
    %54 = vector.broadcast %cst_61 : f32 to vector<16x128xf32>
    %55 = arith.maximumf %53, %54 : vector<16x128xf32>
    %c1_62 = arith.constant 1 : index
    %c8_63 = arith.constant 8 : index
    %56 = vector.load %arg17[%c1_62, %c8_63] : memref<18x144xf32, #tpu.memory_space<vmem>>, vector<16x128xf32>
    tpu.vector_store %arg17[%c1_62, %c8_63], %55 {strides = array<i32>} : memref<18x144xf32, #tpu.memory_space<vmem>>, vector<16x128xf32>,
    %c0_64 = arith.constant 0 : index
    %c0_65 = arith.constant 0 : index
    %57 = vector.load %arg17[%c0_64, %c0_65] : memref<18x144xf32, #tpu.memory_space<vmem>>, vector<16x128xf32>
    %58 = arith.truncf %57 : vector<16x128xf32> to vector<16x128xbf16>
    %c0_66 = arith.constant 0 : index
    %c0_67 = arith.constant 0 : index
    %59 = vector.load %arg20[%c0_66, %c0_67] : memref<16x1152xbf16, #tpu.memory_space<vmem>>, vector<16x128xbf16>
    tpu.vector_store %arg20[%c0_66, %c0_67], %58 {strides = array<i32>} : memref<16x1152xbf16, #tpu.memory_space<vmem>>, vector<16x128xbf16>,
    %c0_68 = arith.constant 0 : index
    %c8_69 = arith.constant 8 : index
    %60 = vector.load %arg17[%c0_68, %c8_69] : memref<18x144xf32, #tpu.memory_space<vmem>>, vector<16x128xf32>
    %61 = arith.truncf %60 : vector<16x128xf32> to vector<16x128xbf16>
    %c0_70 = arith.constant 0 : index
    %c128_71 = arith.constant 128 : index
    %62 = vector.load %arg20[%c0_70, %c128_71] : memref<16x1152xbf16, #tpu.memory_space<vmem>>, vector<16x128xbf16>
    tpu.vector_store %arg20[%c0_70, %c128_71], %61 {strides = array<i32>} : memref<16x1152xbf16, #tpu.memory_space<vmem>>, vector<16x128xbf16>,
    %c0_72 = arith.constant 0 : index
    %c16 = arith.constant 16 : index
    %63 = vector.load %arg17[%c0_72, %c16] : memref<18x144xf32, #tpu.memory_space<vmem>>, vector<16x128xf32>
    %64 = arith.truncf %63 : vector<16x128xf32> to vector<16x128xbf16>
    %c0_73 = arith.constant 0 : index
    %c256_74 = arith.constant 256 : index
    %65 = vector.load %arg20[%c0_73, %c256_74] : memref<16x1152xbf16, #tpu.memory_space<vmem>>, vector<16x128xbf16>
    tpu.vector_store %arg20[%c0_73, %c256_74], %64 {strides = array<i32>} : memref<16x1152xbf16, #tpu.memory_space<vmem>>, vector<16x128xbf16>,
    %c1_75 = arith.constant 1 : index
    %c0_76 = arith.constant 0 : index
    %66 = vector.load %arg17[%c1_75, %c0_76] : memref<18x144xf32, #tpu.memory_space<vmem>>, vector<16x128xf32>
    %67 = arith.truncf %66 : vector<16x128xf32> to vector<16x128xbf16>
    %c0_77 = arith.constant 0 : index
    %c384_78 = arith.constant 384 : index
    %68 = vector.load %arg20[%c0_77, %c384_78] : memref<16x1152xbf16, #tpu.memory_space<vmem>>, vector<16x128xbf16>
    tpu.vector_store %arg20[%c0_77, %c384_78], %67 {strides = array<i32>} : memref<16x1152xbf16, #tpu.memory_space<vmem>>, vector<16x128xbf16>,
    %c1_79 = arith.constant 1 : index
    %c8_80 = arith.constant 8 : index
    %69 = vector.load %arg17[%c1_79, %c8_80] : memref<18x144xf32, #tpu.memory_space<vmem>>, vector<16x128xf32>
    %70 = arith.truncf %69 : vector<16x128xf32> to vector<16x128xbf16>
    %c0_81 = arith.constant 0 : index
    %c512_82 = arith.constant 512 : index
    %71 = vector.load %arg20[%c0_81, %c512_82] : memref<16x1152xbf16, #tpu.memory_space<vmem>>, vector<16x128xbf16>
    tpu.vector_store %arg20[%c0_81, %c512_82], %70 {strides = array<i32>} : memref<16x1152xbf16, #tpu.memory_space<vmem>>, vector<16x128xbf16>,
    %c1_83 = arith.constant 1 : index
    %c16_84 = arith.constant 16 : index
    %72 = vector.load %arg17[%c1_83, %c16_84] : memref<18x144xf32, #tpu.memory_space<vmem>>, vector<16x128xf32>
    %73 = arith.truncf %72 : vector<16x128xf32> to vector<16x128xbf16>
    %c0_85 = arith.constant 0 : index
    %c640 = arith.constant 640 : index
    %74 = vector.load %arg20[%c0_85, %c640] : memref<16x1152xbf16, #tpu.memory_space<vmem>>, vector<16x128xbf16>
    tpu.vector_store %arg20[%c0_85, %c640], %73 {strides = array<i32>} : memref<16x1152xbf16, #tpu.memory_space<vmem>>, vector<16x128xbf16>,
    %c2_86 = arith.constant 2 : index
    %c0_87 = arith.constant 0 : index
    %75 = vector.load %arg17[%c2_86, %c0_87] : memref<18x144xf32, #tpu.memory_space<vmem>>, vector<16x128xf32>
    %76 = arith.truncf %75 : vector<16x128xf32> to vector<16x128xbf16>
    %c0_88 = arith.constant 0 : index
    %c768 = arith.constant 768 : index
    %77 = vector.load %arg20[%c0_88, %c768] : memref<16x1152xbf16, #tpu.memory_space<vmem>>, vector<16x128xbf16>
    tpu.vector_store %arg20[%c0_88, %c768], %76 {strides = array<i32>} : memref<16x1152xbf16, #tpu.memory_space<vmem>>, vector<16x128xbf16>,
    %c2_89 = arith.constant 2 : index
    %c8_90 = arith.constant 8 : index
    %78 = vector.load %arg17[%c2_89, %c8_90] : memref<18x144xf32, #tpu.memory_space<vmem>>, vector<16x128xf32>
    %79 = arith.truncf %78 : vector<16x128xf32> to vector<16x128xbf16>
    %c0_91 = arith.constant 0 : index
    %c896 = arith.constant 896 : index
    %80 = vector.load %arg20[%c0_91, %c896] : memref<16x1152xbf16, #tpu.memory_space<vmem>>, vector<16x128xbf16>
    tpu.vector_store %arg20[%c0_91, %c896], %79 {strides = array<i32>} : memref<16x1152xbf16, #tpu.memory_space<vmem>>, vector<16x128xbf16>,
    %c2_92 = arith.constant 2 : index
    %c16_93 = arith.constant 16 : index
    %81 = vector.load %arg17[%c2_92, %c16_93] : memref<18x144xf32, #tpu.memory_space<vmem>>, vector<16x128xf32>
    %82 = arith.truncf %81 : vector<16x128xf32> to vector<16x128xbf16>
    %c0_94 = arith.constant 0 : index
    %c1024 = arith.constant 1024 : index
    %83 = vector.load %arg20[%c0_94, %c1024] : memref<16x1152xbf16, #tpu.memory_space<vmem>>, vector<16x128xbf16>
    tpu.vector_store %arg20[%c0_94, %c1024], %82 {strides = array<i32>} : memref<16x1152xbf16, #tpu.memory_space<vmem>>, vector<16x128xbf16>,
    %c0_95 = arith.constant 0 : index
    %c0_96 = arith.constant 0 : index
    %84 = vector.load %arg20[%c0_95, %c0_96] : memref<16x1152xbf16, #tpu.memory_space<vmem>>, vector<16x1152xbf16>
    %c0_97 = arith.constant 0 : index
    %c0_98 = arith.constant 0 : index
    %85 = vector.load %arg5[%c0_97, %c0_98] : memref<1152x128xbf16, #tpu.memory_space<vmem>>, vector<1152x128xbf16>
    %cst_99 = arith.constant dense<0.000000e+00> : vector<16x128xf32>
    %86 = tpu.matmul %84, %85, %cst_99 {dimension_numbers = #tpu.dot_dimension_numbers<[1], [0], [0], [1], [0, 0, 1, 1], [], []>} : vector<16x1152xbf16>, vector<1152x128xbf16>, vector<16x128xf32> -> vector<16x128xf32>
    %c0_100 = arith.constant 0 : index
    %c0_101 = arith.constant 0 : index
    %87 = vector.load %arg6[%c0_100, %c0_101] : memref<1x128xf32, #tpu.memory_space<vmem>>, vector<1x128xf32>
    %88 = vector.broadcast %87 : vector<1x128xf32> to vector<16x128xf32>
    %89 = arith.addf %86, %88 : vector<16x128xf32>
    %cst_102 = arith.constant 0.000000e+00 : f32
    %90 = vector.broadcast %cst_102 : f32 to vector<16x128xf32>
    %91 = arith.maximumf %89, %90 : vector<16x128xf32>
    %c1_103 = arith.constant 1 : index
    %c8_104 = arith.constant 8 : index
    %92 = vector.load %arg18[%c1_103, %c8_104] : memref<18x144xf32, #tpu.memory_space<vmem>>, vector<16x128xf32>
    tpu.vector_store %arg18[%c1_103, %c8_104], %91 {strides = array<i32>} : memref<18x144xf32, #tpu.memory_space<vmem>>, vector<16x128xf32>,
    %c0_105 = arith.constant 0 : index
    %c0_106 = arith.constant 0 : index
    %93 = vector.load %arg18[%c0_105, %c0_106] : memref<18x144xf32, #tpu.memory_space<vmem>>, vector<16x128xf32>
    %94 = arith.truncf %93 : vector<16x128xf32> to vector<16x128xbf16>
    %c0_107 = arith.constant 0 : index
    %c0_108 = arith.constant 0 : index
    %95 = vector.load %arg20[%c0_107, %c0_108] : memref<16x1152xbf16, #tpu.memory_space<vmem>>, vector<16x128xbf16>
    tpu.vector_store %arg20[%c0_107, %c0_108], %94 {strides = array<i32>} : memref<16x1152xbf16, #tpu.memory_space<vmem>>, vector<16x128xbf16>,
    %c0_109 = arith.constant 0 : index
    %c8_110 = arith.constant 8 : index
    %96 = vector.load %arg18[%c0_109, %c8_110] : memref<18x144xf32, #tpu.memory_space<vmem>>, vector<16x128xf32>
    %97 = arith.truncf %96 : vector<16x128xf32> to vector<16x128xbf16>
    %c0_111 = arith.constant 0 : index
    %c128_112 = arith.constant 128 : index
    %98 = vector.load %arg20[%c0_111, %c128_112] : memref<16x1152xbf16, #tpu.memory_space<vmem>>, vector<16x128xbf16>
    tpu.vector_store %arg20[%c0_111, %c128_112], %97 {strides = array<i32>} : memref<16x1152xbf16, #tpu.memory_space<vmem>>, vector<16x128xbf16>,
    %c0_113 = arith.constant 0 : index
    %c16_114 = arith.constant 16 : index
    %99 = vector.load %arg18[%c0_113, %c16_114] : memref<18x144xf32, #tpu.memory_space<vmem>>, vector<16x128xf32>
    %100 = arith.truncf %99 : vector<16x128xf32> to vector<16x128xbf16>
    %c0_115 = arith.constant 0 : index
    %c256_116 = arith.constant 256 : index
    %101 = vector.load %arg20[%c0_115, %c256_116] : memref<16x1152xbf16, #tpu.memory_space<vmem>>, vector<16x128xbf16>
    tpu.vector_store %arg20[%c0_115, %c256_116], %100 {strides = array<i32>} : memref<16x1152xbf16, #tpu.memory_space<vmem>>, vector<16x128xbf16>,
    %c1_117 = arith.constant 1 : index
    %c0_118 = arith.constant 0 : index
    %102 = vector.load %arg18[%c1_117, %c0_118] : memref<18x144xf32, #tpu.memory_space<vmem>>, vector<16x128xf32>
    %103 = arith.truncf %102 : vector<16x128xf32> to vector<16x128xbf16>
    %c0_119 = arith.constant 0 : index
    %c384_120 = arith.constant 384 : index
    %104 = vector.load %arg20[%c0_119, %c384_120] : memref<16x1152xbf16, #tpu.memory_space<vmem>>, vector<16x128xbf16>
    tpu.vector_store %arg20[%c0_119, %c384_120], %103 {strides = array<i32>} : memref<16x1152xbf16, #tpu.memory_space<vmem>>, vector<16x128xbf16>,
    %c1_121 = arith.constant 1 : index
    %c8_122 = arith.constant 8 : index
    %105 = vector.load %arg18[%c1_121, %c8_122] : memref<18x144xf32, #tpu.memory_space<vmem>>, vector<16x128xf32>
    %106 = arith.truncf %105 : vector<16x128xf32> to vector<16x128xbf16>
    %c0_123 = arith.constant 0 : index
    %c512_124 = arith.constant 512 : index
    %107 = vector.load %arg20[%c0_123, %c512_124] : memref<16x1152xbf16, #tpu.memory_space<vmem>>, vector<16x128xbf16>
    tpu.vector_store %arg20[%c0_123, %c512_124], %106 {strides = array<i32>} : memref<16x1152xbf16, #tpu.memory_space<vmem>>, vector<16x128xbf16>,
    %c1_125 = arith.constant 1 : index
    %c16_126 = arith.constant 16 : index
    %108 = vector.load %arg18[%c1_125, %c16_126] : memref<18x144xf32, #tpu.memory_space<vmem>>, vector<16x128xf32>
    %109 = arith.truncf %108 : vector<16x128xf32> to vector<16x128xbf16>
    %c0_127 = arith.constant 0 : index
    %c640_128 = arith.constant 640 : index
    %110 = vector.load %arg20[%c0_127, %c640_128] : memref<16x1152xbf16, #tpu.memory_space<vmem>>, vector<16x128xbf16>
    tpu.vector_store %arg20[%c0_127, %c640_128], %109 {strides = array<i32>} : memref<16x1152xbf16, #tpu.memory_space<vmem>>, vector<16x128xbf16>,
    %c2_129 = arith.constant 2 : index
    %c0_130 = arith.constant 0 : index
    %111 = vector.load %arg18[%c2_129, %c0_130] : memref<18x144xf32, #tpu.memory_space<vmem>>, vector<16x128xf32>
    %112 = arith.truncf %111 : vector<16x128xf32> to vector<16x128xbf16>
    %c0_131 = arith.constant 0 : index
    %c768_132 = arith.constant 768 : index
    %113 = vector.load %arg20[%c0_131, %c768_132] : memref<16x1152xbf16, #tpu.memory_space<vmem>>, vector<16x128xbf16>
    tpu.vector_store %arg20[%c0_131, %c768_132], %112 {strides = array<i32>} : memref<16x1152xbf16, #tpu.memory_space<vmem>>, vector<16x128xbf16>,
    %c2_133 = arith.constant 2 : index
    %c8_134 = arith.constant 8 : index
    %114 = vector.load %arg18[%c2_133, %c8_134] : memref<18x144xf32, #tpu.memory_space<vmem>>, vector<16x128xf32>
    %115 = arith.truncf %114 : vector<16x128xf32> to vector<16x128xbf16>
    %c0_135 = arith.constant 0 : index
    %c896_136 = arith.constant 896 : index
    %116 = vector.load %arg20[%c0_135, %c896_136] : memref<16x1152xbf16, #tpu.memory_space<vmem>>, vector<16x128xbf16>
    tpu.vector_store %arg20[%c0_135, %c896_136], %115 {strides = array<i32>} : memref<16x1152xbf16, #tpu.memory_space<vmem>>, vector<16x128xbf16>,
    %c2_137 = arith.constant 2 : index
    %c16_138 = arith.constant 16 : index
    %117 = vector.load %arg18[%c2_137, %c16_138] : memref<18x144xf32, #tpu.memory_space<vmem>>, vector<16x128xf32>
    %118 = arith.truncf %117 : vector<16x128xf32> to vector<16x128xbf16>
    %c0_139 = arith.constant 0 : index
    %c1024_140 = arith.constant 1024 : index
    %119 = vector.load %arg20[%c0_139, %c1024_140] : memref<16x1152xbf16, #tpu.memory_space<vmem>>, vector<16x128xbf16>
    tpu.vector_store %arg20[%c0_139, %c1024_140], %118 {strides = array<i32>} : memref<16x1152xbf16, #tpu.memory_space<vmem>>, vector<16x128xbf16>,
    %c0_141 = arith.constant 0 : index
    %c0_142 = arith.constant 0 : index
    %120 = vector.load %arg20[%c0_141, %c0_142] : memref<16x1152xbf16, #tpu.memory_space<vmem>>, vector<16x1152xbf16>
    %c0_143 = arith.constant 0 : index
    %c0_144 = arith.constant 0 : index
    %121 = vector.load %arg7[%c0_143, %c0_144] : memref<1152x128xbf16, #tpu.memory_space<vmem>>, vector<1152x128xbf16>
    %cst_145 = arith.constant dense<0.000000e+00> : vector<16x128xf32>
    %122 = tpu.matmul %120, %121, %cst_145 {dimension_numbers = #tpu.dot_dimension_numbers<[1], [0], [0], [1], [0, 0, 1, 1], [], []>} : vector<16x1152xbf16>, vector<1152x128xbf16>, vector<16x128xf32> -> vector<16x128xf32>
    %c0_146 = arith.constant 0 : index
    %c0_147 = arith.constant 0 : index
    %123 = vector.load %arg8[%c0_146, %c0_147] : memref<1x128xf32, #tpu.memory_space<vmem>>, vector<1x128xf32>
    %124 = vector.broadcast %123 : vector<1x128xf32> to vector<16x128xf32>
    %125 = arith.addf %122, %124 : vector<16x128xf32>
    %126 = arith.addf %53, %125 : vector<16x128xf32>
    %c0_148 = arith.constant 0 : index
    %c0_149 = arith.constant 0 : index
    %c0_150 = arith.constant 0 : index
    %127 = vector.load %arg2[%c0_148, %c0_149, %c0_150] : memref<1x8x64xf32, #tpu.memory_space<vmem>>, vector<1x8x64xf32>
    %128 = vector.shape_cast %127 : vector<1x8x64xf32> to vector<8x64xf32>
    %129 = arith.truncf %128 : vector<8x64xf32> to vector<8x64xbf16>
    %c0_151 = arith.constant 0 : index
    %c0_152 = arith.constant 0 : index
    %130 = vector.load %arg13[%c0_151, %c0_152] : memref<16x8xbf16, #tpu.memory_space<vmem>>, vector<16x8xbf16>
    %cst_153 = arith.constant dense<0.000000e+00> : vector<16x64xf32>
    %131 = tpu.matmul %130, %129, %cst_153 {dimension_numbers = #tpu.dot_dimension_numbers<[1], [0], [0], [1], [0, 0, 1, 1], [], []>} : vector<16x8xbf16>, vector<8x64xbf16>, vector<16x64xf32> -> vector<16x64xf32>
    %132 = arith.truncf %131 : vector<16x64xf32> to vector<16x64xbf16>
    %c0_154 = arith.constant 0 : index
    %c0_155 = arith.constant 0 : index
    %133 = vector.load %arg14[%c0_154, %c0_155] : memref<64x128xbf16, #tpu.memory_space<vmem>>, vector<64x128xbf16>
    %cst_156 = arith.constant dense<0.000000e+00> : vector<16x128xf32>
    %134 = tpu.matmul %132, %133, %cst_156 {dimension_numbers = #tpu.dot_dimension_numbers<[1], [0], [0], [1], [0, 0, 1, 1], [], []>} : vector<16x64xbf16>, vector<64x128xbf16>, vector<16x128xf32> -> vector<16x128xf32>
    %135 = arith.addf %126, %134 : vector<16x128xf32>
    %cst_157 = arith.constant 0.000000e+00 : f32
    %136 = vector.broadcast %cst_157 : f32 to vector<16x128xf32>
    %137 = arith.maximumf %135, %136 : vector<16x128xf32>
    %c1_158 = arith.constant 1 : index
    %c8_159 = arith.constant 8 : index
    %138 = vector.load %arg17[%c1_158, %c8_159] : memref<18x144xf32, #tpu.memory_space<vmem>>, vector<16x128xf32>
    tpu.vector_store %arg17[%c1_158, %c8_159], %137 {strides = array<i32>} : memref<18x144xf32, #tpu.memory_space<vmem>>, vector<16x128xf32>,
    %c0_160 = arith.constant 0 : index
    %c0_161 = arith.constant 0 : index
    %139 = vector.load %arg17[%c0_160, %c0_161] : memref<18x144xf32, #tpu.memory_space<vmem>>, vector<16x128xf32>
    %140 = arith.truncf %139 : vector<16x128xf32> to vector<16x128xbf16>
    %c0_162 = arith.constant 0 : index
    %c0_163 = arith.constant 0 : index
    %141 = vector.load %arg20[%c0_162, %c0_163] : memref<16x1152xbf16, #tpu.memory_space<vmem>>, vector<16x128xbf16>
    tpu.vector_store %arg20[%c0_162, %c0_163], %140 {strides = array<i32>} : memref<16x1152xbf16, #tpu.memory_space<vmem>>, vector<16x128xbf16>,
    %c0_164 = arith.constant 0 : index
    %c8_165 = arith.constant 8 : index
    %142 = vector.load %arg17[%c0_164, %c8_165] : memref<18x144xf32, #tpu.memory_space<vmem>>, vector<16x128xf32>
    %143 = arith.truncf %142 : vector<16x128xf32> to vector<16x128xbf16>
    %c0_166 = arith.constant 0 : index
    %c128_167 = arith.constant 128 : index
    %144 = vector.load %arg20[%c0_166, %c128_167] : memref<16x1152xbf16, #tpu.memory_space<vmem>>, vector<16x128xbf16>
    tpu.vector_store %arg20[%c0_166, %c128_167], %143 {strides = array<i32>} : memref<16x1152xbf16, #tpu.memory_space<vmem>>, vector<16x128xbf16>,
    %c0_168 = arith.constant 0 : index
    %c16_169 = arith.constant 16 : index
    %145 = vector.load %arg17[%c0_168, %c16_169] : memref<18x144xf32, #tpu.memory_space<vmem>>, vector<16x128xf32>
    %146 = arith.truncf %145 : vector<16x128xf32> to vector<16x128xbf16>
    %c0_170 = arith.constant 0 : index
    %c256_171 = arith.constant 256 : index
    %147 = vector.load %arg20[%c0_170, %c256_171] : memref<16x1152xbf16, #tpu.memory_space<vmem>>, vector<16x128xbf16>
    tpu.vector_store %arg20[%c0_170, %c256_171], %146 {strides = array<i32>} : memref<16x1152xbf16, #tpu.memory_space<vmem>>, vector<16x128xbf16>,
    %c1_172 = arith.constant 1 : index
    %c0_173 = arith.constant 0 : index
    %148 = vector.load %arg17[%c1_172, %c0_173] : memref<18x144xf32, #tpu.memory_space<vmem>>, vector<16x128xf32>
    %149 = arith.truncf %148 : vector<16x128xf32> to vector<16x128xbf16>
    %c0_174 = arith.constant 0 : index
    %c384_175 = arith.constant 384 : index
    %150 = vector.load %arg20[%c0_174, %c384_175] : memref<16x1152xbf16, #tpu.memory_space<vmem>>, vector<16x128xbf16>
    tpu.vector_store %arg20[%c0_174, %c384_175], %149 {strides = array<i32>} : memref<16x1152xbf16, #tpu.memory_space<vmem>>, vector<16x128xbf16>,
    %c1_176 = arith.constant 1 : index
    %c8_177 = arith.constant 8 : index
    %151 = vector.load %arg17[%c1_176, %c8_177] : memref<18x144xf32, #tpu.memory_space<vmem>>, vector<16x128xf32>
    %152 = arith.truncf %151 : vector<16x128xf32> to vector<16x128xbf16>
    %c0_178 = arith.constant 0 : index
    %c512_179 = arith.constant 512 : index
    %153 = vector.load %arg20[%c0_178, %c512_179] : memref<16x1152xbf16, #tpu.memory_space<vmem>>, vector<16x128xbf16>
    tpu.vector_store %arg20[%c0_178, %c512_179], %152 {strides = array<i32>} : memref<16x1152xbf16, #tpu.memory_space<vmem>>, vector<16x128xbf16>,
    %c1_180 = arith.constant 1 : index
    %c16_181 = arith.constant 16 : index
    %154 = vector.load %arg17[%c1_180, %c16_181] : memref<18x144xf32, #tpu.memory_space<vmem>>, vector<16x128xf32>
    %155 = arith.truncf %154 : vector<16x128xf32> to vector<16x128xbf16>
    %c0_182 = arith.constant 0 : index
    %c640_183 = arith.constant 640 : index
    %156 = vector.load %arg20[%c0_182, %c640_183] : memref<16x1152xbf16, #tpu.memory_space<vmem>>, vector<16x128xbf16>
    tpu.vector_store %arg20[%c0_182, %c640_183], %155 {strides = array<i32>} : memref<16x1152xbf16, #tpu.memory_space<vmem>>, vector<16x128xbf16>,
    %c2_184 = arith.constant 2 : index
    %c0_185 = arith.constant 0 : index
    %157 = vector.load %arg17[%c2_184, %c0_185] : memref<18x144xf32, #tpu.memory_space<vmem>>, vector<16x128xf32>
    %158 = arith.truncf %157 : vector<16x128xf32> to vector<16x128xbf16>
    %c0_186 = arith.constant 0 : index
    %c768_187 = arith.constant 768 : index
    %159 = vector.load %arg20[%c0_186, %c768_187] : memref<16x1152xbf16, #tpu.memory_space<vmem>>, vector<16x128xbf16>
    tpu.vector_store %arg20[%c0_186, %c768_187], %158 {strides = array<i32>} : memref<16x1152xbf16, #tpu.memory_space<vmem>>, vector<16x128xbf16>,
    %c2_188 = arith.constant 2 : index
    %c8_189 = arith.constant 8 : index
    %160 = vector.load %arg17[%c2_188, %c8_189] : memref<18x144xf32, #tpu.memory_space<vmem>>, vector<16x128xf32>
    %161 = arith.truncf %160 : vector<16x128xf32> to vector<16x128xbf16>
    %c0_190 = arith.constant 0 : index
    %c896_191 = arith.constant 896 : index
    %162 = vector.load %arg20[%c0_190, %c896_191] : memref<16x1152xbf16, #tpu.memory_space<vmem>>, vector<16x128xbf16>
    tpu.vector_store %arg20[%c0_190, %c896_191], %161 {strides = array<i32>} : memref<16x1152xbf16, #tpu.memory_space<vmem>>, vector<16x128xbf16>,
    %c2_192 = arith.constant 2 : index
    %c16_193 = arith.constant 16 : index
    %163 = vector.load %arg17[%c2_192, %c16_193] : memref<18x144xf32, #tpu.memory_space<vmem>>, vector<16x128xf32>
    %164 = arith.truncf %163 : vector<16x128xf32> to vector<16x128xbf16>
    %c0_194 = arith.constant 0 : index
    %c1024_195 = arith.constant 1024 : index
    %165 = vector.load %arg20[%c0_194, %c1024_195] : memref<16x1152xbf16, #tpu.memory_space<vmem>>, vector<16x128xbf16>
    tpu.vector_store %arg20[%c0_194, %c1024_195], %164 {strides = array<i32>} : memref<16x1152xbf16, #tpu.memory_space<vmem>>, vector<16x128xbf16>,
    %c0_196 = arith.constant 0 : index
    %c0_197 = arith.constant 0 : index
    %166 = vector.load %arg20[%c0_196, %c0_197] : memref<16x1152xbf16, #tpu.memory_space<vmem>>, vector<16x1152xbf16>
    %c0_198 = arith.constant 0 : index
    %c0_199 = arith.constant 0 : index
    %167 = vector.load %arg9[%c0_198, %c0_199] : memref<1152x128xbf16, #tpu.memory_space<vmem>>, vector<1152x128xbf16>
    %cst_200 = arith.constant dense<0.000000e+00> : vector<16x128xf32>
    %168 = tpu.matmul %166, %167, %cst_200 {dimension_numbers = #tpu.dot_dimension_numbers<[1], [0], [0], [1], [0, 0, 1, 1], [], []>} : vector<16x1152xbf16>, vector<1152x128xbf16>, vector<16x128xf32> -> vector<16x128xf32>
    %c0_201 = arith.constant 0 : index
    %c0_202 = arith.constant 0 : index
    %169 = vector.load %arg10[%c0_201, %c0_202] : memref<1x128xf32, #tpu.memory_space<vmem>>, vector<1x128xf32>
    %170 = vector.broadcast %169 : vector<1x128xf32> to vector<16x128xf32>
    %171 = arith.addf %168, %170 : vector<16x128xf32>
    %cst_203 = arith.constant 0.000000e+00 : f32
    %172 = vector.broadcast %cst_203 : f32 to vector<16x128xf32>
    %173 = arith.maximumf %171, %172 : vector<16x128xf32>
    %c1_204 = arith.constant 1 : index
    %c8_205 = arith.constant 8 : index
    %174 = vector.load %arg18[%c1_204, %c8_205] : memref<18x144xf32, #tpu.memory_space<vmem>>, vector<16x128xf32>
    tpu.vector_store %arg18[%c1_204, %c8_205], %173 {strides = array<i32>} : memref<18x144xf32, #tpu.memory_space<vmem>>, vector<16x128xf32>,
    %c0_206 = arith.constant 0 : index
    %c0_207 = arith.constant 0 : index
    %175 = vector.load %arg18[%c0_206, %c0_207] : memref<18x144xf32, #tpu.memory_space<vmem>>, vector<16x128xf32>
    %176 = arith.truncf %175 : vector<16x128xf32> to vector<16x128xbf16>
    %c0_208 = arith.constant 0 : index
    %c0_209 = arith.constant 0 : index
    %177 = vector.load %arg20[%c0_208, %c0_209] : memref<16x1152xbf16, #tpu.memory_space<vmem>>, vector<16x128xbf16>
    tpu.vector_store %arg20[%c0_208, %c0_209], %176 {strides = array<i32>} : memref<16x1152xbf16, #tpu.memory_space<vmem>>, vector<16x128xbf16>,
    %c0_210 = arith.constant 0 : index
    %c8_211 = arith.constant 8 : index
    %178 = vector.load %arg18[%c0_210, %c8_211] : memref<18x144xf32, #tpu.memory_space<vmem>>, vector<16x128xf32>
    %179 = arith.truncf %178 : vector<16x128xf32> to vector<16x128xbf16>
    %c0_212 = arith.constant 0 : index
    %c128_213 = arith.constant 128 : index
    %180 = vector.load %arg20[%c0_212, %c128_213] : memref<16x1152xbf16, #tpu.memory_space<vmem>>, vector<16x128xbf16>
    tpu.vector_store %arg20[%c0_212, %c128_213], %179 {strides = array<i32>} : memref<16x1152xbf16, #tpu.memory_space<vmem>>, vector<16x128xbf16>,
    %c0_214 = arith.constant 0 : index
    %c16_215 = arith.constant 16 : index
    %181 = vector.load %arg18[%c0_214, %c16_215] : memref<18x144xf32, #tpu.memory_space<vmem>>, vector<16x128xf32>
    %182 = arith.truncf %181 : vector<16x128xf32> to vector<16x128xbf16>
    %c0_216 = arith.constant 0 : index
    %c256_217 = arith.constant 256 : index
    %183 = vector.load %arg20[%c0_216, %c256_217] : memref<16x1152xbf16, #tpu.memory_space<vmem>>, vector<16x128xbf16>
    tpu.vector_store %arg20[%c0_216, %c256_217], %182 {strides = array<i32>} : memref<16x1152xbf16, #tpu.memory_space<vmem>>, vector<16x128xbf16>,
    %c1_218 = arith.constant 1 : index
    %c0_219 = arith.constant 0 : index
    %184 = vector.load %arg18[%c1_218, %c0_219] : memref<18x144xf32, #tpu.memory_space<vmem>>, vector<16x128xf32>
    %185 = arith.truncf %184 : vector<16x128xf32> to vector<16x128xbf16>
    %c0_220 = arith.constant 0 : index
    %c384_221 = arith.constant 384 : index
    %186 = vector.load %arg20[%c0_220, %c384_221] : memref<16x1152xbf16, #tpu.memory_space<vmem>>, vector<16x128xbf16>
    tpu.vector_store %arg20[%c0_220, %c384_221], %185 {strides = array<i32>} : memref<16x1152xbf16, #tpu.memory_space<vmem>>, vector<16x128xbf16>,
    %c1_222 = arith.constant 1 : index
    %c8_223 = arith.constant 8 : index
    %187 = vector.load %arg18[%c1_222, %c8_223] : memref<18x144xf32, #tpu.memory_space<vmem>>, vector<16x128xf32>
    %188 = arith.truncf %187 : vector<16x128xf32> to vector<16x128xbf16>
    %c0_224 = arith.constant 0 : index
    %c512_225 = arith.constant 512 : index
    %189 = vector.load %arg20[%c0_224, %c512_225] : memref<16x1152xbf16, #tpu.memory_space<vmem>>, vector<16x128xbf16>
    tpu.vector_store %arg20[%c0_224, %c512_225], %188 {strides = array<i32>} : memref<16x1152xbf16, #tpu.memory_space<vmem>>, vector<16x128xbf16>,
    %c1_226 = arith.constant 1 : index
    %c16_227 = arith.constant 16 : index
    %190 = vector.load %arg18[%c1_226, %c16_227] : memref<18x144xf32, #tpu.memory_space<vmem>>, vector<16x128xf32>
    %191 = arith.truncf %190 : vector<16x128xf32> to vector<16x128xbf16>
    %c0_228 = arith.constant 0 : index
    %c640_229 = arith.constant 640 : index
    %192 = vector.load %arg20[%c0_228, %c640_229] : memref<16x1152xbf16, #tpu.memory_space<vmem>>, vector<16x128xbf16>
    tpu.vector_store %arg20[%c0_228, %c640_229], %191 {strides = array<i32>} : memref<16x1152xbf16, #tpu.memory_space<vmem>>, vector<16x128xbf16>,
    %c2_230 = arith.constant 2 : index
    %c0_231 = arith.constant 0 : index
    %193 = vector.load %arg18[%c2_230, %c0_231] : memref<18x144xf32, #tpu.memory_space<vmem>>, vector<16x128xf32>
    %194 = arith.truncf %193 : vector<16x128xf32> to vector<16x128xbf16>
    %c0_232 = arith.constant 0 : index
    %c768_233 = arith.constant 768 : index
    %195 = vector.load %arg20[%c0_232, %c768_233] : memref<16x1152xbf16, #tpu.memory_space<vmem>>, vector<16x128xbf16>
    tpu.vector_store %arg20[%c0_232, %c768_233], %194 {strides = array<i32>} : memref<16x1152xbf16, #tpu.memory_space<vmem>>, vector<16x128xbf16>,
    %c2_234 = arith.constant 2 : index
    %c8_235 = arith.constant 8 : index
    %196 = vector.load %arg18[%c2_234, %c8_235] : memref<18x144xf32, #tpu.memory_space<vmem>>, vector<16x128xf32>
    %197 = arith.truncf %196 : vector<16x128xf32> to vector<16x128xbf16>
    %c0_236 = arith.constant 0 : index
    %c896_237 = arith.constant 896 : index
    %198 = vector.load %arg20[%c0_236, %c896_237] : memref<16x1152xbf16, #tpu.memory_space<vmem>>, vector<16x128xbf16>
    tpu.vector_store %arg20[%c0_236, %c896_237], %197 {strides = array<i32>} : memref<16x1152xbf16, #tpu.memory_space<vmem>>, vector<16x128xbf16>,
    %c2_238 = arith.constant 2 : index
    %c16_239 = arith.constant 16 : index
    %199 = vector.load %arg18[%c2_238, %c16_239] : memref<18x144xf32, #tpu.memory_space<vmem>>, vector<16x128xf32>
    %200 = arith.truncf %199 : vector<16x128xf32> to vector<16x128xbf16>
    %c0_240 = arith.constant 0 : index
    %c1024_241 = arith.constant 1024 : index
    %201 = vector.load %arg20[%c0_240, %c1024_241] : memref<16x1152xbf16, #tpu.memory_space<vmem>>, vector<16x128xbf16>
    tpu.vector_store %arg20[%c0_240, %c1024_241], %200 {strides = array<i32>} : memref<16x1152xbf16, #tpu.memory_space<vmem>>, vector<16x128xbf16>,
    %c0_242 = arith.constant 0 : index
    %c0_243 = arith.constant 0 : index
    %202 = vector.load %arg20[%c0_242, %c0_243] : memref<16x1152xbf16, #tpu.memory_space<vmem>>, vector<16x1152xbf16>
    %c0_244 = arith.constant 0 : index
    %c0_245 = arith.constant 0 : index
    %203 = vector.load %arg11[%c0_244, %c0_245] : memref<1152x128xbf16, #tpu.memory_space<vmem>>, vector<1152x128xbf16>
    %cst_246 = arith.constant dense<0.000000e+00> : vector<16x128xf32>
    %204 = tpu.matmul %202, %203, %cst_246 {dimension_numbers = #tpu.dot_dimension_numbers<[1], [0], [0], [1], [0, 0, 1, 1], [], []>} : vector<16x1152xbf16>, vector<1152x128xbf16>, vector<16x128xf32> -> vector<16x128xf32>
    %c0_247 = arith.constant 0 : index
    %c0_248 = arith.constant 0 : index
    %205 = vector.load %arg12[%c0_247, %c0_248] : memref<1x128xf32, #tpu.memory_space<vmem>>, vector<1x128xf32>
    %206 = vector.broadcast %205 : vector<1x128xf32> to vector<16x128xf32>
    %207 = arith.addf %204, %206 : vector<16x128xf32>
    %208 = arith.addf %135, %207 : vector<16x128xf32>
    %c0_249 = arith.constant 0 : index
    %c0_250 = arith.constant 0 : index
    %c0_251 = arith.constant 0 : index
    %209 = vector.load %arg15[%c0_249, %c0_250, %c0_251] : memref<1x16x128xf32, #tpu.memory_space<vmem>>, vector<1x16x128xf32>
    %210 = vector.shape_cast %209 : vector<1x16x128xf32> to vector<16x128xf32>
    %211 = vector.shape_cast %208 : vector<16x128xf32> to vector<1x16x128xf32>
    tpu.vector_store %arg15[%c0_249, %c0_250, %c0_251], %211 {strides = array<i32>} : memref<1x16x128xf32, #tpu.memory_space<vmem>>, vector<1x16x128xf32>,
    return
  }
  func.func @transform_0(%arg0: i32) -> (i32, i32, i32) {
    %c0_i32 = arith.constant 0 : i32
    %c0_i32_0 = arith.constant 0 : i32
    %c0_i32_1 = arith.constant 0 : i32
    return %arg0, %c0_i32, %c0_i32_0 : i32, i32, i32
  }
  func.func @transform_1(%arg0: i32) -> (i32, i32, i32) {
    %c0_i32 = arith.constant 0 : i32
    %c0_i32_0 = arith.constant 0 : i32
    %c0_i32_1 = arith.constant 0 : i32
    return %arg0, %c0_i32, %c0_i32_0 : i32, i32, i32
  }
  func.func @transform_2(%arg0: i32) -> (i32, i32) {
    %c0_i32 = arith.constant 0 : i32
    %c0_i32_0 = arith.constant 0 : i32
    %c0_i32_1 = arith.constant 0 : i32
    return %c0_i32, %c0_i32_0 : i32, i32
  }
  func.func @transform_3(%arg0: i32) -> (i32, i32) {
    %c0_i32 = arith.constant 0 : i32
    %c0_i32_0 = arith.constant 0 : i32
    %c0_i32_1 = arith.constant 0 : i32
    return %c0_i32, %c0_i32_0 : i32, i32
  }
  func.func @transform_4(%arg0: i32) -> (i32, i32) {
    %c0_i32 = arith.constant 0 : i32
    %c0_i32_0 = arith.constant 0 : i32
    %c0_i32_1 = arith.constant 0 : i32
    return %c0_i32, %c0_i32_0 : i32, i32
  }
  func.func @transform_5(%arg0: i32) -> (i32, i32) {
    %c0_i32 = arith.constant 0 : i32
    %c0_i32_0 = arith.constant 0 : i32
    %c0_i32_1 = arith.constant 0 : i32
    return %c0_i32, %c0_i32_0 : i32, i32
  }
  func.func @transform_6(%arg0: i32) -> (i32, i32) {
    %c0_i32 = arith.constant 0 : i32
    %c0_i32_0 = arith.constant 0 : i32
    %c0_i32_1 = arith.constant 0 : i32
    return %c0_i32, %c0_i32_0 : i32, i32
  }
  func.func @transform_7(%arg0: i32) -> (i32, i32) {
    %c0_i32 = arith.constant 0 : i32
    %c0_i32_0 = arith.constant 0 : i32
    %c0_i32_1 = arith.constant 0 : i32
    return %c0_i32, %c0_i32_0 : i32, i32
  }
  func.func @transform_8(%arg0: i32) -> (i32, i32) {
    %c0_i32 = arith.constant 0 : i32
    %c0_i32_0 = arith.constant 0 : i32
    %c0_i32_1 = arith.constant 0 : i32
    return %c0_i32, %c0_i32_0 : i32, i32
  }
  func.func @transform_9(%arg0: i32) -> (i32, i32) {
    %c0_i32 = arith.constant 0 : i32
    %c0_i32_0 = arith.constant 0 : i32
    %c0_i32_1 = arith.constant 0 : i32
    return %c0_i32, %c0_i32_0 : i32, i32
  }
  func.func @transform_10(%arg0: i32) -> (i32, i32) {
    %c0_i32 = arith.constant 0 : i32
    %c0_i32_0 = arith.constant 0 : i32
    %c0_i32_1 = arith.constant 0 : i32
    return %c0_i32, %c0_i32_0 : i32, i32
  }
  func.func @transform_11(%arg0: i32) -> (i32, i32) {
    %c0_i32 = arith.constant 0 : i32
    %c0_i32_0 = arith.constant 0 : i32
    %c0_i32_1 = arith.constant 0 : i32
    return %c0_i32, %c0_i32_0 : i32, i32
  }
  func.func @transform_12(%arg0: i32) -> (i32, i32) {
    %c0_i32 = arith.constant 0 : i32
    %c0_i32_0 = arith.constant 0 : i32
    %c0_i32_1 = arith.constant 0 : i32
    return %c0_i32, %c0_i32_0 : i32, i32
  }
  func.func @transform_13(%arg0: i32) -> (i32, i32) {
    %c0_i32 = arith.constant 0 : i32
    %c0_i32_0 = arith.constant 0 : i32
    %c0_i32_1 = arith.constant 0 : i32
    return %c0_i32, %c0_i32_0 : i32, i32
  }
  func.func @transform_14(%arg0: i32) -> (i32, i32, i32) {
    %c0_i32 = arith.constant 0 : i32
    %c0_i32_0 = arith.constant 0 : i32
    %c0_i32_1 = arith.constant 0 : i32
    return %arg0, %c0_i32, %c0_i32_0 : i32, i32, i32
  }
}

</mosaic_0001>

<bundles_post_ra>
// kernel: tpu_custom_call.1
= control target key start
LH: loop header
LB: loop body
LE: loop exit
PB: predicated region body
PF: predicated region fallthrough
CT: control target
= control target key end

     0   :  { %s8032_s0 = inlined_call_operand.hbm [shape: f32[2,16,64], index: 0, kind: input, shape index: {}]   ;;  %s8033_s1 = inlined_call_operand.hbm [shape: f32[2,8,64], index: 1, kind: input, shape index: {}]   ;;  %s8034_s2 = inlined_call_operand.hbm [shape: bf16[576,128], index: 2, kind: input, shape index: {}]   ;;  %s8035_s3 = inlined_call_operand.vmem [shape: f32[1,128], index: 3, kind: input, shape index: {}]   ;;  %s8036_s4 = inlined_call_operand.hbm [shape: bf16[1152,128], index: 4, kind: input, shape index: {}]   ;;  %s8037_s5 = inlined_call_operand.vmem [shape: f32[1,128], index: 5, kind: input, shape index: {}]   ;;  %s8038_s6 = inlined_call_operand.hbm [shape: bf16[1152,128], index: 6, kind: input, shape index: {}]   ;;  %s8039_s7 = inlined_call_operand.vmem [shape: f32[1,128], index: 7, kind: input, shape index: {}]   ;;  %s8040_s8 = inlined_call_operand.hbm [shape: bf16[1152,128], index: 8, kind: input, shape index: {}]   ;;  %s8041_s9 = inlined_call_operand.vmem [shape: f32[1,128], index: 9, kind: input, shape index: {}]   ;;  %s8042_s10 = inlined_call_operand.hbm [shape: bf16[1152,128], index: 10, kind: input, shape index: {}]   ;;  %s8043_s11 = inlined_call_operand.vmem [shape: f32[1,128], index: 11, kind: input, shape index: {}]   ;;  %s8044_s12 = inlined_call_operand.vmem [shape: bf16[16,8], index: 12, kind: input, shape index: {}]   ;;  %s8045_s13 = inlined_call_operand.vmem [shape: bf16[64,128], index: 13, kind: input, shape index: {}]   ;;  %s8046_s14 = inlined_call_operand.hbm [shape: f32[2,16,128], index: 14, kind: output, shape index: {}]  }
   0x1   :  { %8053 = sst [smem:[#allocation26_spill]] %s8032_s0 }
   0x2   :  { %8054 = sst [smem:[#allocation27_spill]] %s8034_s2 }
   0x3   :  { %8055 = sst [smem:[#allocation28_spill]] %s8036_s4 }
   0x4   :  { %8056 = sst [smem:[#allocation29_spill]] %s8038_s6 }
   0x5   :  { %8057 = sst [smem:[#allocation30_spill]] %s8039_s7 }
   0x6   :  { %8058 = sst [smem:[#allocation31_spill]] %s8040_s8 }
   0x7   :  { %8059 = sst [smem:[#allocation32_spill]] %s8041_s9 }
   0x8   :  { %8060 = sst [smem:[#allocation33_spill]] %s8042_s10 }
   0x9   :  { %8061 = sst [smem:[#allocation34_spill]] %s8043_s11 }
   0xa   :  { %8062 = sst [smem:[#allocation35_spill]] %s8044_s12 }
   0xb   :  { %8063 = sst [smem:[#allocation36_spill]] %s8045_s13 }
   0xc   :  { %8064 = sst [smem:[#allocation37_spill]] %s8046_s14 }
   0xd   :  { %19 = vsyncpa [#allocation8], 0 }
   0xe   :  { %21 = vsyncpa [#allocation8 + $0x1], 0 }
   0xf   :  { %22 = vsyncpa [#allocation11], 0 }
  0x10   :  { %24 = vsyncpa [#allocation11 + $0x1], 0 }
  0x11   :  { %25 = vsyncpa [#allocation14], 0 }
  0x12   :  { %26 = vsyncpa [#allocation17], 0 }
  0x13   :  { %27 = vsyncpa [#allocation9], 0 }
  0x14   :  { %29 = vsyncpa [#allocation9 + $0x1], 0  ;;  %s7289_s29 = smov 0   ;;  %s7291_s30 = smov 0  }
  0x15   :  { %s7293_s15 = smov 0   ;;  %s7295_s16 = smov 0  }
  0x16 LB: > { %s7191_s17 = smov [#allocation12]   ;;  %s7310_s19 = sadd.s32 4294967295, %s7189_s16   ;;  %s7189_s16 = sphi %s7295_s16, %s8099_s16   ;;  %s7185_s15 = sphi %s7293_s15, %s8098_s15   ;;  %s7181_s30 = sphi %s7291_s30, %s8097_s30   ;;  %s7177_s29 = sphi %s7289_s29, %s8096_s29  }
  0x17   : > { %s382_s18 = sshll.u32 %s7191_s17, 4  ;;  %p5534_p0 = scmp.ge.s32.totalorder %s7189_s16, 1  ;;  %s7315_s18 = int_to_ptr.vmem [resolvable:$true] %s382_s18 }
  0x18   : > { %p8049_p1 = scmp.eq.s32.totalorder %s7310_s19, 0  ;;  %p370_p2 = scmp.lt.s32.totalorder %s7189_s16, 3 }
  0x19   : > { %s7192_s21 = smov [#allocation13]   ;;  %s7193_s24 = smov [#allocation16]  }
  0x1a   : > { %p7317_p3 = pnand %p5534_p0, %p370_p2  ;;  %s398_s22 = sshll.u32 %s7192_s21, 4  ;;  %s7330_s22 = int_to_ptr.vmem [resolvable:$true] %s398_s22 }
  0x1b   : > { %s430_s25 = sshll.u32 %s7193_s24, 4  ;;  %s8067_s2 = sld [smem:[#allocation27_spill]]  ;;  %s7332_s25 = int_to_ptr.vmem [resolvable:$true] %s430_s25 }
  0x1c   : > { %s8065_s20 = scalar_select %p7317_p3, 1, 0 }
  0x1d   : > { %p6487_p5 = pneg %p7317_p3 }
  0x1f   : > { %p7326_p6 = pnand %p6487_p5, %p8049_p1 }
  0x21   : > { %s6907_s28 = scalar_lea.hbm %s8067_s2, 4608  ;;  %p7342_p8 = pneg %p7326_p6 }
  0x22   : > { %p6908_p7 = scmp.ne.s32.totalorder %s8067_s2, %s6907_s28  ;;  %p6914_p11 = scmp.lt.u32.totalorder %s6907_s28, %s8067_s2 }
  0x24   : > { %p6910_p9 = pnand %p7342_p8, %p6908_p7 }
  0x26   : > { %p6911_p10 = pneg %p6910_p9 }
  0x28   : > { %p6916_p12 = pnand %p6914_p11, %p6911_p10 }
  0x2a   : > { %6919 = shalt.err (!%p6916_p12)
}
  0x2b   : > { %s6920_s14 = scalar_lea.vmem %s7315_s18, 4608  ;;  %p6928_p5 = scmp.lt.s32.totalorder %s7315_s18, %s7315_s18 }
  0x2c   : > { %p6921_p13 = scmp.ne.s32.totalorder %s7315_s18, %s6920_s14  ;;  %p6929_p4 = scmp.lt.s32.totalorder %s6920_s14, %s6920_s14 }
  0x2e   : > { %p6923_p0 = pnand %p6921_p13, %p7342_p8  ;;  %p6930_p7 = por %p6929_p4, %p6928_p5 }
  0x30   : > { %p6924_p2 = pneg %p6923_p0 }
  0x32   : > { %p6931_p9 = pnand %p6930_p7, %p6924_p2 }
  0x34   : > { %6934 = shalt.err (!%p6931_p9)
}
  0x35   : > { %s7194_s26 = smov 64   ;;  %s7195_s11 = smov 4  }
  0x36   : > { %6490 = dma.hbm_to_vmem [thread:$0]  (!%p7326_p6), %s8067_s2, 4608, %s7315_s18, [#allocation11], %s7194_s26, %s7194_s26, %s7195_s11  }
  0x37   : > { %s8069_s4 = sld [smem:[#allocation28_spill]] }
  0x3d   : > { %s6935_s14 = scalar_lea.hbm %s8069_s4, 9216 }
  0x3e   : > { %p6936_p4 = scmp.ne.s32.totalorder %s8069_s4, %s6935_s14  ;;  %p6942_p12 = scmp.lt.u32.totalorder %s6935_s14, %s8069_s4 }
  0x40   : > { %p6938_p10 = pnand %p6936_p4, %p7342_p8 }
  0x42   : > { %p6939_p11 = pneg %p6938_p10 }
  0x44   : > { %p6944_p13 = pnand %p6942_p12, %p6939_p11 }
  0x46   : > { %6947 = shalt.err (!%p6944_p13)
}
  0x47   : > { %s6948_s18 = scalar_lea.vmem %s7330_s22, 9216  ;;  %p6956_p7 = scmp.lt.s32.totalorder %s7330_s22, %s7330_s22 }
  0x48   : > { %p6949_p0 = scmp.ne.s32.totalorder %s7330_s22, %s6948_s18  ;;  %p6957_p9 = scmp.lt.s32.totalorder %s6948_s18, %s6948_s18 }
  0x4a   : > { %p6951_p2 = pnand %p6949_p0, %p7342_p8  ;;  %p6958_p4 = por %p6957_p9, %p6956_p7 }
  0x4c   : > { %p6952_p5 = pneg %p6951_p2 }
  0x4e   : > { %p6959_p10 = pnand %p6958_p4, %p6952_p5 }
  0x50   : > { %6962 = shalt.err (!%p6959_p10)
}
  0x51   : > { %6493 = dma.hbm_to_vmem [thread:$0]  (!%p7326_p6), %s8069_s4, 9216, %s7330_s22, [#allocation14], %s7194_s26, %s7194_s26, %s7195_s11  }
  0x52   : > { %s8070_s8 = sld [smem:[#allocation31_spill]] }
  0x58   : > { %s6963_s27 = scalar_lea.hbm %s8070_s8, 9216 }
  0x59   : > { %p6964_p11 = scmp.ne.s32.totalorder %s8070_s8, %s6963_s27  ;;  %p6970_p0 = scmp.lt.u32.totalorder %s6963_s27, %s8070_s8 }
  0x5b   : > { %p6966_p12 = pnand %p6964_p11, %p7342_p8 }
  0x5d   : > { %p6967_p13 = pneg %p6966_p12 }
  0x5f   : > { %p6972_p2 = pnand %p6970_p0, %p6967_p13 }
  0x61   : > { %6975 = shalt.err (!%p6972_p2)
}
  0x62   : > { %s6976_s22 = scalar_lea.vmem %s7332_s25, 9216  ;;  %p6984_p4 = scmp.lt.s32.totalorder %s7332_s25, %s7332_s25 }
  0x63   : > { %p6977_p5 = scmp.ne.s32.totalorder %s7332_s25, %s6976_s22  ;;  %p6985_p10 = scmp.lt.s32.totalorder %s6976_s22, %s6976_s22 }
  0x65   : > { %p6979_p7 = pnand %p6977_p5, %p7342_p8  ;;  %p6986_p11 = por %p6985_p10, %p6984_p4 }
  0x67   : > { %p6980_p9 = pneg %p6979_p7 }
  0x69   : > { %p6987_p12 = pnand %p6986_p11, %p6980_p9 }
  0x6b   : > { %6990 = shalt.err (!%p6987_p12)
}
  0x6c   : > { %6499 = dma.hbm_to_vmem [thread:$0]  (!%p7326_p6), %s8070_s8, 9216, %s7332_s25, [#allocation17], %s7194_s26, %s7194_s26, %s7195_s11  }
  0x6d   : > { %s7196_s9 = smov [#allocation15]   ;;  %s7197_s13 = smov [#allocation18]  }
  0x6e   : > { %s414_s12 = sshll.u32 %s7196_s9, 4  ;;  %s446_s27 = sshll.u32 %s7197_s13, 4  ;;  %s415_s12 = int_to_ptr.vmem [resolvable:$true] %s414_s12  ;;  %s447_s27 = int_to_ptr.vmem [resolvable:$true] %s446_s27 }
  0x6f   : > { %s8071_s6 = sld [smem:[#allocation29_spill]] }
  0x75   : > { %s6991_s24 = scalar_lea.hbm %s8071_s6, 9216 }
  0x76   : > { %p6992_p13 = scmp.ne.s32.totalorder %s8071_s6, %s6991_s24  ;;  %p6998_p5 = scmp.lt.u32.totalorder %s6991_s24, %s8071_s6 }
  0x78   : > { %p6994_p0 = pnand %p6992_p13, %p7342_p8 }
  0x7a   : > { %p6995_p2 = pneg %p6994_p0 }
  0x7c   : > { %p7000_p7 = pnand %p6998_p5, %p6995_p2 }
  0x7e   : > { %7003 = shalt.err (!%p7000_p7)
}
  0x7f   : > { %s7004_s25 = scalar_lea.vmem %s415_s12, 9216  ;;  %p7012_p11 = scmp.lt.s32.totalorder %s415_s12, %s415_s12 }
  0x80   : > { %p7005_p9 = scmp.ne.s32.totalorder %s415_s12, %s7004_s25  ;;  %p7013_p12 = scmp.lt.s32.totalorder %s7004_s25, %s7004_s25 }
  0x82   : > { %p7007_p4 = pnand %p7005_p9, %p7342_p8  ;;  %p7014_p1 = por %p7013_p12, %p7012_p11 }
  0x84   : > { %p7008_p10 = pneg %p7007_p4 }
  0x86   : > { %p7015_p3 = pnand %p7014_p1, %p7008_p10 }
  0x88   : > { %7018 = shalt.err (!%p7015_p3)
}
  0x89   : > { %6496 = dma.hbm_to_vmem [thread:$0]  (!%p7326_p6), %s8071_s6, 9216, %s415_s12, [#allocation14], %s7194_s26, %s7194_s26, %s7195_s11  }
  0x8a   : > { %s8072_s10 = sld [smem:[#allocation33_spill]] }
  0x90   : > { %s7019_s28 = scalar_lea.hbm %s8072_s10, 9216 }
  0x91   : > { %p7020_p1 = scmp.ne.s32.totalorder %s8072_s10, %s7019_s28  ;;  %p7026_p0 = scmp.lt.u32.totalorder %s7019_s28, %s8072_s10 }
  0x93   : > { %p7022_p3 = pnand %p7020_p1, %p7342_p8 }
  0x95   : > { %p7023_p13 = pneg %p7022_p3 }
  0x97   : > { %p7028_p2 = pnand %p7026_p0, %p7023_p13 }
  0x99   : > { %7031 = shalt.err (!%p7028_p2)
}
  0x9a   : > { %s7032_s18 = scalar_lea.vmem %s447_s27, 9216  ;;  %p7040_p4 = scmp.lt.s32.totalorder %s447_s27, %s447_s27 }
  0x9b   : > { %p7033_p5 = scmp.ne.s32.totalorder %s447_s27, %s7032_s18  ;;  %p7041_p10 = scmp.lt.s32.totalorder %s7032_s18, %s7032_s18 }
  0x9d   : > { %p7035_p7 = pnand %p7033_p5, %p7342_p8  ;;  %p7042_p11 = por %p7041_p10, %p7040_p4 }
  0x9f   : > { %p7036_p9 = pneg %p7035_p7 }
  0xa1   : > { %p7043_p12 = pnand %p7042_p11, %p7036_p9 }
  0xa3   : > { %7046 = shalt.err (!%p7043_p12)
}
  0xa4   : > { %6502 = dma.hbm_to_vmem [thread:$0]  (!%p7326_p6), %s8072_s10, 9216, %s447_s27, [#allocation17], %s7194_s26, %s7194_s26, %s7195_s11  }
  0xa5   : > { %s5533_s23 = sadd.s32 4294967294, %s7189_s16   ;;  %s7462_s21 = sadd.s32 1, %s7189_s16  }
  0xa6   : > { %s42_s2 = sadd.s32 1, %s7185_s15  ;;  %s39_s7 = ssub.s32 %s7189_s16, %s7462_s21 }
  0xa7   : > { %p49_p8 = scmp.ne.s32.totalorder %s7185_s15, %s7181_s30  ;;  %p40_p1 = scmp.eq.s32.totalorder %s39_s7, 0 }
  0xa8   : > { %p50_p3 = scmp.eq.s32.totalorder %s7189_s16, 0  ;;  %p55_p13 = scmp.ne.s32.totalorder %s7181_s30, %s7177_s29 }
  0xa9   : > { %p357_p0 = scmp.eq.s32.totalorder %s7310_s19, 1  ;;  %p8073_p5 = scmp.eq.s32.totalorder %s7310_s19, 0 }
  0xaa   : > { %s7474_s9 = scalar_select %p40_p1, %s7185_s15, %s42_s2  }
  0xab   : > { %p51_p2 = por %p50_p3, %p49_p8  ;;  %p7478_p7 = por %p8073_p5, %p55_p13 }
  0xac   : > { %p7482_p6 = por %p357_p0, %p49_p8  ;;  %p363_p9 = scmp.eq.s32.totalorder %s5533_s23, 1 }
  0xad   : > { %s8074_s13 = scalar_select %p7478_p7, 1, 0 }
  0xae   : > { %s8075_s26 = scalar_select %p7482_p6, 1, 0 }
  0xaf   : > { %p6519_p4 = scmp.lt.s32.totalorder %s7189_s16, 2  ;;  %s7488_s11 = sand.u32 1, %s7185_s15  }
  0xb0   : > { %p7490_p10 = por %p363_p9, %p55_p13  ;;  %s5541_s28 = sshll.u32 %s7488_s11, 4 }
  0xb1   : > { %s5897_s17 = sshll.u32 %s7189_s16, 8  ;;  %s8077_s0 = sld [smem:[#allocation26_spill]] }
  0xb2   : > { %s8076_s27 = scalar_select %p7490_p10, 1, 0 }
  0xb3   : > { %s473_s18 = scalar_lea.vmem [#allocation7], %s5541_s28  ;;  %p7501_p11 = pnand %p6519_p4, %p51_p2 }
  0xb4   : > { %s480_s12 = sshll.u32 %s473_s18, 4  ;;  %s470_s23 = scalar_lea.sflag [#allocation8], %s7488_s11  ;;  %s7505_s12 = int_to_ptr.vmem [resolvable:$true] %s480_s12 }
  0xb5   : > { %p7049_p8 = pneg %p7501_p11 }
  0xb7   : > { %s7499_s22 = scalar_lea.hbm %s8077_s0, %s5897_s17  ;;  %s7052_s17 = scalar_lea.hbm %s8077_s0, 512 }
  0xb8   : > { %s7047_s2 = scalar_lea.hbm %s7499_s22, 256  ;;  %p7053_p13 = scmp.lt.u32.totalorder %s7499_s22, %s8077_s0 }
  0xb9   : > { %p7048_p12 = scmp.ne.s32.totalorder %s7499_s22, %s7047_s2  ;;  %p7054_p0 = scmp.lt.u32.totalorder %s7052_s17, %s7047_s2 }
  0xba   : > { %p7056_p5 = scmp.lt.u32.totalorder %s7047_s2, %s7499_s22 }
  0xbb   : > { %p7050_p1 = pnand %p7049_p8, %p7048_p12  ;;  %p7055_p2 = por %p7054_p0, %p7053_p13 }
  0xbd   : > { %p7051_p3 = pneg %p7050_p1  ;;  %p7057_p9 = por %p7056_p5, %p7055_p2 }
  0xbf   : > { %p7058_p4 = pnand %p7057_p9, %p7051_p3 }
  0xc1   : > { %7061 = shalt.err (!%p7058_p4)
}
  0xc2   : > { %s7062_s18 = scalar_lea.vmem %s7505_s12, 256  ;;  %s7198_s7 = smov [#allocation7]  }
  0xc3   : > { %p7063_p12 = scmp.ne.s32.totalorder %s7505_s12, %s7062_s18  ;;  %s7067_s28 = sshll.u32 %s7198_s7, 4  ;;  %s7068_s28 = int_to_ptr.vmem [resolvable:$false] %s7067_s28 }
  0xc4   : > { %s7069_s24 = scalar_lea.vmem %s7068_s28, 512  ;;  %p7070_p6 = scmp.lt.s32.totalorder %s7505_s12, %s7068_s28 }
  0xc5   : > { %p7065_p1 = pnand %p7063_p12, %p7049_p8  ;;  %p7071_p13 = scmp.lt.s32.totalorder %s7069_s24, %s7062_s18 }
  0xc7   : > { %p7066_p10 = pneg %p7065_p1  ;;  %p7072_p0 = por %p7071_p13, %p7070_p6 }
  0xc9   : > { %p7073_p2 = pnand %p7072_p0, %p7066_p10 }
  0xcb   : > { %7076 = shalt.err (!%p7073_p2)
}
  0xcc   : > { %s7199_s2 = smov 128   ;;  %s7200_s17 = smov 8  }
  0xcd   : > { %6506 = dma.hbm_to_vmem [thread:$0]  (!%p7501_p11), %s7499_s22, 256, %s7505_s12, %s470_s23, %s7199_s2, %s7199_s2, %s7200_s17  }
  0xce   : > { %s490_s14 = sand.u32 1, %s7189_s16   ;;  %s5544_s7 = sshll.u32 %s7488_s11, 3 }
  0xcf   : > { %s5545_s28 = sshll.u32 %s7189_s16, 7  ;;  %s494_s18 = scalar_lea.vmem [#allocation10], %s5544_s7 }
  0xd0   : > { %s501_s24 = sshll.u32 %s494_s18, 4  ;;  %s7541_s6 = scalar_lea.hbm %s8033_s1, %s5545_s28  ;;  %s502_s24 = int_to_ptr.vmem [resolvable:$true] %s501_s24 }
  0xd1   : > { %s491_s8 = scalar_lea.sflag [#allocation11], %s490_s14  ;;  %s7077_s10 = scalar_lea.hbm %s7541_s6, 128 }
  0xd2   : > { %p7078_p6 = scmp.ne.s32.totalorder %s7541_s6, %s7077_s10  ;;  %s7082_s12 = scalar_lea.hbm %s8033_s1, 256 }
  0xd3   : > { %p7083_p5 = scmp.lt.u32.totalorder %s7541_s6, %s8033_s1  ;;  %p7084_p9 = scmp.lt.u32.totalorder %s7082_s12, %s7077_s10 }
  0xd4   : > { %p7080_p10 = pnand %p7078_p6, %p7049_p8  ;;  %p7086_p12 = scmp.lt.u32.totalorder %s7077_s10, %s7541_s6 }
  0xd5   : > { %p7085_p4 = por %p7084_p9, %p7083_p5 }
  0xd6   : > { %p7081_p3 = pneg %p7080_p10 }
  0xd7   : > { %p7087_p1 = por %p7086_p12, %p7085_p4 }
  0xd9   : > { %p7088_p13 = pnand %p7087_p1, %p7081_p3 }
  0xdb   : > { %7091 = shalt.err (!%p7088_p13)
}
  0xdc   : > { %s7092_s4 = scalar_lea.vmem %s502_s24, 128  ;;  %s7201_s2 = smov [#allocation10]  }
  0xdd   : > { %p7093_p0 = scmp.ne.s32.totalorder %s502_s24, %s7092_s4  ;;  %s7097_s17 = sshll.u32 %s7201_s2, 4  ;;  %s7098_s17 = int_to_ptr.vmem [resolvable:$false] %s7097_s17 }
  0xde   : > { %s7099_s14 = scalar_lea.vmem %s7098_s17, 256  ;;  %p7100_p10 = scmp.lt.s32.totalorder %s502_s24, %s7098_s17 }
  0xdf   : > { %p7095_p2 = pnand %p7093_p0, %p7049_p8  ;;  %p7101_p7 = scmp.lt.s32.totalorder %s7099_s14, %s7092_s4 }
  0xe1   : > { %p7096_p6 = pneg %p7095_p2  ;;  %p7102_p5 = por %p7101_p7, %p7100_p10 }
  0xe3   : > { %p7103_p9 = pnand %p7102_p5, %p7096_p6 }
  0xe5   : > { %7106 = shalt.err (!%p7103_p9)
}
  0xe6   : > { %6509 = dma.hbm_to_vmem [thread:$0]  (!%p7501_p11), %s7541_s6, 128, %s502_s24, %s491_s8  }
  0xe7   : > { %p8079_p3 = scmp.ne.s32.totalorder %s8065_s20, 0 }
  0xe8   : > { %s7565_s10 = sand.u32 (!%p8079_p3), 1, %s7181_s30   ;;  %p8080_p7 = scmp.ne.s32.totalorder (!%p8079_p3), %s8074_s13, 0 }
  0xe9   : > { %510 = sbr.rel (%p8079_p3) target bundleno = 3064 (0xbf8), region = 76  ;;  %s5547_s7 = sshll.u32 (!%p8079_p3), %s7565_s10, 4 }
  0xea   : > { %s513_s28 = scalar_lea.sflag (!%p8079_p3), [#allocation8], %s7565_s10  ;;  %s7571_s18 = scalar_lea.vmem (!%p8079_p3), [#allocation7], %s5547_s7 }
  0xf0   : > { %7152 = dma.done.wait (%p8080_p7), %s513_s28, 256  }
  0xf1   : > { %7154 = vsyncadd (%p8080_p7), %s513_s28, 4294967040  ;;  %s521_s6 = sand.u32 1, %s7310_s19   ;;  %s5548_s8 = sshll.u32 %s7565_s10, 3 }
  0xf2   : > { %s522_s20 = scalar_lea.sflag [#allocation11], %s521_s6  ;;  %s7579_s25 = scalar_lea.vmem [#allocation10], %s5548_s8 }
  0xf3   : > { %7156 = dma.done.wait (%p8080_p7), %s522_s20, 128  }
  0xf4   : > { %7158 = vsyncadd (%p8080_p7), %s522_s20, 4294967168  ;;  %p8081_p11 = scmp.eq.s32.totalorder %s7310_s19, 0 }
  0xf6   : > { %7160 = dma.done.wait (%p8081_p11), [#allocation11], 4608   ;;  %p8082_p8 = pmov %p8081_p11 }
  0xf8   : > { %7162 = vsyncadd (%p8082_p8), [#allocation11], 4294962688  ;;  %p8083_p4 = pmov %p8082_p8 }
  0xfa   : > { %7164 = dma.done.wait (%p8083_p4), [#allocation14], 18432   ;;  %p8084_p12 = pmov %p8083_p4 }
  0xfb   : > { %p8085_p1 = pmov %p8083_p4 }
  0xfc   : > { %7166 = vsyncadd (%p8084_p12), [#allocation14], 4294948864 }
  0xfd   : > { %7168 = dma.done.wait (%p8085_p1), [#allocation17], 18432   ;;  %p8086_p13 = pmov %p8085_p1 }
  0xfe   : > { %vm596_vm0 = vcmask 581632   ;;  %vm599_vm1 = vcmask 31744   ;;  %vm604_vm2 = vcmask 589344   ;;  %v7202_v0 = vmov 0.0   ;;  %v639_v1 = vld [vmem:[%s7571_s18] sm:$0xff]  ;;  %s7203_s13 = smov 4  }
  0xff   : > { %7170 = vsyncadd (%p8086_p13), [#allocation17], 4294948864  ;;  %597 = vst.msk [vmem:[#allocation2] sm:$0x1] %vm596_vm0, %v7202_v0  ;;  %vm602_vm3 = vcmask 25600   ;;  %vm607_vm4 = vcmask 583200   ;;  %643 = vrot.lane.b32.xlu0 %v639_v1, %s7203_s13  ;;  %v609_v62 = vlaneseq }
 0x100   : > { %601 = vst.msk [vmem:[#allocation2 + $0x8] sm:$0xff] %vm599_vm1, %v7202_v0  ;;  %600 = vst.msk [vmem:[#allocation2] sm:$0xff] %vm599_vm1, %v7202_v0  ;;  %v640_v2 = vld [vmem:[%s7571_s18 + $0x8] sm:$0xff]  ;;  %v6578_v3 = vld [vmem:[#allocation12 + $0xc0] sm:$0xff]   ;;  %vm649_vm5 = vcmask 556064   ;;  %vm655_vm6 = vcmask 523264  }
 0x101   : > { %598 = vst.msk [vmem:[#allocation2 + $0x11] sm:$0x1] %vm596_vm0, %v7202_v0  ;;  %v6579_v4 = vld [vmem:[#allocation12 + $0x80] sm:$0xff]   ;;  %v6580_v5 = vld [vmem:[#allocation12 + $0xc8] sm:$0xff]   ;;  %5921 = vmatprep.subr.bf16.mxu1 %v6578_v3  ;;  %v6583_v10 = vld [vmem:[#allocation12 + $0xd0] sm:$0xff]   ;;  %s7204_s24 = smov 56  }
 0x102   : > { %606 = vst.msk [vmem:[#allocation2 + $0x8] sm:$0xff] %vm604_vm2, %v7202_v0  ;;  %605 = vst.msk [vmem:[#allocation2] sm:$0xff] %vm604_vm2, %v7202_v0  ;;  %v6582_v6 = vld [vmem:[#allocation12 + $0x40] sm:$0xff]   ;;  %v6586_v8 = vld [vmem:[#allocation12 + $0x48] sm:$0xff]   ;;  %5922 = vmatpush3.bf16.msra.mxu1 %v6579_v4  ;;  %s7205_s11 = smov 124   ;;  %s7206_s22 = smov 60  }
 0x103   : > { %603 = vst.msk [vmem:[#allocation2 + $0x10] sm:$0x3] %vm602_vm3, %v7202_v0  ;;  %645 = vrot.lane.b32.xlu0 %v640_v2, %s7203_s13  ;;  %v6584_v7 = vld [vmem:[#allocation12] sm:$0xff]   ;;  %v6581_v9 = vld [vmem:[#allocation12 + $0x88] sm:$0xff]   ;;  %5899 = vmatprep.subr.bf16.mxu0 %v6582_v6  ;;  %v6585_v12 = vld [vmem:[#allocation12 + $0x90] sm:$0xff]   ;;  %s7207_s12 = smov 64  }
 0x104   : > { %608 = vst.msk [vmem:[#allocation2 + $0x10] sm:$0x3] %vm607_vm4, %v7202_v0  ;;  %5923 = vmatprep.subr.bf16.mxu1 %v6580_v5  ;;  %5900 = vmatpush3.bf16.msra.mxu0 %v6584_v7  ;;  %v6588_v11 = vld [vmem:[#allocation12 + $0x8] sm:$0xff]   ;;  %v6590_v13 = vld [vmem:[#allocation12 + $0x50] sm:$0xff]   ;;  %v6587_v14 = vld [vmem:[#allocation12 + $0xd8] sm:$0xff]   ;;  %s7208_s23 = smov 120  }
 0x105   : > { %5901 = vmatprep.subr.bf16.mxu0 %v6586_v8  ;;  %v6592_v15 = vld [vmem:[#allocation12 + $0x10] sm:$0xff]   ;;  %v6589_v16 = vld [vmem:[#allocation12 + $0x98] sm:$0xff]   ;;  %v6591_v17 = vld [vmem:[#allocation12 + $0xe0] sm:$0xff]   ;;  %vm664_vm7 = vcmask 1048064   ;;  %vm7209_vm8 = vmmov 0   ;;  %vm618_vm9 = vcmask 64512  }
 0x106   : > { %5924 = vmatpush3.bf16.msra.mxu1 %v6581_v9  ;;  %v6593_v18 = vld [vmem:[#allocation12 + $0xa0] sm:$0xff]   ;;  %v6594_v20 = vld [vmem:[#allocation12 + $0x58] sm:$0xff]   ;;  %v6595_v21 = vld [vmem:[#allocation12 + $0xe8] sm:$0xff]   ;;  %vm623_vm10 = vcmask 130112   ;;  %620 = vst.msk [vmem:[#allocation3 + $0x10] sm:$0xff] %vm618_vm9, %v7202_v0  ;;  %vm611_vm11 = vcmp.lt.s32.totalorder %v609_v62, 144 }
 0x107   : > { %5925 = vmatprep.subr.bf16.mxu1 %v6583_v10  ;;  %v6596_v22 = vld [vmem:[#allocation12 + $0x18] sm:$0xff]   ;;  %v6597_v23 = vld [vmem:[#allocation12 + $0xa8] sm:$0xff]   ;;  %v6598_v25 = vld [vmem:[#allocation12 + $0x60] sm:$0xff]   ;;  %625 = vst.msk [vmem:[#allocation3 + $0x18] sm:$0xff] %vm623_vm10, %v7202_v0  ;;  %vm621_vm12 = vcmask 58368   ;;  %vm626_vm13 = vcmask 123968  }
 0x108   : > { %5902 = vmatpush3.bf16.msra.mxu0 %v6588_v11  ;;  %v6599_v26 = vld [vmem:[#allocation12 + $0xf0] sm:$0xff]   ;;  %v6600_v27 = vld [vmem:[#allocation12 + $0x20] sm:$0xff]   ;;  %v6602_v29 = vld [vmem:[#allocation12 + $0x68] sm:$0xff]   ;;  %634 = vst.msk [vmem:[#allocation4 + $0x10] sm:$0xff] %vm618_vm9, %v7202_v0  ;;  %vm1148_vm14 = vcmask 1040384   ;;  %s7210_s2 = smov 8  }
 0x109   : > { %5903 = vmatprep.subr.bf16.mxu0 %v6590_v13  ;;  %v6601_v28 = vld [vmem:[#allocation12 + $0xb0] sm:$0xff]   ;;  %v6603_v30 = vld [vmem:[#allocation12 + $0xf8] sm:$0xff]   ;;  %v6604_v32 = vld [vmem:[#allocation12 + $0x28] sm:$0xff]   ;;  %637 = vst.msk [vmem:[#allocation4 + $0x18] sm:$0xff] %vm623_vm10, %v7202_v0  ;;  %vm1161_vm15 = vcmask 1047617   ;;  %vm1163_vm0 = vcmask 64513  }
 0x10a   : > { %5926 = vmatpush3.bf16.msra.mxu1 %v6585_v12  ;;  %v6605_v33 = vld [vmem:[#allocation12 + $0xb8] sm:$0xff]   ;;  %v6606_v41 = vld [vmem:[#allocation12 + $0x70] sm:$0xff]   ;;  %v6608_v52 = vld [vmem:[#allocation12 + $0x100] sm:$0xff]   ;;  %613 = vst.msk [vmem:[#allocation3] ss:$8 sm:$0x3] %vm611_vm11, %v7202_v0 }
 0x10b   : > { %5927 = vmatprep.subr.bf16.mxu1 %v6587_v14  ;;  %v6607_v43 = vld [vmem:[#allocation12 + $0x30] sm:$0xff]   ;;  %v6609_v44 = vld [vmem:[#allocation12 + $0x78] sm:$0xff]   ;;  %v6611_v56 = vld [vmem:[#allocation12 + $0x108] sm:$0xff]   ;;  %616 = vst.msk [vmem:[#allocation3 + $0x21] ss:$8 sm:$0x3] %vm611_vm11, %v7202_v0 }
 0x10c   : > { %5904 = vmatpush3.bf16.msra.mxu0 %v6592_v15  ;;  %v6610_v45 = vld [vmem:[#allocation12 + $0x38] sm:$0xff]   ;;  %v6612_v58 = vld [vmem:[#allocation12 + $0x110] sm:$0xff]   ;;  %628 = vst.msk [vmem:[#allocation4] ss:$8 sm:$0x3] %vm611_vm11, %v7202_v0  ;;  %vm1165_vm1 = vcmask 1047616  }
 0x10d   : > { %5905 = vmatprep.subr.bf16.mxu0 %v6594_v20  ;;  %v6613_v60 = vld [vmem:[#allocation12 + $0x118] sm:$0xff]   ;;  %631 = vst.msk [vmem:[#allocation4 + $0x21] ss:$8 sm:$0x3] %vm611_vm11, %v7202_v0  ;;  %v5555_v7 = vld [vmem:[%s8035_s3] ss:$0 sm:$0xff] }
 0x10e   : > { %5928 = vmatpush3.bf16.msra.mxu1 %v6589_v16  ;;  %619 = vst.msk [vmem:[#allocation3] sm:$0xff] %vm618_vm9, %v7202_v0  ;;  %633 = vst.msk [vmem:[#allocation4] sm:$0xff] %vm618_vm9, %v7202_v0  ;;  %vm1168_vm2 = vcmask 1040448   ;;  %vm1170_vm3 = vcmask 57344   ;;  %vm1213_vm4 = vsmask.f32 7424 }
 0x10f   : > { %5929 = vmatprep.subr.bf16.mxu1 %v6591_v17  ;;  %624 = vst.msk [vmem:[#allocation3 + $0x8] sm:$0xff] %vm623_vm10, %v7202_v0  ;;  %636 = vst.msk [vmem:[#allocation4 + $0x8] sm:$0xff] %vm623_vm10, %v7202_v0  ;;  %s7211_s17 = smov 112   ;;  %vm1204_vm10 = vcmask 916480   ;;  %vm3208_vm11 = vcmask 1043456   ;;  %s8087_s8 = sld [smem:[#allocation35_spill]] }
 0x110   : > { %5906 = vmatpush3.bf16.msra.mxu0 %v6596_v22  ;;  %622 = vst.msk [vmem:[#allocation3 + $0x20] sm:$0x3] %vm621_vm12, %v7202_v0  ;;  %635 = vst.msk [vmem:[#allocation4 + $0x20] sm:$0x3] %vm621_vm12, %v7202_v0  ;;  %s8088_s13 = sld [smem:[#allocation36_spill]]  ;;  %s8089_s18 = sld [smem:[#allocation30_spill]] }
 0x111   : > { %5907 = vmatprep.subr.bf16.mxu0 %v6598_v25  ;;  %627 = vst.msk [vmem:[#allocation3 + $0x28] sm:$0x3] %vm626_vm13, %v7202_v0  ;;  %638 = vst.msk [vmem:[#allocation4 + $0x28] sm:$0x3] %vm626_vm13, %v7202_v0  ;;  %s8090_s20 = sld [smem:[#allocation32_spill]]  ;;  %s5377_s14 = scalar_lea.sflag [#allocation9], %s7565_s10 }
 0x112   : > { %5930 = vmatpush3.bf16.msra.mxu1 %v6593_v18  ;;  %p8093_p2 = scmp.ne.s32.totalorder %s8075_s26, 0  ;;  %s7212_s28 = smov [#allocation19]  }
 0x113   : > { %5931 = vmatprep.subr.bf16.mxu1 %v6595_v21 }
 0x114   : > { %5908 = vmatpush3.bf16.msra.mxu0 %v6600_v27 }
 0x115   : > { %5909 = vmatprep.subr.bf16.mxu0 %v6602_v29  ;;  %v6615_v29 = vld [vmem:[#allocation13] sm:$0xff]  }
 0x116   : > { %5932 = vmatpush3.bf16.msra.mxu1 %v6597_v23 }
 0x117   : > { %5933 = vmatprep.subr.bf16.mxu1 %v6599_v26 }
 0x118   : > { %5910 = vmatpush3.bf16.msra.mxu0 %v6604_v32  ;;  %v6618_v32 = vld [vmem:[#allocation13 + $0x80] sm:$0xff]  }
 0x119   : > { %5911 = vmatprep.subr.bf16.mxu0 %v6606_v41  ;;  %v6628_v41 = vld [vmem:[#allocation13 + $0xd8] sm:$0xff]  }
 0x11a   : > { %5934 = vmatpush3.bf16.msra.mxu1 %v6601_v28  ;;  %v6614_v28 = vld [vmem:[#allocation13 + $0x40] sm:$0xff]  }
 0x11b   : > { %5935 = vmatprep.subr.bf16.mxu1 %v6603_v30  ;;  %v6616_v30 = vld [vmem:[#allocation13 + $0xc0] sm:$0xff]  }
 0x11c   : > { %5912 = vmatpush3.bf16.msra.mxu0 %v6607_v43  ;;  %v6630_v43 = vld [vmem:[#allocation13 + $0x98] sm:$0xff]  }
 0x11d   : > { %5913 = vmatprep.subr.bf16.mxu0 %v6609_v44  ;;  %v6629_v44 = vld [vmem:[#allocation13 + $0x60] sm:$0xff]  }
 0x11e   : > { %5936 = vmatpush3.bf16.msra.mxu1 %v6605_v33  ;;  %v6620_v33 = vld [vmem:[#allocation13 + $0xc8] sm:$0xff]  }
 0x11f   : > { %6343 = vmatprep.subr.bf16.mxu1 %v7202_v0 }
 0x120   : > { %5914 = vmatpush3.bf16.msra.mxu0 %v6610_v45  ;;  %v6632_v45 = vld [vmem:[#allocation13 + $0xe0] sm:$0xff]  }
 0x121   : > { %5970 = vmatprep.subr.bf16.mxu0 %v6616_v30 }
 0x171   : > { %v644_v19 = vpop.permute.xlu0 %643 }
 0x172   : > { %650 = vst.msk [vmem:[#allocation2 + $0x1] sm:$0xff] %vm649_vm5, %v644_v19 }
 0x175   : > { %v646_v24 = vpop.permute.xlu0 %645 }
 0x176   : > { %651 = vst.msk [vmem:[#allocation2 + $0x9] sm:$0xff] %vm649_vm5, %v646_v24  ;;  %vm1317_vm5 = vcmask 1046528  }
 0x179   : > { %v690_v31 = vld [vmem:[#allocation2 + $0x1] sm:$0xff] }
 0x17a   : > { %v666_v34 = vld [vmem:[#allocation2] sm:$0xff] }
 0x17d   : > { %v691_v35 = vld [vmem:[#allocation2 + $0x9] sm:$0xff] }
 0x17e   : > { %v702_v36 = vld [vmem:[#allocation2 + $0x2] sm:$0xff]  ;;  %v703_v37 = vld [vmem:[#allocation2 + $0xa] sm:$0xff]  ;;  %v692_v38 = vpack.c.bf16 %v691_v35, %v690_v31  ;;  %v6617_v31 = vld [vmem:[#allocation13 + $0x48] sm:$0xff]  }
 0x17f   : > { %v704_v39 = vpack.c.bf16 %v703_v37, %v702_v36  ;;  %v667_v40 = vld [vmem:[#allocation2 + $0x8] sm:$0xff]  ;;  %v6622_v35 = vld [vmem:[#allocation13 + $0x88] sm:$0xff]   ;;  %v6621_v36 = vld [vmem:[#allocation13 + $0x50] sm:$0xff]  }
 0x180   : > { %v668_v42 = vpack.c.bf16 %v667_v40, %v666_v34  ;;  %694 = vrot.lane.b32.xlu0 %v692_v38, %s7204_s24  ;;  %686 = vrot.lane.b32.xlu1 %v692_v38, %s7205_s11  ;;  %v6619_v34 = vld [vmem:[#allocation13 + $0x8] sm:$0xff]   ;;  %v6624_v37 = vld [vmem:[#allocation13 + $0xd0] sm:$0xff]   ;;  %v6625_v40 = vld [vmem:[#allocation13 + $0x58] sm:$0xff]   ;;  %s594_s24 = scalar_lea.vmem [#allocation19], %s5547_s7  ;;  %s8092_s7 = sld [smem:[#allocation37_spill]] }
 0x181   : > { %701 = vst.msk [vmem:[#allocation5 + $0x18] sm:$0xff] %vm655_vm6, %v704_v39  ;;  %s5390_s11 = sshll.u32 %s594_s24, 4  ;;  %s7981_s11 = int_to_ptr.vmem [resolvable:$true] %s5390_s11 }
 0x182   : > { %656 = vst.msk [vmem:[#allocation5] sm:$0xff] %vm655_vm6, %v668_v42 }
 0x184   : > { %706 = vrot.lane.b32.xlu1 %v704_v39, %s7206_s22  ;;  %678 = vrot.lane.b32.xlu0 %v692_v38, %s7207_s12  ;;  %v6623_v38 = vld [vmem:[#allocation13 + $0x10] sm:$0xff]  }
 0x188   : > { %714 = vrot.lane.b32.xlu0 %v704_v39, %s7208_s23  ;;  %670 = vrot.lane.b32.xlu1 %v668_v42, %s7208_s23  ;;  %v6626_v39 = vld [vmem:[#allocation13 + $0x90] sm:$0xff]  }
 0x18c   : > { %661 = vrot.lane.b32.xlu1 %v668_v42, %s7206_s22  ;;  %v6627_v42 = vld [vmem:[#allocation13 + $0x18] sm:$0xff]   ;;  %s5898_s22 = sshll.u32 %s7310_s19, 8  ;;  %s7107_s19 = scalar_lea.vmem %s7981_s11, 256 }
 0x18d   : > { %s7987_s4 = scalar_lea.hbm %s8092_s7, %s5898_s22  ;;  %p7108_p0 = scmp.ne.s32.totalorder %s7981_s11, %s7107_s19 }
 0x18f   : > { %p7109_p6 = pnand %p7108_p0, %p8093_p2 }
 0x191   : > { %p7110_p10 = pneg %p7109_p6 }
 0x1f2   : > { %v695_v46 = vpop.permute.xlu0 %694  ;;  %v687_v47 = vpop.permute.xlu1 %686 }
 0x1f3   : > { %689 = vst.msk [vmem:[#allocation5 + $0x10] sm:$0xff] %vm655_vm6, %v687_v47  ;;  %v6634_v47 = vld [vmem:[#allocation13 + $0xa0] sm:$0xff]  }
 0x1f4   : > { %697 = vst.msk [vmem:[#allocation5 + $0x10] sm:$0xff] %vm664_vm7, %v695_v46  ;;  %v6631_v46 = vld [vmem:[#allocation13 + $0x20] sm:$0xff]  }
 0x1f6   : > { %v707_v48 = vpop.permute.xlu1 %706  ;;  %v679_v49 = vpop.permute.xlu0 %678 }
 0x1f7   : > { %709 = vst.msk [vmem:[#allocation5 + $0x18] sm:$0xff] %vm664_vm7, %v707_v48  ;;  %v6633_v48 = vld [vmem:[#allocation13 + $0x68] sm:$0xff]  }
 0x1fa   : > { %v715_v50 = vpop.permute.xlu0 %714  ;;  %v671_v51 = vpop.permute.xlu1 %670 }
 0x1fb   : > { %717 = vst.msk [vmem:[#allocation5 + $0x20] sm:$0xff] %vm655_vm6, %v715_v50  ;;  %673 = vst.msk [vmem:[#allocation5 + $0x8] sm:$0xff] %vm655_vm6, %v671_v51  ;;  %v720_v55 = vld [vmem:[#allocation5 + $0x10] sm:$0xff]  ;;  %v6635_v50 = vld [vmem:[#allocation13 + $0x28] sm:$0xff]  }
 0x1fc   : > { %681 = vst.msk [vmem:[#allocation5 + $0x8] sm:$0xff] %vm664_vm7, %v679_v49  ;;  %v6636_v49 = vld [vmem:[#allocation13 + $0xe8] sm:$0xff]  }
 0x1fd   : > { %v6638_v51 = vld [vmem:[#allocation13 + $0xa8] sm:$0xff]  }
 0x1fe   : > { %v662_v53 = vpop.permute.xlu1 %661  ;;  %v721_v54 = vld [vmem:[#allocation5 + $0x18] sm:$0xff] }
 0x1ff   : > { %665 = vst.msk [vmem:[#allocation5] sm:$0xff] %vm664_vm7, %v662_v53  ;;  %1094 = vmatprep.mubr.bf16.mxu1 %v721_v54  ;;  %v6640_v53 = vld [vmem:[#allocation13 + $0xf0] sm:$0xff]   ;;  %vm1188_vm7 = vcmask 982016  }
 0x200   : > { %1095 = vmatmul.mubr.bf16.vlgmr.msra.gmra.mrb[0].mxu1 %v720_v55  ;;  %v6639_v54 = vld [vmem:[#allocation13 + $0x30] sm:$0xff]  }
 0x201   : > { %6344 = vmatpush3.bf16.msra.mxu1 %v6608_v52  ;;  %6351 = vmatprep.mubr.msk.bf16.mxu1 %vm7209_vm8, %v7202_v0  ;;  %v6637_v52 = vld [vmem:[#allocation13 + $0x70] sm:$0xff]  }
 0x202   : > { %6345 = vmatprep.subr.bf16.mxu1 %v7202_v0  ;;  %v722_v61 = vld [vmem:[#allocation5 + $0x20] sm:$0xff]  ;;  %v6642_v55 = vld [vmem:[#allocation13 + $0xb0] sm:$0xff]  }
 0x203   : > { %v719_v57 = vld [vmem:[#allocation5 + $0x8] sm:$0xff] }
 0x204   : > { %1053 = vmatprep.mubr.bf16.mxu0 %v719_v57  ;;  %v6643_v57 = vld [vmem:[#allocation13 + $0x38] sm:$0xff]  }
 0x205   : > { %6346 = vmatpush3.bf16.msra.mxu1 %v6611_v56  ;;  %v6641_v56 = vld [vmem:[#allocation13 + $0x78] sm:$0xff]  }
 0x206   : > { %v718_v59 = vld [vmem:[#allocation5] sm:$0xff]  ;;  %6347 = vmatprep.subr.bf16.mxu1 %v7202_v0 }
 0x207   : > { %1054 = vmatmul.mubr.bf16.vlgmr.msra.gmra.mrb[0].mxu0 %v718_v59  ;;  %v6644_v59 = vld [vmem:[#allocation13 + $0xf8] sm:$0xff]  }
 0x208   : > { %5971 = vmatpush3.bf16.msra.mxu0 %v6618_v32 }
 0x209   : > { %6348 = vmatpush3.bf16.msra.mxu1 %v6612_v58  ;;  %5972 = vmatprep.subr.bf16.mxu0 %v6620_v33 }
 0x20a   : > { %6349 = vmatprep.subr.bf16.mxu1 %v7202_v0 }
 0x20c   : > { %5973 = vmatpush3.bf16.msra.mxu0 %v6622_v35 }
 0x20d   : > { %6350 = vmatpush3.bf16.msra.mxu1 %v6613_v60  ;;  %5974 = vmatprep.subr.bf16.mxu0 %v6624_v37  ;;  %v6645_v60 = vld [vmem:[#allocation13 + $0xb8] sm:$0xff]  }
 0x20e   : > { %5948 = vmatprep.subr.bf16.mxu1 %v6614_v28 }
 0x210   : > { %6352 = vmatmul.mubr.msk.bf16.vlgmr.msra.gmra.mrb[4].mxu1 %vm655_vm6, %v722_v61  ;;  %5975 = vmatpush3.bf16.msra.mxu0 %v6626_v39  ;;  %v6646_v61 = vld [vmem:[#allocation13 + $0x140] sm:$0xff]  }
 0x211   : > { %5949 = vmatpush3.bf16.msra.mxu1 %v6615_v29  ;;  %5976 = vmatprep.subr.bf16.mxu0 %v6628_v41 }
 0x212   : > { %5950 = vmatprep.subr.bf16.mxu1 %v6617_v31 }
 0x214   : > { %5977 = vmatpush3.bf16.msra.mxu0 %v6630_v43 }
 0x215   : > { %5951 = vmatpush3.bf16.msra.mxu1 %v6619_v34  ;;  %5978 = vmatprep.subr.bf16.mxu0 %v6632_v45 }
 0x216   : > { %5952 = vmatprep.subr.bf16.mxu1 %v6621_v36 }
 0x218   : > { %5979 = vmatpush3.bf16.msra.mxu0 %v6634_v47 }
 0x219   : > { %5953 = vmatpush3.bf16.msra.mxu1 %v6623_v38  ;;  %5980 = vmatprep.subr.bf16.mxu0 %v6636_v49 }
 0x21a   : > { %5954 = vmatprep.subr.bf16.mxu1 %v6625_v40 }
 0x21c   : > { %5981 = vmatpush3.bf16.msra.mxu0 %v6638_v51 }
 0x21d   : > { %5955 = vmatpush3.bf16.msra.mxu1 %v6627_v42  ;;  %5982 = vmatprep.subr.bf16.mxu0 %v6640_v53 }
 0x21e   : > { %5956 = vmatprep.subr.bf16.mxu1 %v6629_v44 }
 0x220   : > { %5983 = vmatpush3.bf16.msra.mxu0 %v6642_v55 }
 0x221   : > { %5957 = vmatpush3.bf16.msra.mxu1 %v6631_v46  ;;  %5984 = vmatprep.subr.bf16.mxu0 %v6644_v59 }
 0x222   : > { %5958 = vmatprep.subr.bf16.mxu1 %v6633_v48 }
 0x224   : > { %5985 = vmatpush3.bf16.msra.mxu0 %v6645_v60 }
 0x225   : > { %5959 = vmatpush3.bf16.msra.mxu1 %v6635_v50 }
 0x226   : > { %5960 = vmatprep.subr.bf16.mxu1 %v6637_v52 }
 0x229   : > { %5961 = vmatpush3.bf16.msra.mxu1 %v6639_v54 }
 0x22a   : > { %5962 = vmatprep.subr.bf16.mxu1 %v6641_v56 }
 0x22d   : > { %5963 = vmatpush3.bf16.msra.mxu1 %v6643_v57 }
 0x22e   : > { %5992 = vmatprep.subr.bf16.mxu1 %v6646_v61 }
 0x2d3   : > { %v5937_v63 = vpop.f32.mrb[0].mxu1 }
 0x2d4   : > { %v5938_v1 = vpop.f32.mrb[1].mxu1 }
 0x2d5   : > { %v5939_v2 = vadd.f32 %v5938_v1, %v5937_v63  ;;  %v5940_v3 = vpop.f32.mrb[2].mxu1  ;;  %v6648_v1 = vld [vmem:[#allocation13 + $0x1c0] sm:$0xff]  }
 0x2d6   : > { %v5941_v4 = vpop.f32.mrb[3].mxu1  ;;  %6014 = vmatprep.subr.bf16.mxu0 %v6648_v1 }
 0x2d7   : > { %v5942_v5 = vadd.f32 %v5941_v4, %v5940_v3 }
 0x2da   : > { %v5915_v6 = vpop.f32.mrb[0].mxu0 }
 0x2db   : > { %v5916_v8 = vpop.f32.mrb[1].mxu0 }
 0x2dc   : > { %v5917_v9 = vadd.f32 %v5916_v8, %v5915_v6  ;;  %v5918_v10 = vpop.f32.mrb[2].mxu0 }
 0x2dd   : > { %v5919_v11 = vpop.f32.mrb[3].mxu0 }
 0x2de   : > { %v1056_v12 = vadd.f32 %v5917_v9, %v5555_v7  ;;  %v5920_v13 = vadd.f32 %v5919_v11, %v5918_v10 }
 0x2e0   : > { %v1059_v14 = vadd.f32 %v5920_v13, %v5555_v7  ;;  %v1097_v15 = vadd.f32 %v5939_v2, %v1056_v12 }
 0x2e2   : > { %v1100_v16 = vadd.f32 %v5942_v5, %v1059_v14 }
 0x2e3   : > { %v1137_v17 = vpop.f32.mrb[4].mxu1 }
 0x2e4   : > { %v7648_v18 = vadd.f32 %v1137_v17, %v1097_v15  ;;  %v6353_v19 = vpop.f32.mrb[5].mxu1 }
 0x2e5   : > { %v1140_v20 = vpop.f32.mrb[6].mxu1 }
 0x2e6   : > { %v1144_v21 = vmax.f32 %v7648_v18, 0.0  ;;  %v7651_v22 = vadd.f32 %v1140_v20, %v1100_v16  ;;  %v6354_v23 = vpop.f32.mrb[7].mxu1 }
 0x2e8   : > { %v1149_v24 = vrot.slane %v1144_v21, 7  ;;  %v1145_v25 = vmax.f32 %v7651_v22, 0.0 }
 0x2ea   : > { %v1150_v26 = vrot.slane %v1145_v25, 7  ;;  %1152 = vrot.lane.b32.xlu1 %v1149_v24, %s7210_s2 }
 0x2ec   : > { %v1151_v27 = vsel %vm1148_vm14, %v1149_v24, %v1150_v26 }
 0x2ed   : > { %1154 = vrot.lane.b32.xlu0 %v1151_v27, %s7210_s2 }
 0x2ee   : > { %1156 = vrot.lane.b32.xlu1 %v1150_v26, %s7210_s2 }
 0x35c   : > { %v1153_v58 = vpop.permute.xlu1 %1152 }
 0x35d   : > { %1162 = vst.msk [vmem:[#allocation3] sm:$0xfe] %vm1161_vm15, %v1153_v58 }
 0x35e   : > { %1164 = vst.msk [vmem:[#allocation3 + $0x8] sm:$0xfe] %vm1163_vm0, %v1153_v58 }
 0x35f   : > { %v1155_v62 = vpop.permute.xlu0 %1154 }
 0x360   : > { %1166 = vst.msk [vmem:[#allocation3 + $0x10] sm:$0xff] %vm1165_vm1, %v1155_v62  ;;  %v1157_v63 = vpop.permute.xlu1 %1156 }
 0x361   : > { %1167 = vst.msk [vmem:[#allocation3 + $0x18] sm:$0xff] %vm618_vm9, %v1155_v62 }
 0x362   : > { %1169 = vst.msk [vmem:[#allocation3 + $0x20] sm:$0x1] %vm1168_vm2, %v1157_v63 }
 0x363   : > { %1171 = vst.msk [vmem:[#allocation3 + $0x28] sm:$0x1] %vm1170_vm3, %v1157_v63 }
 0x364   : > { %v1176_v3 = vld [vmem:[#allocation3] sm:$0xff] }
 0x365   : > { %v1177_v2 = vld [vmem:[#allocation3 + $0x8] sm:$0xff]  ;;  %v1208_v4 = vld [vmem:[#allocation3] sm:$0xfe] }
 0x366   : > { %v1270_v5 = vld [vmem:[#allocation3 + $0x8] sm:$0xfe]  ;;  %v1269_v8 = vld [vmem:[#allocation3] sm:$0xfe] }
 0x367   : > { %v7666_v7 = vld [vmem:[#allocation3 + $0x10] sm:$0xff]  ;;  %v1229_v31 = vld [vmem:[#allocation3 + $0x8] sm:$0xfe]  ;;  %v1228_v44 = vld [vmem:[#allocation3] sm:$0xfe] }
 0x368   : > { %v7664_v6 = vld [vmem:[#allocation3 + $0x18] sm:$0xff]  ;;  %v7670_v10 = vpack.c.bf16 %v7666_v7, %v1176_v3  ;;  %v1211_v12 = vpack.c.bf16 %v7666_v7, %v1208_v4  ;;  %v1275_v19 = vpack.c.bf16 %v7666_v7, %v1269_v8  ;;  %v1234_v48 = vpack.c.bf16 %v7666_v7, %v1228_v44  ;;  %v1324_v49 = vld [vmem:[#allocation3 + $0x8] sm:$0xfc]  ;;  %v1323_v63 = vld [vmem:[#allocation3] sm:$0xfc] }
 0x369   : > { %v1181_v9 = vpack.c.bf16 %v7664_v6, %v1177_v2  ;;  %v1210_v11 = vld [vmem:[#allocation3 + $0x20] sm:$0x1]  ;;  %v1276_v14 = vpack.c.bf16 %v7664_v6, %v1270_v5  ;;  %v1235_v35 = vpack.c.bf16 %v7664_v6, %v1229_v31  ;;  %v1330_v54 = vpack.c.bf16 %v7664_v6, %v1324_v49  ;;  %v6655_v49 = vld [vmem:[#allocation13 + $0x110] sm:$0xff]  }
 0x36a   : > { %v1274_v13 = vld [vmem:[#allocation3 + $0x28] sm:$0x1]  ;;  %v1273_v15 = vld [vmem:[#allocation3 + $0x20] sm:$0x1]  ;;  %v1212_v16 = vpack.c.bf16 %v1210_v11, %v1210_v11  ;;  %1184 = vrot.lane.b32.xlu0 %v7670_v10, %s7208_s23  ;;  %v1215_v21 = vshrl.u32 %v1211_v12, 16  ;;  %v1217_v23 = vshll.u32 %v1211_v12, 16  ;;  %v1329_v4 = vpack.c.bf16 %v7666_v7, %v1323_v63 }
 0x36b   : > { %v1278_v17 = vpack.c.bf16 %v1274_v13, %v1274_v13  ;;  %v1277_v20 = vpack.c.bf16 %v1273_v15, %v1273_v15  ;;  %1186 = vrot.lane.b32.xlu1 %v1181_v9, %s7208_s23  ;;  %v1292_v24 = vshrl.u32 %v1276_v14, 16  ;;  %v1294_v25 = vshll.u32 %v1276_v14, 16  ;;  %v1233_v26 = vld [vmem:[#allocation3 + $0x28] sm:$0x1]  ;;  %v1232_v40 = vld [vmem:[#allocation3 + $0x20] sm:$0x1] }
 0x36c   : > { %v1222_v27 = vshll.u32 %v1212_v16, 16  ;;  %v1280_v29 = vshrl.u32 %v1275_v19, 16  ;;  %v1282_v30 = vshll.u32 %v1275_v19, 16  ;;  %v1219_v32 = vrot.slane %v1217_v23, 1  ;;  %v1328_v50 = vld [vmem:[#allocation3 + $0x28] sm:$0x3] }
 0x36d   : > { %v1299_v28 = vshll.u32 %v1278_v17, 16  ;;  %v1296_v33 = vrot.slane %v1294_v25, 1  ;;  %v1287_v34 = vshll.u32 %v1277_v20, 16  ;;  %v1237_v39 = vpack.c.bf16 %v1233_v26, %v1233_v26  ;;  %v1327_v59 = vld [vmem:[#allocation3 + $0x20] sm:$0x3] }
 0x36e   : > { %v1224_v36 = vrot.slane %v1222_v27, 1  ;;  %v1284_v38 = vrot.slane %v1282_v30, 1  ;;  %1200 = vrot.lane.b32.xlu0 %v7670_v10, %s7211_s17  ;;  %v1220_v41 = vor.u32 %v1219_v32, %v1215_v21  ;;  %v1253_v46 = vshll.u32 %v1235_v35, 16  ;;  %v1355_v1 = vld [vmem:[#allocation3 + $0x28] sm:$0x3] }
 0x36f   : > { %v1301_v37 = vrot.slane %v1299_v28, 1  ;;  %1202 = vrot.lane.b32.xlu1 %v1181_v9, %s7211_s17  ;;  %v1297_v42 = vor.u32 %v1296_v33, %v1292_v24  ;;  %v1289_v43 = vrot.slane %v1287_v34, 1  ;;  %v1258_v47 = vshll.u32 %v1237_v39, 16  ;;  %v1351_v12 = vld [vmem:[#allocation3 + $0x8] sm:$0xfc]  ;;  %v6650_v39 = vld [vmem:[#allocation13 + $0x180] sm:$0xff]  }
 0x370   : > { %v1285_v45 = vor.u32 %v1284_v38, %v1280_v29  ;;  %v1225_v51 = vsel %vm1213_vm4, %v1220_v41, %v1224_v36  ;;  %v1236_v53 = vpack.c.bf16 %v1232_v40, %v1232_v40  ;;  %v1251_v56 = vshrl.u32 %v1235_v35, 16  ;;  %v1354_v17 = vld [vmem:[#allocation3 + $0x20] sm:$0x3]  ;;  %v1350_v21 = vld [vmem:[#allocation3] sm:$0xfc]  ;;  %v6647_v36 = vld [vmem:[#allocation13 + $0x100] sm:$0xff]  }
 0x371   : > { %v1302_v52 = vsel %vm1213_vm4, %v1297_v42, %v1301_v37  ;;  %2042 = vmatprep.mubr.bf16.mxu0 %v1225_v51  ;;  %v1255_v57 = vrot.slane %v1253_v46, 1  ;;  %v1260_v58 = vrot.slane %v1258_v47, 1  ;;  %v1241_v60 = vshll.u32 %v1234_v48, 16  ;;  %v6649_v38 = vld [vmem:[#allocation13 + $0x148] sm:$0xff]   ;;  %v6657_v51 = vld [vmem:[#allocation13 + $0x158] sm:$0xff]  }
 0x372   : > { %v1290_v55 = vsel %vm1213_vm4, %v1285_v45, %v1289_v43  ;;  %v1246_v61 = vshll.u32 %v1236_v53, 16  ;;  %v1332_v62 = vpack.c.bf16 %v1328_v50, %v1328_v50  ;;  %v1239_v3 = vshrl.u32 %v1234_v48, 16  ;;  %v6651_v42 = vld [vmem:[#allocation13 + $0x108] sm:$0xff]   ;;  %v6653_v45 = vld [vmem:[#allocation13 + $0x150] sm:$0xff]  }
 0x373   : > { %1305 = vrot.lane.b32.xlu1 %v1302_v52, %s7211_s17  ;;  %1303 = vrot.lane.b32.xlu0 %v1290_v55, %s7211_s17  ;;  %v1256_v2 = vor.u32 %v1255_v57, %v1251_v56  ;;  %v1243_v5 = vrot.slane %v1241_v60, 1  ;;  %v1340_v9 = vrot.slane %v1330_v54, 1  ;;  %v1331_v11 = vpack.c.bf16 %v1327_v59, %v1327_v59  ;;  %v6652_v43 = vld [vmem:[#allocation13 + $0x1c8] sm:$0xff]   ;;  %v6656_v50 = vld [vmem:[#allocation13 + $0x1d0] sm:$0xff]   ;;  %v6659_v54 = vld [vmem:[#allocation13 + $0x118] sm:$0xff]  }
 0x374   : > { %v1248_v8 = vrot.slane %v1246_v61, 1  ;;  %v1341_v14 = vrot.slane %v1332_v62, 1  ;;  %v1357_v15 = vpack.c.bf16 %v7664_v6, %v1351_v12  ;;  %v1359_v16 = vpack.c.bf16 %v1355_v1, %v1355_v1  ;;  %v6654_v46 = vld [vmem:[#allocation13 + $0x188] sm:$0xff]   ;;  %v6658_v52 = vld [vmem:[#allocation13 + $0x190] sm:$0xff]   ;;  %v6660_v55 = vld [vmem:[#allocation13 + $0x1d8] sm:$0xff]  }
 0x375   : > { %v1261_v13 = vsel %vm1213_vm4, %v1256_v2, %v1260_v58  ;;  %v1244_v19 = vor.u32 %v1243_v5, %v1239_v3  ;;  %v1337_v20 = vrot.slane %v1329_v4, 1  ;;  %v1338_v24 = vrot.slane %v1331_v11, 1  ;;  %v6661_v56 = vld [vmem:[#allocation13 + $0x160] sm:$0xff]   ;;  %v6662_v58 = vld [vmem:[#allocation13 + $0x198] sm:$0xff]   ;;  %v6665_v62 = vld [vmem:[#allocation13 + $0x168] sm:$0xff]  }
 0x376   : > { %v1356_v25 = vpack.c.bf16 %v7666_v7, %v1350_v21  ;;  %v1358_v26 = vpack.c.bf16 %v1354_v17, %v1354_v17  ;;  %v1342_v27 = vsel %vm1317_vm5, %v1340_v9, %v1341_v14  ;;  %v1367_v28 = vrot.slane %v1357_v15, 1  ;;  %v6663_v59 = vld [vmem:[#allocation13 + $0x120] sm:$0xff]   ;;  %v6667_v3 = vld [vmem:[#allocation13 + $0x128] sm:$0xff]   ;;  %v6669_v5 = vld [vmem:[#allocation13 + $0x170] sm:$0xff]  }
 0x377   : > { %1264 = vrot.lane.b32.xlu1 %v1261_v13, %s7208_s23  ;;  %v1249_v23 = vsel %vm1213_vm4, %v1244_v19, %v1248_v8  ;;  %v1368_v6 = vrot.slane %v1359_v16, 1  ;;  %v1339_v29 = vsel %vm1317_vm5, %v1337_v20, %v1338_v24  ;;  %v6664_v60 = vld [vmem:[#allocation13 + $0x1e0] sm:$0xff]   ;;  %v6668_v4 = vld [vmem:[#allocation13 + $0x1e8] sm:$0xff]   ;;  %v6671_v9 = vld [vmem:[#allocation13 + $0x130] sm:$0xff]  }
 0x378   : > { %1262 = vrot.lane.b32.xlu0 %v1249_v23, %s7208_s23  ;;  %v1364_v30 = vrot.slane %v1356_v25, 1  ;;  %v1365_v31 = vrot.slane %v1358_v26, 1  ;;  %v6666_v1 = vld [vmem:[#allocation13 + $0x1a0] sm:$0xff]   ;;  %v6670_v8 = vld [vmem:[#allocation13 + $0x1a8] sm:$0xff]   ;;  %v6672_v11 = vld [vmem:[#allocation13 + $0x1f0] sm:$0xff]  }
 0x379   : > { %v1369_v32 = vsel %vm1317_vm5, %v1367_v28, %v1368_v6  ;;  %v6673_v12 = vld [vmem:[#allocation13 + $0x178] sm:$0xff]   ;;  %v1312_v13 = vld [vmem:[#allocation3 + $0x20] sm:$0x3]  ;;  %v6674_v14 = vld [vmem:[#allocation13 + $0x1b0] sm:$0xff]  }
 0x37a   : > { %v1366_v33 = vsel %vm1317_vm5, %v1364_v30, %v1365_v31  ;;  %v6675_v15 = vld [vmem:[#allocation13 + $0x138] sm:$0xff]   ;;  %v1310_v17 = vld [vmem:[#allocation3] sm:$0xfc]  ;;  %v1314_v20 = vpack.c.bf16 %v1312_v13, %v1312_v13  ;;  %v6678_v23 = vld [vmem:[#allocation13 + $0x200] sm:$0xff]  }
 0x37b   : > { %1345 = vrot.lane.b32.xlu1 %v1342_v27, %s7208_s23  ;;  %v6676_v16 = vld [vmem:[#allocation13 + $0x1f8] sm:$0xff]   ;;  %v1313_v19 = vpack.c.bf16 %v7666_v7, %v1310_v17  ;;  %v6679_v27 = vld [vmem:[#allocation13 + $0x208] sm:$0xff]   ;;  %v6680_v28 = vld [vmem:[#allocation13 + $0x210] sm:$0xff]  }
 0x37c   : > { %1343 = vrot.lane.b32.xlu0 %v1339_v29, %s7208_s23  ;;  %v6677_v21 = vld [vmem:[#allocation13 + $0x1b8] sm:$0xff]   ;;  %v1319_v25 = vrot.slane %v1314_v20, 1  ;;  %v6682_v29 = vld [vmem:[#allocation13 + $0x220] sm:$0xff]   ;;  %v6683_v30 = vld [vmem:[#allocation13 + $0x228] sm:$0xff]  }
 0x37d   : > { %v1318_v24 = vrot.slane %v1313_v19, 1  ;;  %v6681_v6 = vld [vmem:[#allocation13 + $0x218] sm:$0xff]   ;;  %v6684_v31 = vld [vmem:[#allocation13 + $0x230] sm:$0xff]   ;;  %v6686_v20 = vld [vmem:[#allocation15 + $0xc0] sm:$0xff]  }
 0x37f   : > { %1372 = vrot.lane.b32.xlu1 %v1369_v32, %s7211_s17  ;;  %v1320_v7 = vsel %vm1317_vm5, %v1318_v24, %v1319_v25  ;;  %v6685_v32 = vld [vmem:[#allocation13 + $0x238] sm:$0xff]   ;;  %v6691_v24 = vld [vmem:[#allocation15 + $0x40] sm:$0xff]  }
 0x380   : > { %1370 = vrot.lane.b32.xlu0 %v1366_v33, %s7211_s17  ;;  %v6693_v25 = vld [vmem:[#allocation15] sm:$0xff]  }
 0x3dc   : > { %v1185_v35 = vpop.permute.xlu0 %1184 }
 0x3dd   : > { %v1187_v34 = vpop.permute.xlu1 %1186 }
 0x3de   : > { %v1189_v37 = vsel %vm1188_vm7, %v1185_v35, %v1187_v34 }
 0x3df   : > { %2001 = vmatprep.mubr.bf16.mxu1 %v1189_v37  ;;  %v5593_v37 = vld [vmem:[%s8037_s5] ss:$0 sm:$0xff] }
 0x3e0   : > { %2002 = vmatmul.mubr.bf16.vlgmr.msra.gmra.mrb[8].mxu1 %v7670_v10  ;;  %v1201_v41 = vpop.permute.xlu0 %1200 }
 0x3e1   : > { %5993 = vmatpush3.bf16.msra.mxu1 %v6647_v36  ;;  %v1203_v40 = vpop.permute.xlu1 %1202 }
 0x3e2   : > { %v1205_v44 = vsel %vm1204_vm10, %v1201_v41, %v1203_v40  ;;  %5994 = vmatprep.subr.bf16.mxu1 %v6649_v38 }
 0x3e3   : > { %2043 = vmatmul.mubr.bf16.vlgmr.msra.gmra.mrb[4].mxu0 %v1205_v44 }
 0x3e4   : > { %6015 = vmatpush3.bf16.msra.mxu0 %v6650_v39 }
 0x3e5   : > { %5995 = vmatpush3.bf16.msra.mxu1 %v6651_v42  ;;  %v1306_v47 = vpop.permute.xlu1 %1305  ;;  %v1304_v48 = vpop.permute.xlu0 %1303  ;;  %6016 = vmatprep.subr.bf16.mxu0 %v6652_v43 }
 0x3e6   : > { %5996 = vmatprep.subr.bf16.mxu1 %v6653_v45  ;;  %v1307_v10 = vsel %vm1204_vm10, %v1304_v48, %v1306_v47 }
 0x3e7   : > { %2083 = vmatprep.mubr.bf16.mxu1 %v1307_v10 }
 0x3e8   : > { %6017 = vmatpush3.bf16.msra.mxu0 %v6654_v46 }
 0x3e9   : > { %5997 = vmatpush3.bf16.msra.mxu1 %v6655_v49  ;;  %v1265_v53 = vpop.permute.xlu1 %1264  ;;  %6018 = vmatprep.subr.bf16.mxu0 %v6656_v50 }
 0x3ea   : > { %5998 = vmatprep.subr.bf16.mxu1 %v6657_v51  ;;  %v1263_v57 = vpop.permute.xlu0 %1262 }
 0x3eb   : > { %v1266_v26 = vsel %vm1188_vm7, %v1263_v57, %v1265_v53 }
 0x3ec   : > { %6019 = vmatpush3.bf16.msra.mxu0 %v6658_v52 }
 0x3ed   : > { %5999 = vmatpush3.bf16.msra.mxu1 %v6659_v54  ;;  %6020 = vmatprep.subr.bf16.mxu0 %v6660_v55  ;;  %v1346_v61 = vpop.permute.xlu1 %1345 }
 0x3ee   : > { %6000 = vmatprep.subr.bf16.mxu1 %v6661_v56  ;;  %v1344_v63 = vpop.permute.xlu0 %1343 }
 0x3ef   : > { %v1347_v2 = vsel %vm1188_vm7, %v1344_v63, %v1346_v61 }
 0x3f0   : > { %6021 = vmatpush3.bf16.msra.mxu0 %v6662_v58  ;;  %2124 = vmatprep.mubr.bf16.mxu0 %v1347_v2 }
 0x3f1   : > { %6001 = vmatpush3.bf16.msra.mxu1 %v6663_v59  ;;  %6022 = vmatprep.subr.bf16.mxu0 %v6664_v60  ;;  %v1373_v33 = vpop.permute.xlu1 %1372 }
 0x3f2   : > { %6002 = vmatprep.subr.bf16.mxu1 %v6665_v62  ;;  %v1371_v34 = vpop.permute.xlu0 %1370 }
 0x3f3   : > { %v1374_v35 = vsel %vm1204_vm10, %v1371_v34, %v1373_v33  ;;  %v6696_v33 = vld [vmem:[#allocation15 + $0x98] sm:$0xff]   ;;  %v6698_v34 = vld [vmem:[#allocation15 + $0xe0] sm:$0xff]  }
 0x3f4   : > { %6023 = vmatpush3.bf16.msra.mxu0 %v6666_v1 }
 0x3f5   : > { %6003 = vmatpush3.bf16.msra.mxu1 %v6667_v3  ;;  %6024 = vmatprep.subr.bf16.mxu0 %v6668_v4 }
 0x3f6   : > { %6004 = vmatprep.subr.bf16.mxu1 %v6669_v5 }
 0x3f8   : > { %6025 = vmatpush3.bf16.msra.mxu0 %v6670_v8 }
 0x3f9   : > { %6005 = vmatpush3.bf16.msra.mxu1 %v6671_v9  ;;  %6026 = vmatprep.subr.bf16.mxu0 %v6672_v11 }
 0x3fa   : > { %6006 = vmatprep.subr.bf16.mxu1 %v6673_v12 }
 0x3fc   : > { %6027 = vmatpush3.bf16.msra.mxu0 %v6674_v14 }
 0x3fd   : > { %6007 = vmatpush3.bf16.msra.mxu1 %v6675_v15  ;;  %6028 = vmatprep.subr.bf16.mxu0 %v6676_v16 }
 0x3fe   : > { %6355 = vmatprep.subr.bf16.mxu1 %v7202_v0 }
 0x400   : > { %2084 = vmatmul.mubr.bf16.vlgmr.msra.gmra.mrb[12].mxu1 %v1266_v26  ;;  %6029 = vmatpush3.bf16.msra.mxu0 %v6677_v21  ;;  %v6687_v21 = vld [vmem:[#allocation15 + $0x80] sm:$0xff]   ;;  %v6689_v26 = vld [vmem:[#allocation15 + $0x88] sm:$0xff]  }
 0x401   : > { %6356 = vmatpush3.bf16.msra.mxu1 %v6678_v23  ;;  %6371 = vmatprep.mubr.msk.bf16.mxu1 %vm7209_vm8, %v7202_v0  ;;  %v6688_v23 = vld [vmem:[#allocation15 + $0xc8] sm:$0xff]  }
 0x402   : > { %6357 = vmatprep.subr.bf16.mxu1 %v7202_v0  ;;  %6045 = vmatprep.subr.bf16.mxu0 %v6691_v24 }
 0x403   : > { %2125 = vmatmul.mubr.bf16.vlgmr.msra.gmra.mrb[8].mxu0 %v1320_v7  ;;  %v6690_v7 = vld [vmem:[#allocation15 + $0xd0] sm:$0xff]  }
 0x404   : > { %6046 = vmatpush3.bf16.msra.mxu0 %v6693_v25 }
 0x405   : > { %6358 = vmatpush3.bf16.msra.mxu1 %v6679_v27  ;;  %v6695_v27 = vld [vmem:[#allocation15 + $0x48] sm:$0xff]  }
 0x406   : > { %6359 = vmatprep.subr.bf16.mxu1 %v7202_v0  ;;  %6047 = vmatprep.subr.bf16.mxu0 %v6695_v27 }
 0x409   : > { %6360 = vmatpush3.bf16.msra.mxu1 %v6680_v28  ;;  %v6697_v28 = vld [vmem:[#allocation15 + $0x8] sm:$0xff]  }
 0x40a   : > { %6361 = vmatprep.subr.bf16.mxu1 %v7202_v0  ;;  %6048 = vmatpush3.bf16.msra.mxu0 %v6697_v28 }
 0x40d   : > { %6362 = vmatpush3.bf16.msra.mxu1 %v6681_v6  ;;  %v6699_v6 = vld [vmem:[#allocation15 + $0x50] sm:$0xff]  }
 0x40e   : > { %6363 = vmatprep.subr.bf16.mxu1 %v7202_v0  ;;  %6049 = vmatprep.subr.bf16.mxu0 %v6699_v6 }
 0x411   : > { %6364 = vmatpush3.bf16.msra.mxu1 %v6682_v29  ;;  %v6692_v29 = vld [vmem:[#allocation15 + $0x90] sm:$0xff]  }
 0x412   : > { %6365 = vmatprep.subr.bf16.mxu1 %v7202_v0 }
 0x415   : > { %6366 = vmatpush3.bf16.msra.mxu1 %v6683_v30  ;;  %v6694_v30 = vld [vmem:[#allocation15 + $0xd8] sm:$0xff]  }
 0x416   : > { %6367 = vmatprep.subr.bf16.mxu1 %v7202_v0 }
 0x419   : > { %6368 = vmatpush3.bf16.msra.mxu1 %v6684_v31  ;;  %v6701_v31 = vld [vmem:[#allocation15 + $0x10] sm:$0xff]  }
 0x41a   : > { %6369 = vmatprep.subr.bf16.mxu1 %v7202_v0  ;;  %6050 = vmatpush3.bf16.msra.mxu0 %v6701_v31 }
 0x41d   : > { %6370 = vmatpush3.bf16.msra.mxu1 %v6685_v32  ;;  %v6703_v32 = vld [vmem:[#allocation15 + $0x58] sm:$0xff]  }
 0x41e   : > { %6067 = vmatprep.subr.bf16.mxu1 %v6686_v20  ;;  %6051 = vmatprep.subr.bf16.mxu0 %v6703_v32  ;;  %v6723_v32 = vld [vmem:[#allocation15 + $0x140] sm:$0xff]  }
 0x420   : > { %6372 = vmatmul.mubr.bf16.vlgmr.msra.gmra.mrb[16].mxu1 %v1374_v35  ;;  %v6705_v35 = vld [vmem:[#allocation15 + $0x18] sm:$0xff]  }
 0x421   : > { %6068 = vmatpush3.bf16.msra.mxu1 %v6687_v21  ;;  %6052 = vmatpush3.bf16.msra.mxu0 %v6705_v35 }
 0x422   : > { %6069 = vmatprep.subr.bf16.mxu1 %v6688_v23 }
 0x425   : > { %6070 = vmatpush3.bf16.msra.mxu1 %v6689_v26 }
 0x426   : > { %6071 = vmatprep.subr.bf16.mxu1 %v6690_v7 }
 0x429   : > { %6072 = vmatpush3.bf16.msra.mxu1 %v6692_v29 }
 0x42a   : > { %6073 = vmatprep.subr.bf16.mxu1 %v6694_v30 }
 0x42d   : > { %6074 = vmatpush3.bf16.msra.mxu1 %v6696_v33 }
 0x42e   : > { %6075 = vmatprep.subr.bf16.mxu1 %v6698_v34 }
 0x4b3   : > { %v5964_v36 = vpop.f32.mrb[8].mxu1 }
 0x4b4   : > { %v5965_v38 = vpop.f32.mrb[9].mxu1 }
 0x4b5   : > { %v5966_v39 = vadd.f32 %v5965_v38, %v5964_v36  ;;  %v5967_v40 = vpop.f32.mrb[10].mxu1  ;;  %v6707_v36 = vld [vmem:[#allocation15 + $0x60] sm:$0xff]   ;;  %v6702_v38 = vld [vmem:[#allocation15 + $0xe8] sm:$0xff]  }
 0x4b6   : > { %v5968_v41 = vpop.f32.mrb[11].mxu1  ;;  %v5986_v42 = vpop.f32.mrb[4].mxu0  ;;  %6053 = vmatprep.subr.bf16.mxu0 %v6707_v36 }
 0x4b7   : > { %v2004_v43 = vadd.f32 %v5966_v39, %v5593_v37  ;;  %v5969_v44 = vadd.f32 %v5968_v41, %v5967_v40  ;;  %v5987_v45 = vpop.f32.mrb[5].mxu0  ;;  %v6709_v39 = vld [vmem:[#allocation15 + $0x20] sm:$0xff]   ;;  %v6711_v40 = vld [vmem:[#allocation15 + $0x68] sm:$0xff]  }
 0x4b8   : > { %v5988_v46 = vadd.f32 %v5987_v45, %v5986_v42  ;;  %v5989_v47 = vpop.f32.mrb[6].mxu0  ;;  %v6704_v41 = vld [vmem:[#allocation15 + $0xa8] sm:$0xff]   ;;  %v6706_v42 = vld [vmem:[#allocation15 + $0xf0] sm:$0xff]   ;;  %6054 = vmatpush3.bf16.msra.mxu0 %v6709_v39  ;;  %v6710_v45 = vld [vmem:[#allocation15 + $0xf8] sm:$0xff]  }
 0x4b9   : > { %v2007_v48 = vadd.f32 %v5969_v44, %v5593_v37  ;;  %v5990_v49 = vpop.f32.mrb[7].mxu0  ;;  %v6700_v37 = vld [vmem:[#allocation15 + $0xa0] sm:$0xff]   ;;  %6055 = vmatprep.subr.bf16.mxu0 %v6711_v40  ;;  %v6708_v44 = vld [vmem:[#allocation15 + $0xb0] sm:$0xff]  }
 0x4ba   : > { %v2045_v50 = vadd.f32 %v5988_v46, %v2004_v43  ;;  %v5991_v10 = vadd.f32 %v5990_v49, %v5989_v47  ;;  %6076 = vmatpush3.bf16.msra.mxu1 %v6700_v37  ;;  %v6713_v43 = vld [vmem:[#allocation15 + $0x28] sm:$0xff]   ;;  %v6712_v46 = vld [vmem:[#allocation15 + $0xb8] sm:$0xff]   ;;  %v6715_v49 = vld [vmem:[#allocation15 + $0x70] sm:$0xff]  }
 0x4bb   : > { %6077 = vmatprep.subr.bf16.mxu1 %v6702_v38 }
 0x4bc   : > { %v2048_v51 = vadd.f32 %v5991_v10, %v2007_v48  ;;  %6056 = vmatpush3.bf16.msra.mxu0 %v6713_v43  ;;  %v6714_v48 = vld [vmem:[#allocation15 + $0x1c0] sm:$0xff]   ;;  %v6717_v10 = vld [vmem:[#allocation15 + $0x30] sm:$0xff]  }
 0x4bd   : > { %6057 = vmatprep.subr.bf16.mxu0 %v6715_v49 }
 0x4be   : > { %6078 = vmatpush3.bf16.msra.mxu1 %v6704_v41 }
 0x4bf   : > { %6079 = vmatprep.subr.bf16.mxu1 %v6706_v42 }
 0x4c0   : > { %6058 = vmatpush3.bf16.msra.mxu0 %v6717_v10 }
 0x4c2   : > { %6080 = vmatpush3.bf16.msra.mxu1 %v6708_v44 }
 0x4c3   : > { %6081 = vmatprep.subr.bf16.mxu1 %v6710_v45 }
 0x4c6   : > { %6082 = vmatpush3.bf16.msra.mxu1 %v6712_v46 }
 0x4c7   : > { %6111 = vmatprep.subr.bf16.mxu1 %v6714_v48 }
 0x4d3   : > { %v6008_v52 = vpop.f32.mrb[12].mxu1 }
 0x4d4   : > { %v6009_v53 = vpop.f32.mrb[13].mxu1 }
 0x4d5   : > { %v6010_v54 = vadd.f32 %v6009_v53, %v6008_v52  ;;  %v6011_v55 = vpop.f32.mrb[14].mxu1  ;;  %v6719_v52 = vld [vmem:[#allocation15 + $0x78] sm:$0xff]  }
 0x4d6   : > { %v6012_v56 = vpop.f32.mrb[15].mxu1  ;;  %v6030_v57 = vpop.f32.mrb[8].mxu0  ;;  %6059 = vmatprep.subr.bf16.mxu0 %v6719_v52  ;;  %v6721_v53 = vld [vmem:[#allocation15 + $0x38] sm:$0xff]  }
 0x4d7   : > { %v2086_v58 = vadd.f32 %v6010_v54, %v2045_v50  ;;  %v6013_v59 = vadd.f32 %v6012_v56, %v6011_v55  ;;  %v6031_v60 = vpop.f32.mrb[9].mxu0  ;;  %6060 = vmatpush3.bf16.msra.mxu0 %v6721_v53 }
 0x4d8   : > { %v6032_v61 = vadd.f32 %v6031_v60, %v6030_v57  ;;  %v6033_v62 = vpop.f32.mrb[10].mxu0  ;;  %6089 = vmatprep.subr.bf16.mxu0 %v6723_v32 }
 0x4d9   : > { %v2089_v63 = vadd.f32 %v6013_v59, %v2048_v51  ;;  %v6034_v1 = vpop.f32.mrb[11].mxu0 }
 0x4da   : > { %v6035_v2 = vadd.f32 %v6034_v1, %v6033_v62  ;;  %v2127_v3 = vadd.f32 %v6032_v61, %v2086_v58 }
 0x4dc   : > { %v2130_v4 = vadd.f32 %v6035_v2, %v2089_v63 }
 0x4f3   : > { %v2167_v5 = vpop.f32.mrb[16].mxu1 }
 0x4f4   : > { %v2168_v8 = vadd.f32 %v2167_v5, %v2127_v3  ;;  %v6373_v9 = vpop.f32.mrb[17].mxu1 }
 0x4f5   : > { %v2170_v11 = vpop.f32.mrb[18].mxu1 }
 0x4f6   : > { %v2174_v12 = vmax.f32 %v2168_v8, 0.0  ;;  %v2171_v13 = vadd.f32 %v2170_v11, %v2130_v4  ;;  %v6374_v14 = vpop.f32.mrb[19].mxu1 }
 0x4f8   : > { %v2178_v15 = vrot.slane %v2174_v12, 7  ;;  %v2175_v16 = vmax.f32 %v2171_v13, 0.0 }
 0x4fa   : > { %v2179_v17 = vrot.slane %v2175_v16, 7  ;;  %2181 = vrot.lane.b32.xlu0 %v2178_v15, %s7210_s2 }
 0x4fc   : > { %v2180_v19 = vsel %vm1148_vm14, %v2178_v15, %v2179_v17 }
 0x4fd   : > { %2183 = vrot.lane.b32.xlu1 %v2180_v19, %s7210_s2 }
 0x4fe   : > { %2185 = vrot.lane.b32.xlu0 %v2179_v17, %s7210_s2 }
 0x56c   : > { %v2182_v47 = vpop.permute.xlu0 %2181 }
 0x56d   : > { %2190 = vst.msk [vmem:[#allocation4] sm:$0xfe] %vm1161_vm15, %v2182_v47 }
 0x56e   : > { %2191 = vst.msk [vmem:[#allocation4 + $0x8] sm:$0xfe] %vm1163_vm0, %v2182_v47 }
 0x56f   : > { %v2184_v50 = vpop.permute.xlu1 %2183 }
 0x570   : > { %2192 = vst.msk [vmem:[#allocation4 + $0x10] sm:$0xff] %vm1165_vm1, %v2184_v50  ;;  %v2186_v51 = vpop.permute.xlu0 %2185 }
 0x571   : > { %2193 = vst.msk [vmem:[#allocation4 + $0x18] sm:$0xff] %vm618_vm9, %v2184_v50 }
 0x572   : > { %2194 = vst.msk [vmem:[#allocation4 + $0x20] sm:$0x1] %vm1168_vm2, %v2186_v51 }
 0x573   : > { %2195 = vst.msk [vmem:[#allocation4 + $0x28] sm:$0x1] %vm1170_vm3, %v2186_v51 }
 0x574   : > { %v2215_v55 = vld [vmem:[#allocation4] sm:$0xff] }
 0x575   : > { %v2216_v54 = vld [vmem:[#allocation4 + $0x8] sm:$0xff]  ;;  %v2343_v57 = vld [vmem:[#allocation4] sm:$0xfc] }
 0x576   : > { %v2344_v56 = vld [vmem:[#allocation4 + $0x8] sm:$0xfc]  ;;  %v2230_v60 = vld [vmem:[#allocation4] sm:$0xfe] }
 0x577   : > { %v7738_v59 = vld [vmem:[#allocation4 + $0x10] sm:$0xff]  ;;  %v2291_v12 = vld [vmem:[#allocation4 + $0x8] sm:$0xfe]  ;;  %v2290_v7 = vld [vmem:[#allocation4] sm:$0xfe] }
 0x578   : > { %v7736_v58 = vld [vmem:[#allocation4 + $0x18] sm:$0xff]  ;;  %v7742_v62 = vpack.c.bf16 %v7738_v59, %v2215_v55  ;;  %v2349_v3 = vpack.c.bf16 %v7738_v59, %v2343_v57  ;;  %v2233_v9 = vpack.c.bf16 %v7738_v59, %v2230_v60  ;;  %v2296_v30 = vpack.c.bf16 %v7738_v59, %v2290_v7  ;;  %v2250_v37 = vld [vmem:[#allocation4 + $0x8] sm:$0xfe]  ;;  %v2249_v42 = vld [vmem:[#allocation4] sm:$0xfe] }
 0x579   : > { %v2220_v61 = vpack.c.bf16 %v7736_v58, %v2216_v54  ;;  %v2350_v1 = vpack.c.bf16 %v7736_v58, %v2344_v56  ;;  %v2347_v2 = vld [vmem:[#allocation4 + $0x20] sm:$0x3]  ;;  %v2297_v16 = vpack.c.bf16 %v7736_v58, %v2291_v12  ;;  %v2256_v41 = vpack.c.bf16 %v7736_v58, %v2250_v37  ;;  %v2370_v12 = vld [vmem:[#allocation4] sm:$0xfc] }
 0x57a   : > { %v2348_v63 = vld [vmem:[#allocation4 + $0x28] sm:$0x3]  ;;  %v2232_v4 = vld [vmem:[#allocation4 + $0x20] sm:$0x1]  ;;  %v2351_v8 = vpack.c.bf16 %v2347_v2, %v2347_v2  ;;  %2223 = vrot.lane.b32.xlu1 %v7742_v62, %s7211_s17  ;;  %v2357_v15 = vrot.slane %v2349_v3, 1  ;;  %v2238_v21 = vshll.u32 %v2233_v9, 16  ;;  %v2255_v47 = vpack.c.bf16 %v7738_v59, %v2249_v42 }
 0x57b   : > { %v2352_v5 = vpack.c.bf16 %v2348_v63, %v2348_v63  ;;  %v2234_v11 = vpack.c.bf16 %v2232_v4, %v2232_v4  ;;  %v2295_v13 = vld [vmem:[#allocation4 + $0x28] sm:$0x1]  ;;  %2225 = vrot.lane.b32.xlu0 %v2220_v61, %s7211_s17  ;;  %v2360_v14 = vrot.slane %v2350_v1, 1  ;;  %v2294_v23 = vld [vmem:[#allocation4 + $0x20] sm:$0x1]  ;;  %v2236_v24 = vshrl.u32 %v2233_v9, 16 }
 0x57c   : > { %v2299_v17 = vpack.c.bf16 %v2295_v13, %v2295_v13  ;;  %v2358_v20 = vrot.slane %v2351_v8, 1  ;;  %v2315_v26 = vshll.u32 %v2297_v16, 16  ;;  %v2240_v29 = vrot.slane %v2238_v21, 1  ;;  %v2254_v31 = vld [vmem:[#allocation4 + $0x28] sm:$0x1]  ;;  %v6726_v37 = vld [vmem:[#allocation15 + $0x1d8] sm:$0xff]  }
 0x57d   : > { %v2361_v19 = vrot.slane %v2352_v5, 1  ;;  %v2243_v25 = vshll.u32 %v2234_v11, 16  ;;  %v2313_v34 = vshrl.u32 %v2297_v16, 16  ;;  %v2298_v36 = vpack.c.bf16 %v2294_v23, %v2294_v23  ;;  %v2253_v43 = vld [vmem:[#allocation4 + $0x20] sm:$0x1] }
 0x57e   : > { %v2320_v27 = vshll.u32 %v2299_v17, 16  ;;  %v2359_v6 = vsel %vm1317_vm5, %v2357_v15, %v2358_v20  ;;  %v2317_v35 = vrot.slane %v2315_v26, 1  ;;  %v2241_v38 = vor.u32 %v2240_v29, %v2236_v24  ;;  %v2375_v54 = vld [vmem:[#allocation4 + $0x28] sm:$0x3]  ;;  %v2374_v63 = vld [vmem:[#allocation4 + $0x20] sm:$0x3] }
 0x57f   : > { %v2362_v28 = vsel %vm1317_vm5, %v2360_v14, %v2361_v19  ;;  %2363 = vrot.lane.b32.xlu1 %v2359_v6, %s7208_s23  ;;  %v2245_v33 = vrot.slane %v2243_v25, 1  ;;  %v2303_v40 = vshll.u32 %v2296_v30, 16  ;;  %v2308_v45 = vshll.u32 %v2298_v36, 16  ;;  %v2371_v5 = vld [vmem:[#allocation4 + $0x8] sm:$0xfc]  ;;  %v6718_v6 = vld [vmem:[#allocation15 + $0x1c8] sm:$0xff]  }
 0x580   : > { %2365 = vrot.lane.b32.xlu0 %v2362_v28, %s7208_s23  ;;  %v2322_v39 = vrot.slane %v2320_v27, 1  ;;  %v2318_v44 = vor.u32 %v2317_v35, %v2313_v34  ;;  %v2258_v46 = vpack.c.bf16 %v2254_v31, %v2254_v31  ;;  %v2301_v49 = vshrl.u32 %v2296_v30, 16  ;;  %v6716_v27 = vld [vmem:[#allocation15 + $0x180] sm:$0xff]   ;;  %v6720_v30 = vld [vmem:[#allocation15 + $0x188] sm:$0xff]   ;;  %v6724_v35 = vld [vmem:[#allocation15 + $0x190] sm:$0xff]  }
 0x581   : > { %v2246_v48 = vsel %vm1213_vm4, %v2241_v38, %v2245_v33  ;;  %v2305_v50 = vrot.slane %v2303_v40, 1  ;;  %v2274_v10 = vshll.u32 %v2256_v41, 16  ;;  %v2310_v51 = vrot.slane %v2308_v45, 1  ;;  %v6722_v33 = vld [vmem:[#allocation15 + $0x1d0] sm:$0xff]   ;;  %v6728_v42 = vld [vmem:[#allocation15 + $0x198] sm:$0xff]  }
 0x582   : > { %3062 = vmatprep.mubr.bf16.mxu1 %v2246_v48  ;;  %v2279_v52 = vshll.u32 %v2258_v46, 16  ;;  %v2257_v53 = vpack.c.bf16 %v2253_v43, %v2253_v43  ;;  %v2272_v56 = vshrl.u32 %v2256_v41, 16  ;;  %v2262_v60 = vshll.u32 %v2255_v47, 16  ;;  %v6727_v41 = vld [vmem:[#allocation15 + $0x148] sm:$0xff]   ;;  %v6731_v48 = vld [vmem:[#allocation15 + $0x150] sm:$0xff]  }
 0x583   : > { %2208 = vrot.lane.b32.xlu1 %v7742_v62, %s7208_s23  ;;  %v2306_v55 = vor.u32 %v2305_v50, %v2301_v49  ;;  %v2276_v57 = vrot.slane %v2274_v10, 1  ;;  %v2323_v1 = vsel %vm1213_vm4, %v2318_v44, %v2322_v39  ;;  %v2260_v3 = vshrl.u32 %v2255_v47, 16  ;;  %v6725_v39 = vld [vmem:[#allocation15 + $0x100] sm:$0xff]   ;;  %v6729_v46 = vld [vmem:[#allocation15 + $0x108] sm:$0xff]   ;;  %v6733_v10 = vld [vmem:[#allocation15 + $0x110] sm:$0xff]  }
 0x584   : > { %2210 = vrot.lane.b32.xlu0 %v2220_v61, %s7208_s23  ;;  %v2281_v2 = vrot.slane %v2279_v52, 1  ;;  %v2267_v4 = vshll.u32 %v2257_v53, 16  ;;  %v2264_v61 = vrot.slane %v2262_v60, 1  ;;  %v2377_v9 = vpack.c.bf16 %v7736_v58, %v2371_v5  ;;  %v6730_v44 = vld [vmem:[#allocation15 + $0x1e0] sm:$0xff]   ;;  %v6734_v50 = vld [vmem:[#allocation15 + $0x1e8] sm:$0xff]   ;;  %v6738_v52 = vld [vmem:[#allocation15 + $0x1f0] sm:$0xff]  }
 0x585   : > { %v2277_v8 = vor.u32 %v2276_v57, %v2272_v56  ;;  %v2379_v11 = vpack.c.bf16 %v2375_v54, %v2375_v54  ;;  %v2311_v13 = vsel %vm1213_vm4, %v2306_v55, %v2310_v51  ;;  %v2376_v15 = vpack.c.bf16 %v7738_v59, %v2370_v12  ;;  %v6732_v49 = vld [vmem:[#allocation15 + $0x1a0] sm:$0xff]   ;;  %v6735_v51 = vld [vmem:[#allocation15 + $0x158] sm:$0xff]   ;;  %v6740_v56 = vld [vmem:[#allocation15 + $0x1b0] sm:$0xff]  }
 0x586   : > { %v2269_v14 = vrot.slane %v2267_v4, 1  ;;  %v2378_v16 = vpack.c.bf16 %v2374_v63, %v2374_v63  ;;  %v2265_v17 = vor.u32 %v2264_v61, %v2260_v3  ;;  %v2387_v20 = vrot.slane %v2377_v9, 1  ;;  %v6737_v53 = vld [vmem:[#allocation15 + $0x118] sm:$0xff]   ;;  %v6739_v54 = vld [vmem:[#allocation15 + $0x160] sm:$0xff]   ;;  %v6743_v4 = vld [vmem:[#allocation15 + $0x168] sm:$0xff]  }
 0x587   : > { %2324 = vrot.lane.b32.xlu1 %v2311_v13, %s7211_s17  ;;  %v2282_v19 = vsel %vm1213_vm4, %v2277_v8, %v2281_v2  ;;  %v2388_v21 = vrot.slane %v2379_v11, 1  ;;  %v2384_v23 = vrot.slane %v2376_v15, 1  ;;  %v2333_v55 = vld [vmem:[#allocation4 + $0x20] sm:$0x3]  ;;  %v2331_v60 = vld [vmem:[#allocation4] sm:$0xfc] }
 0x588   : > { %2326 = vrot.lane.b32.xlu0 %v2323_v1, %s7211_s17  ;;  %v2270_v58 = vsel %vm1213_vm4, %v2265_v17, %v2269_v14  ;;  %v2385_v24 = vrot.slane %v2378_v16, 1  ;;  %v6742_v57 = vld [vmem:[#allocation15 + $0x1f8] sm:$0xff]   ;;  %v6741_v63 = vld [vmem:[#allocation15 + $0x120] sm:$0xff]   ;;  %v2334_v1 = vpack.c.bf16 %v7738_v59, %v2331_v60  ;;  %v2335_v2 = vpack.c.bf16 %v2333_v55, %v2333_v55  ;;  %v6745_v61 = vld [vmem:[#allocation15 + $0x128] sm:$0xff]  }
 0x589   : > { %v2389_v25 = vsel %vm1317_vm5, %v2387_v20, %v2388_v21  ;;  %v3196_v3 = vld [vmem:[%s7579_s25] sm:$0xff]  ;;  %v6751_v21 = vld [vmem:[#allocation15 + $0x200] sm:$0xff]   ;;  %s8091_s25 = sld [smem:[#allocation34_spill]] }
 0x58a   : > { %v2386_v26 = vsel %vm1317_vm5, %v2384_v23, %v2385_v24  ;;  %v6744_v5 = vld [vmem:[#allocation15 + $0x1b8] sm:$0xff]   ;;  %v3197_v8 = vpack.c.bf16 %v3196_v3, %v3196_v3  ;;  %v2338_v9 = vrot.slane %v2334_v1, 1  ;;  %v2339_v11 = vrot.slane %v2335_v2, 1  ;;  %v6746_v12 = vld [vmem:[#allocation15 + $0x170] sm:$0xff]   ;;  %v6752_v23 = vld [vmem:[#allocation15 + $0x208] sm:$0xff]  }
 0x58b   : > { %2283 = vrot.lane.b32.xlu1 %v2270_v58, %s7208_s23  ;;  %v6747_v14 = vld [vmem:[#allocation15 + $0x130] sm:$0xff]   ;;  %v6748_v15 = vld [vmem:[#allocation15 + $0x178] sm:$0xff]  }
 0x58c   : > { %2285 = vrot.lane.b32.xlu0 %v2282_v19, %s7208_s23  ;;  %v3210_v13 = vsel %vm3208_vm11, %v3197_v8, 0  ;;  %v2340_v59 = vsel %vm1317_vm5, %v2338_v9, %v2339_v11  ;;  %v6749_v16 = vld [vmem:[#allocation15 + $0x138] sm:$0xff]   ;;  %v6750_v17 = vld [vmem:[%s8087_s8] sm:$0xff]  }
 0x58d   : > { %v6753_v24 = vld [vmem:[#allocation15 + $0x210] sm:$0xff]  }
 0x58f   : > { %2390 = vrot.lane.b32.xlu1 %v2386_v26, %s7211_s17  ;;  %v6755_v26 = vld [vmem:[#allocation15 + $0x220] sm:$0xff]  }
 0x590   : > { %2392 = vrot.lane.b32.xlu0 %v2389_v25, %s7211_s17  ;;  %v6754_v25 = vld [vmem:[#allocation15 + $0x218] sm:$0xff]  }
 0x5ec   : > { %v2224_v28 = vpop.permute.xlu1 %2223 }
 0x5ed   : > { %v2226_v7 = vpop.permute.xlu0 %2225 }
 0x5ee   : > { %v2227_v29 = vsel %vm1204_vm10, %v2224_v28, %v2226_v7  ;;  %v6757_v7 = vld [vmem:[#allocation15 + $0x230] sm:$0xff]   ;;  %v6758_v28 = vld [vmem:[#allocation15 + $0x238] sm:$0xff]  }
 0x5ef   : > { %3063 = vmatmul.mubr.bf16.vlgmr.msra.gmra.mrb[20].mxu1 %v2227_v29 }
 0x5f0   : > { %6112 = vmatpush3.bf16.msra.mxu1 %v6716_v27  ;;  %v6756_v27 = vld [vmem:[#allocation15 + $0x228] sm:$0xff]  }
 0x5f1   : > { %v2364_v32 = vpop.permute.xlu1 %2363  ;;  %6113 = vmatprep.subr.bf16.mxu1 %v6718_v6 }
 0x5f2   : > { %v2366_v31 = vpop.permute.xlu0 %2365 }
 0x5f3   : > { %v2367_v34 = vsel %vm1188_vm7, %v2364_v32, %v2366_v31  ;;  %v6759_v31 = vld [vmem:[%s8088_s13] sm:$0xff]   ;;  %v6760_v32 = vld [vmem:[%s8088_s13 + $0x8] sm:$0xff]  }
 0x5f4   : > { %3144 = vmatprep.mubr.bf16.mxu1 %v2367_v34  ;;  %6114 = vmatpush3.bf16.msra.mxu1 %v6720_v30  ;;  %v6762_v34 = vld [vmem:[%s8088_s13 + $0x18] sm:$0xff]  }
 0x5f5   : > { %6115 = vmatprep.subr.bf16.mxu1 %v6722_v33  ;;  %v2209_v38 = vpop.permute.xlu1 %2208  ;;  %v6761_v33 = vld [vmem:[%s8088_s13 + $0x10] sm:$0xff]  }
 0x5f6   : > { %v2211_v36 = vpop.permute.xlu0 %2210 }
 0x5f7   : > { %v2212_v40 = vsel %vm1188_vm7, %v2209_v38, %v2211_v36 }
 0x5f8   : > { %3021 = vmatprep.mubr.bf16.mxu0 %v2212_v40  ;;  %6116 = vmatpush3.bf16.msra.mxu1 %v6724_v35 }
 0x5f9   : > { %3022 = vmatmul.mubr.bf16.vlgmr.msra.gmra.mrb[12].mxu0 %v7742_v62  ;;  %6117 = vmatprep.subr.bf16.mxu1 %v6726_v37  ;;  %v2325_v45 = vpop.permute.xlu1 %2324  ;;  %v6736_v62 = vld [vmem:[#allocation15 + $0x1a8] sm:$0xff]  }
 0x5fa   : > { %v2327_v43 = vpop.permute.xlu0 %2326  ;;  %6090 = vmatpush3.bf16.msra.mxu0 %v6725_v39 }
 0x5fb   : > { %6091 = vmatprep.subr.bf16.mxu0 %v6727_v41  ;;  %v2328_v47 = vsel %vm1204_vm10, %v2325_v45, %v2327_v43 }
 0x5fc   : > { %3103 = vmatprep.mubr.bf16.mxu0 %v2328_v47  ;;  %6118 = vmatpush3.bf16.msra.mxu1 %v6728_v42  ;;  %v5666_v42 = vld [vmem:[%s8089_s18] ss:$0 sm:$0xff]  ;;  %s7111_s18 = sshll.u32 %s7212_s28, 4  ;;  %s7112_s18 = int_to_ptr.vmem [resolvable:$false] %s7111_s18 }
 0x5fd   : > { %6119 = vmatprep.subr.bf16.mxu1 %v6730_v44  ;;  %v2284_v20 = vpop.permute.xlu1 %2283  ;;  %s7113_s6 = scalar_lea.vmem %s7112_s18, 512  ;;  %p7114_p5 = scmp.lt.s32.totalorder %s7981_s11, %s7112_s18 }
 0x5fe   : > { %6092 = vmatpush3.bf16.msra.mxu0 %v6729_v46  ;;  %v2286_v19 = vpop.permute.xlu0 %2285  ;;  %p7115_p9 = scmp.lt.s32.totalorder %s7113_s6, %s7107_s19 }
 0x5ff   : > { %6093 = vmatprep.subr.bf16.mxu0 %v6731_v48  ;;  %v2287_v58 = vsel %vm1188_vm7, %v2284_v20, %v2286_v19 }
 0x600   : > { %6120 = vmatpush3.bf16.msra.mxu1 %v6732_v49  ;;  %p7116_p3 = por %p7115_p9, %p7114_p5 }
 0x601   : > { %6121 = vmatprep.subr.bf16.mxu1 %v6734_v50  ;;  %v2391_v29 = vpop.permute.xlu1 %2390 }
 0x602   : > { %6094 = vmatpush3.bf16.msra.mxu0 %v6733_v10  ;;  %v2393_v6 = vpop.permute.xlu0 %2392  ;;  %p7117_p7 = pnand %p7116_p3, %p7110_p10 }
 0x603   : > { %6095 = vmatprep.subr.bf16.mxu0 %v6735_v51  ;;  %v2394_v30 = vsel %vm1204_vm10, %v2391_v29, %v2393_v6  ;;  %v6769_v6 = vld [vmem:[#allocation16 + $0xc8] sm:$0xff]  }
 0x604   : > { %6122 = vmatpush3.bf16.msra.mxu1 %v6736_v62  ;;  %v6768_v29 = vld [vmem:[#allocation16 + $0x8] sm:$0xff]  }
 0x605   : > { %6123 = vmatprep.subr.bf16.mxu1 %v6738_v52 }
 0x606   : > { %6096 = vmatpush3.bf16.msra.mxu0 %v6737_v53 }
 0x607   : > { %6097 = vmatprep.subr.bf16.mxu0 %v6739_v54 }
 0x608   : > { %6124 = vmatpush3.bf16.msra.mxu1 %v6740_v56 }
 0x609   : > { %6125 = vmatprep.subr.bf16.mxu1 %v6742_v57 }
 0x60a   : > { %6098 = vmatpush3.bf16.msra.mxu0 %v6741_v63 }
 0x60b   : > { %6099 = vmatprep.subr.bf16.mxu0 %v6743_v4 }
 0x60c   : > { %6126 = vmatpush3.bf16.msra.mxu1 %v6744_v5 }
 0x60d   : > { %6395 = vmatprep.subr.bf16.mxu1 %v7202_v0 }
 0x60e   : > { %6100 = vmatpush3.bf16.msra.mxu0 %v6745_v61 }
 0x60f   : > { %3145 = vmatmul.mubr.bf16.vlgmr.msra.gmra.mrb[24].mxu1 %v2340_v59  ;;  %6101 = vmatprep.subr.bf16.mxu0 %v6746_v12 }
 0x610   : > { %6396 = vmatpush3.bf16.msra.mxu1 %v3210_v13  ;;  %6397 = vmatprep.mubr.msk.bf16.mxu1 %vm7209_vm8, %v7202_v0 }
 0x612   : > { %6102 = vmatpush3.bf16.msra.mxu0 %v6747_v14 }
 0x613   : > { %6103 = vmatprep.subr.bf16.mxu0 %v6748_v15 }
 0x616   : > { %6104 = vmatpush3.bf16.msra.mxu0 %v6749_v16 }
 0x617   : > { %6398 = vmatmul.mubr.msk.bf16.vlgmr.msra.gmra.mrb[28].mxu1 %vm618_vm9, %v6750_v17  ;;  %6375 = vmatprep.subr.bf16.mxu0 %v7202_v0 }
 0x619   : > { %3104 = vmatmul.mubr.bf16.vlgmr.msra.gmra.mrb[16].mxu0 %v2287_v58 }
 0x61a   : > { %6376 = vmatpush3.bf16.msra.mxu0 %v6751_v21  ;;  %6391 = vmatprep.mubr.msk.bf16.mxu0 %vm7209_vm8, %v7202_v0 }
 0x61b   : > { %6377 = vmatprep.subr.bf16.mxu0 %v7202_v0 }
 0x61e   : > { %6378 = vmatpush3.bf16.msra.mxu0 %v6752_v23 }
 0x61f   : > { %6379 = vmatprep.subr.bf16.mxu0 %v7202_v0 }
 0x622   : > { %6380 = vmatpush3.bf16.msra.mxu0 %v6753_v24 }
 0x623   : > { %6381 = vmatprep.subr.bf16.mxu0 %v7202_v0 }
 0x626   : > { %6382 = vmatpush3.bf16.msra.mxu0 %v6754_v25 }
 0x627   : > { %6383 = vmatprep.subr.bf16.mxu0 %v7202_v0 }
 0x62a   : > { %6384 = vmatpush3.bf16.msra.mxu0 %v6755_v26  ;;  %v6763_v26 = vld [vmem:[#allocation16 + $0x40] sm:$0xff]  }
 0x62b   : > { %6385 = vmatprep.subr.bf16.mxu0 %v7202_v0  ;;  %6149 = vmatprep.subr.bf16.mxu1 %v6763_v26 }
 0x62e   : > { %6386 = vmatpush3.bf16.msra.mxu0 %v6756_v27  ;;  %v6765_v27 = vld [vmem:[#allocation16 + $0xc0] sm:$0xff]  }
 0x62f   : > { %6387 = vmatprep.subr.bf16.mxu0 %v7202_v0 }
 0x632   : > { %6388 = vmatpush3.bf16.msra.mxu0 %v6757_v7  ;;  %v6766_v7 = vld [vmem:[#allocation16 + $0x48] sm:$0xff]  }
 0x633   : > { %6389 = vmatprep.subr.bf16.mxu0 %v7202_v0 }
 0x636   : > { %6390 = vmatpush3.bf16.msra.mxu0 %v6758_v28  ;;  %v6767_v28 = vld [vmem:[#allocation16 + $0x80] sm:$0xff]  }
 0x637   : > { %6401 = vmatprep.subr.bf16.mxu0 %v7202_v0 }
 0x639   : > { %6392 = vmatmul.mubr.bf16.vlgmr.msra.gmra.mrb[20].mxu0 %v2394_v30  ;;  %v6771_v30 = vld [vmem:[#allocation16 + $0x88] sm:$0xff]  }
 0x63a   : > { %6409 = vmatprep.mubr.msk.bf16.mxu0 %vm7209_vm8, %v7202_v0  ;;  %6402 = vmatpush3.bf16.msra.mxu0 %v6759_v31  ;;  %v6770_v31 = vld [vmem:[#allocation16 + $0x50] sm:$0xff]  }
 0x63b   : > { %6403 = vmatprep.subr.bf16.mxu0 %v7202_v0 }
 0x63e   : > { %6404 = vmatpush3.bf16.msra.mxu0 %v6760_v32  ;;  %v6773_v32 = vld [vmem:[#allocation16 + $0xd0] sm:$0xff]  }
 0x63f   : > { %6405 = vmatprep.subr.bf16.mxu0 %v7202_v0 }
 0x642   : > { %6406 = vmatpush3.bf16.msra.mxu0 %v6761_v33  ;;  %v6772_v33 = vld [vmem:[#allocation16 + $0x10] sm:$0xff]  }
 0x643   : > { %6407 = vmatprep.subr.bf16.mxu0 %v7202_v0 }
 0x646   : > { %6408 = vmatpush3.bf16.msra.mxu0 %v6762_v34  ;;  %v6775_v34 = vld [vmem:[#allocation16 + $0x90] sm:$0xff]  }
 0x647   : > { %6171 = vmatprep.subr.bf16.mxu0 %v6765_v27 }
 0x6c2   : > { %v6083_v35 = vpop.f32.mrb[20].mxu1 }
 0x6c3   : > { %v6084_v36 = vpop.f32.mrb[21].mxu1 }
 0x6c4   : > { %v6085_v37 = vadd.f32 %v6084_v36, %v6083_v35  ;;  %v6086_v38 = vpop.f32.mrb[22].mxu1  ;;  %v6774_v35 = vld [vmem:[#allocation16 + $0x58] sm:$0xff]  }
 0x6c5   : > { %v6087_v39 = vpop.f32.mrb[23].mxu1  ;;  %v6777_v36 = vld [vmem:[#allocation16 + $0xd8] sm:$0xff]  }
 0x6c6   : > { %v6088_v40 = vadd.f32 %v6087_v39, %v6086_v38  ;;  %v6779_v38 = vld [vmem:[#allocation16 + $0x98] sm:$0xff]   ;;  %v6778_v39 = vld [vmem:[#allocation16 + $0x60] sm:$0xff]  }
 0x6cc   : > { %v6061_v41 = vpop.f32.mrb[12].mxu0 }
 0x6cd   : > { %v6062_v43 = vpop.f32.mrb[13].mxu0 }
 0x6ce   : > { %v6063_v44 = vadd.f32 %v6062_v43, %v6061_v41  ;;  %v6064_v45 = vpop.f32.mrb[14].mxu0  ;;  %v6780_v41 = vld [vmem:[#allocation16 + $0x20] sm:$0xff]   ;;  %v6782_v43 = vld [vmem:[#allocation16 + $0x68] sm:$0xff]  }
 0x6cf   : > { %v6065_v46 = vpop.f32.mrb[15].mxu0 }
 0x6d0   : > { %v3024_v47 = vadd.f32 %v6063_v44, %v5666_v42  ;;  %v6066_v48 = vadd.f32 %v6065_v46, %v6064_v45  ;;  %v6785_v44 = vld [vmem:[#allocation16 + $0xe8] sm:$0xff]  }
 0x6d1   : > { %v6784_v45 = vld [vmem:[#allocation16 + $0x28] sm:$0xff]  }
 0x6d2   : > { %v3027_v49 = vadd.f32 %v6066_v48, %v5666_v42  ;;  %v3065_v50 = vadd.f32 %v6085_v37, %v3024_v47  ;;  %v6776_v37 = vld [vmem:[#allocation16 + $0x18] sm:$0xff]   ;;  %v6783_v42 = vld [vmem:[#allocation16 + $0xa0] sm:$0xff]   ;;  %v6787_v46 = vld [vmem:[#allocation16 + $0xa8] sm:$0xff]  }
 0x6d3   : > { %v6786_v47 = vld [vmem:[#allocation16 + $0x70] sm:$0xff]  }
 0x6d4   : > { %v3068_v10 = vadd.f32 %v6088_v40, %v3027_v49  ;;  %v6781_v40 = vld [vmem:[#allocation16 + $0xe0] sm:$0xff]   ;;  %v6789_v48 = vld [vmem:[#allocation16 + $0xf0] sm:$0xff]  }
 0x6d5   : > { %v6788_v49 = vld [vmem:[#allocation16 + $0x30] sm:$0xff]  }
 0x6e2   : > { %v6127_v51 = vpop.f32.mrb[24].mxu1 }
 0x6e3   : > { %v6128_v62 = vpop.f32.mrb[25].mxu1 }
 0x6e4   : > { %v6129_v52 = vadd.f32 %v6128_v62, %v6127_v51  ;;  %v6130_v53 = vpop.f32.mrb[26].mxu1  ;;  %v6792_v51 = vld [vmem:[#allocation16 + $0x38] sm:$0xff]  }
 0x6e5   : > { %v6131_v54 = vpop.f32.mrb[27].mxu1 }
 0x6e6   : > { %v6132_v55 = vadd.f32 %v6131_v54, %v6130_v53  ;;  %v6794_v53 = vld [vmem:[#allocation16 + $0xb8] sm:$0xff]   ;;  %v6795_v54 = vld [vmem:[#allocation16 + $0x140] sm:$0xff]  }
 0x6ea   : > { %v3246_v56 = vpop.f32.mrb[28].mxu1 }
 0x6eb   : > { %v6399_v57 = vpop.f32.mrb[29].mxu1 }
 0x6ec   : > { %v6105_v60 = vpop.f32.mrb[16].mxu0  ;;  %v3249_v63 = vpop.f32.mrb[30].mxu1  ;;  %v6797_v57 = vld [vmem:[#allocation16 + $0x1c0] sm:$0xff]  }
 0x6ed   : > { %v6106_v1 = vpop.f32.mrb[17].mxu0  ;;  %v3253_v2 = vpack.c.bf16 %v3249_v63, %v3246_v56  ;;  %v6400_v3 = vpop.f32.mrb[31].mxu1 }
 0x6ee   : > { %v6107_v4 = vadd.f32 %v6106_v1, %v6105_v60  ;;  %v6108_v5 = vpop.f32.mrb[18].mxu0 }
 0x6ef   : > { %v6109_v8 = vpop.f32.mrb[19].mxu0  ;;  %6410 = vmatmul.mubr.msk.bf16.vlgmr.msra.gmra.mrb[20].mxu0 %vm655_vm6, %v3253_v2 }
 0x6f0   : > { %v3106_v61 = vadd.f32 %v6107_v4, %v3065_v50  ;;  %v6110_v9 = vadd.f32 %v6109_v8, %v6108_v5  ;;  %6172 = vmatpush3.bf16.msra.mxu0 %v6767_v28  ;;  %v6791_v50 = vld [vmem:[#allocation16 + $0xb0] sm:$0xff]  }
 0x6f1   : > { %6173 = vmatprep.subr.bf16.mxu0 %v6769_v6 }
 0x6f2   : > { %v3109_v11 = vadd.f32 %v6110_v9, %v3068_v10  ;;  %v3147_v12 = vadd.f32 %v6129_v52, %v3106_v61  ;;  %v6790_v10 = vld [vmem:[#allocation16 + $0x78] sm:$0xff]  }
 0x6f3   : > { %v6793_v52 = vld [vmem:[#allocation16 + $0xf8] sm:$0xff]  }
 0x6f4   : > { %v3150_v13 = vadd.f32 %v6132_v55, %v3109_v11  ;;  %v6453_v59 = vadd.f32 %v3147_v12, %v7648_v18  ;;  %6174 = vmatpush3.bf16.msra.mxu0 %v6771_v30 }
 0x6f5   : > { %6175 = vmatprep.subr.bf16.mxu0 %v6773_v32 }
 0x6f6   : > { %v6455_v17 = vadd.f32 %v3150_v13, %v7651_v22  ;;  %v6764_v22 = vld [vmem:[#allocation16] sm:$0xff]  }
 0x6f7   : > { %6150 = vmatpush3.bf16.msra.mxu1 %v6764_v22 }
 0x6f8   : > { %6151 = vmatprep.subr.bf16.mxu1 %v6766_v7  ;;  %6176 = vmatpush3.bf16.msra.mxu0 %v6775_v34 }
 0x6f9   : > { %6177 = vmatprep.subr.bf16.mxu0 %v6777_v36 }
 0x6fb   : > { %6152 = vmatpush3.bf16.msra.mxu1 %v6768_v29 }
 0x6fc   : > { %6153 = vmatprep.subr.bf16.mxu1 %v6770_v31  ;;  %6178 = vmatpush3.bf16.msra.mxu0 %v6779_v38 }
 0x6fd   : > { %6179 = vmatprep.subr.bf16.mxu0 %v6781_v40 }
 0x6ff   : > { %6154 = vmatpush3.bf16.msra.mxu1 %v6772_v33 }
 0x700   : > { %6155 = vmatprep.subr.bf16.mxu1 %v6774_v35  ;;  %6180 = vmatpush3.bf16.msra.mxu0 %v6783_v42 }
 0x701   : > { %6181 = vmatprep.subr.bf16.mxu0 %v6785_v44 }
 0x703   : > { %6156 = vmatpush3.bf16.msra.mxu1 %v6776_v37 }
 0x704   : > { %6157 = vmatprep.subr.bf16.mxu1 %v6778_v39  ;;  %6182 = vmatpush3.bf16.msra.mxu0 %v6787_v46 }
 0x705   : > { %6183 = vmatprep.subr.bf16.mxu0 %v6789_v48 }
 0x707   : > { %6158 = vmatpush3.bf16.msra.mxu1 %v6780_v41 }
 0x708   : > { %6159 = vmatprep.subr.bf16.mxu1 %v6782_v43  ;;  %6184 = vmatpush3.bf16.msra.mxu0 %v6791_v50 }
 0x709   : > { %6185 = vmatprep.subr.bf16.mxu0 %v6793_v52 }
 0x70b   : > { %6160 = vmatpush3.bf16.msra.mxu1 %v6784_v45 }
 0x70c   : > { %6161 = vmatprep.subr.bf16.mxu1 %v6786_v47  ;;  %6186 = vmatpush3.bf16.msra.mxu0 %v6794_v53 }
 0x70d   : > { %6215 = vmatprep.subr.bf16.mxu0 %v6797_v57 }
 0x70f   : > { %6162 = vmatpush3.bf16.msra.mxu1 %v6788_v49 }
 0x710   : > { %6163 = vmatprep.subr.bf16.mxu1 %v6790_v10 }
 0x713   : > { %6164 = vmatpush3.bf16.msra.mxu1 %v6792_v51 }
 0x714   : > { %6193 = vmatprep.subr.bf16.mxu1 %v6795_v54 }
 0x7c2   : > { %v3323_v14 = vpop.f32.mrb[20].mxu0 }
 0x7c3   : > { %v7826_v15 = vadd.f32 %v6453_v59, %v3323_v14  ;;  %v6411_v16 = vpop.f32.mrb[21].mxu0 }
 0x7c4   : > { %v3326_v19 = vpop.f32.mrb[22].mxu0 }
 0x7c5   : > { %v3332_v20 = vmax.f32 %v7826_v15, 0.0  ;;  %v7830_v21 = vadd.f32 %v6455_v17, %v3326_v19  ;;  %v6412_v58 = vpop.f32.mrb[23].mxu0 }
 0x7c7   : > { %v3336_v23 = vrot.slane %v3332_v20, 7  ;;  %v3333_v24 = vmax.f32 %v7830_v21, 0.0 }
 0x7c9   : > { %v3337_v25 = vrot.slane %v3333_v24, 7  ;;  %3339 = vrot.lane.b32.xlu1 %v3336_v23, %s7210_s2 }
 0x7cb   : > { %v3338_v18 = vsel %vm1148_vm14, %v3336_v23, %v3337_v25 }
 0x7cc   : > { %3341 = vrot.lane.b32.xlu0 %v3338_v18, %s7210_s2 }
 0x7cd   : > { %3343 = vrot.lane.b32.xlu1 %v3337_v25, %s7210_s2 }
 0x83b   : > { %v3340_v62 = vpop.permute.xlu1 %3339 }
 0x83c   : > { %3349 = vst.msk [vmem:[#allocation3 + $0x8] sm:$0xfe] %vm1163_vm0, %v3340_v62 }
 0x83d   : > { %3348 = vst.msk [vmem:[#allocation3] sm:$0xfe] %vm1161_vm15, %v3340_v62 }
 0x83e   : > { %v3342_v55 = vpop.permute.xlu0 %3341 }
 0x83f   : > { %3351 = vst.msk [vmem:[#allocation3 + $0x18] sm:$0xff] %vm618_vm9, %v3342_v55  ;;  %v3344_v56 = vpop.permute.xlu1 %3343 }
 0x840   : > { %3350 = vst.msk [vmem:[#allocation3 + $0x10] sm:$0xff] %vm1165_vm1, %v3342_v55 }
 0x841   : > { %3352 = vst.msk [vmem:[#allocation3 + $0x20] sm:$0x1] %vm1168_vm2, %v3344_v56 }
 0x842   : > { %3353 = vst.msk [vmem:[#allocation3 + $0x28] sm:$0x1] %vm1170_vm3, %v3344_v56 }
 0x843   : > { %v3359_v60 = vld [vmem:[#allocation3 + $0x8] sm:$0xff] }
 0x844   : > { %v3358_v63 = vld [vmem:[#allocation3] sm:$0xff]  ;;  %v3449_v2 = vld [vmem:[#allocation3 + $0x8] sm:$0xfe] }
 0x845   : > { %v3388_v1 = vld [vmem:[#allocation3] sm:$0xfe]  ;;  %v3408_v7 = vld [vmem:[#allocation3 + $0x8] sm:$0xfe] }
 0x846   : > { %v7843_v3 = vld [vmem:[#allocation3 + $0x18] sm:$0xff]  ;;  %v3448_v5 = vld [vmem:[#allocation3] sm:$0xfe]  ;;  %v3502_v44 = vld [vmem:[#allocation3 + $0x8] sm:$0xfc] }
 0x847   : > { %v7845_v4 = vld [vmem:[#allocation3 + $0x10] sm:$0xff]  ;;  %v3363_v8 = vpack.c.bf16 %v7843_v3, %v3359_v60  ;;  %v3455_v13 = vpack.c.bf16 %v7843_v3, %v3449_v2  ;;  %v3414_v30 = vpack.c.bf16 %v7843_v3, %v3408_v7  ;;  %v3407_v39 = vld [vmem:[#allocation3] sm:$0xfe]  ;;  %v3508_v49 = vpack.c.bf16 %v7843_v3, %v3502_v44  ;;  %v6804_v44 = vld [vmem:[#allocation16 + $0x110] sm:$0xff]  }
 0x848   : > { %v7849_v61 = vpack.c.bf16 %v7845_v4, %v3358_v63  ;;  %v3390_v9 = vld [vmem:[#allocation3 + $0x20] sm:$0x1]  ;;  %v3391_v11 = vpack.c.bf16 %v7845_v4, %v3388_v1  ;;  %v3454_v17 = vpack.c.bf16 %v7845_v4, %v3448_v5  ;;  %v3413_v43 = vpack.c.bf16 %v7845_v4, %v3407_v39  ;;  %v3501_v56 = vld [vmem:[#allocation3] sm:$0xfc] }
 0x849   : > { %v3453_v12 = vld [vmem:[#allocation3 + $0x28] sm:$0x1]  ;;  %v3452_v59 = vld [vmem:[#allocation3 + $0x20] sm:$0x1]  ;;  %v3392_v14 = vpack.c.bf16 %v3390_v9, %v3390_v9  ;;  %3368 = vrot.lane.b32.xlu1 %v3363_v8, %s7208_s23  ;;  %v3471_v23 = vshrl.u32 %v3455_v13, 16  ;;  %v3473_v24 = vshll.u32 %v3455_v13, 16  ;;  %v3507_v1 = vpack.c.bf16 %v7845_v4, %v3501_v56 }
 0x84a   : > { %v3457_v16 = vpack.c.bf16 %v3453_v12, %v3453_v12  ;;  %v3456_v19 = vpack.c.bf16 %v3452_v59, %v3452_v59  ;;  %3366 = vrot.lane.b32.xlu0 %v7849_v61, %s7208_s23  ;;  %v3394_v20 = vshrl.u32 %v3391_v11, 16  ;;  %v3396_v58 = vshll.u32 %v3391_v11, 16  ;;  %v3412_v25 = vld [vmem:[#allocation3 + $0x28] sm:$0x1]  ;;  %v3411_v35 = vld [vmem:[#allocation3 + $0x20] sm:$0x1] }
 0x84b   : > { %v3401_v18 = vshll.u32 %v3392_v14, 16  ;;  %v3459_v22 = vshrl.u32 %v3454_v17, 16  ;;  %v3461_v27 = vshll.u32 %v3454_v17, 16  ;;  %v3475_v6 = vrot.slane %v3473_v24, 1  ;;  %v3506_v45 = vld [vmem:[#allocation3 + $0x28] sm:$0x3] }
 0x84c   : > { %v3478_v26 = vshll.u32 %v3457_v16, 16  ;;  %v3398_v28 = vrot.slane %v3396_v58, 1  ;;  %v3466_v29 = vshll.u32 %v3456_v19, 16  ;;  %v3416_v34 = vpack.c.bf16 %v3412_v25, %v3412_v25  ;;  %v3505_v52 = vld [vmem:[#allocation3 + $0x20] sm:$0x3] }
 0x84d   : > { %v3403_v31 = vrot.slane %v3401_v18, 1  ;;  %v3463_v33 = vrot.slane %v3461_v27, 1  ;;  %3383 = vrot.lane.b32.xlu1 %v3363_v8, %s7211_s17  ;;  %v3476_v37 = vor.u32 %v3475_v6, %v3471_v23  ;;  %v3432_v41 = vshll.u32 %v3414_v30, 16  ;;  %v3533_v57 = vld [vmem:[#allocation3 + $0x28] sm:$0x3] }
 0x84e   : > { %v3480_v32 = vrot.slane %v3478_v26, 1  ;;  %3381 = vrot.lane.b32.xlu0 %v7849_v61, %s7211_s17  ;;  %v3399_v36 = vor.u32 %v3398_v28, %v3394_v20  ;;  %v3468_v38 = vrot.slane %v3466_v29, 1  ;;  %v3437_v42 = vshll.u32 %v3416_v34, 16  ;;  %v3529_v11 = vld [vmem:[#allocation3 + $0x8] sm:$0xfc]  ;;  %v6799_v34 = vld [vmem:[#allocation16 + $0x180] sm:$0xff]  }
 0x84f   : > { %v3464_v40 = vor.u32 %v3463_v33, %v3459_v22  ;;  %v3415_v48 = vpack.c.bf16 %v3411_v35, %v3411_v35  ;;  %v3430_v10 = vshrl.u32 %v3414_v30, 16  ;;  %v3434_v51 = vrot.slane %v3432_v41, 1  ;;  %v3532_v16 = vld [vmem:[#allocation3 + $0x20] sm:$0x3]  ;;  %v3528_v20 = vld [vmem:[#allocation3] sm:$0xfc] }
 0x850   : > { %v3404_v46 = vsel %vm1213_vm4, %v3399_v36, %v3403_v31  ;;  %v3481_v47 = vsel %vm1213_vm4, %v3476_v37, %v3480_v32  ;;  %v3439_v62 = vrot.slane %v3437_v42, 1  ;;  %v3420_v53 = vshll.u32 %v3413_v43, 16  ;;  %v6796_v31 = vld [vmem:[#allocation16 + $0x100] sm:$0xff]   ;;  %v6798_v33 = vld [vmem:[#allocation16 + $0x148] sm:$0xff]  }
 0x851   : > { %4220 = vmatprep.mubr.bf16.mxu0 %v3404_v46  ;;  %v3469_v50 = vsel %vm1213_vm4, %v3464_v40, %v3468_v38  ;;  %3484 = vrot.lane.b32.xlu1 %v3481_v47, %s7211_s17  ;;  %v3425_v54 = vshll.u32 %v3415_v48, 16  ;;  %v3510_v55 = vpack.c.bf16 %v3506_v45, %v3506_v45  ;;  %v3435_v60 = vor.u32 %v3434_v51, %v3430_v10  ;;  %v6800_v37 = vld [vmem:[#allocation16 + $0x108] sm:$0xff]   ;;  %v6802_v40 = vld [vmem:[#allocation16 + $0x150] sm:$0xff]   ;;  %v6806_v46 = vld [vmem:[#allocation16 + $0x158] sm:$0xff]  }
 0x852   : > { %3482 = vrot.lane.b32.xlu0 %v3469_v50, %s7211_s17  ;;  %v3418_v63 = vshrl.u32 %v3413_v43, 16  ;;  %v3422_v2 = vrot.slane %v3420_v53, 1  ;;  %v3518_v8 = vrot.slane %v3508_v49, 1  ;;  %v3509_v9 = vpack.c.bf16 %v3505_v52, %v3505_v52  ;;  %v6801_v38 = vld [vmem:[#allocation16 + $0x1c8] sm:$0xff]   ;;  %v6805_v45 = vld [vmem:[#allocation16 + $0x1d0] sm:$0xff]   ;;  %v6808_v49 = vld [vmem:[#allocation16 + $0x118] sm:$0xff]  }
 0x853   : > { %v3427_v5 = vrot.slane %v3425_v54, 1  ;;  %v3440_v12 = vsel %vm1213_vm4, %v3435_v60, %v3439_v62  ;;  %v3519_v13 = vrot.slane %v3510_v55, 1  ;;  %v3535_v59 = vpack.c.bf16 %v7843_v3, %v3529_v11  ;;  %v6803_v41 = vld [vmem:[#allocation16 + $0x188] sm:$0xff]   ;;  %v6807_v47 = vld [vmem:[#allocation16 + $0x190] sm:$0xff]   ;;  %v6809_v50 = vld [vmem:[#allocation16 + $0x1d8] sm:$0xff]  }
 0x854   : > { %v3537_v14 = vpack.c.bf16 %v3533_v57, %v3533_v57  ;;  %v3423_v17 = vor.u32 %v3422_v2, %v3418_v63  ;;  %v3515_v19 = vrot.slane %v3507_v1, 1  ;;  %v3516_v23 = vrot.slane %v3509_v9, 1  ;;  %v6810_v10 = vld [vmem:[#allocation16 + $0x160] sm:$0xff]   ;;  %v6811_v62 = vld [vmem:[#allocation16 + $0x198] sm:$0xff]   ;;  %v6814_v55 = vld [vmem:[#allocation16 + $0x168] sm:$0xff]  }
 0x855   : > { %3443 = vrot.lane.b32.xlu1 %v3440_v12, %s7208_s23  ;;  %v3534_v24 = vpack.c.bf16 %v7845_v4, %v3528_v20  ;;  %v3536_v25 = vpack.c.bf16 %v3532_v16, %v3532_v16  ;;  %v3520_v18 = vsel %vm1317_vm5, %v3518_v8, %v3519_v13  ;;  %v3545_v26 = vrot.slane %v3535_v59, 1  ;;  %v6812_v52 = vld [vmem:[#allocation16 + $0x120] sm:$0xff]   ;;  %v6816_v63 = vld [vmem:[#allocation16 + $0x128] sm:$0xff]   ;;  %v6818_v2 = vld [vmem:[#allocation16 + $0x170] sm:$0xff]  }
 0x856   : > { %v3428_v58 = vsel %vm1213_vm4, %v3423_v17, %v3427_v5  ;;  %v3546_v22 = vrot.slane %v3537_v14, 1  ;;  %v3517_v3 = vsel %vm1317_vm5, %v3515_v19, %v3516_v23  ;;  %v6813_v53 = vld [vmem:[#allocation16 + $0x1e0] sm:$0xff]   ;;  %v6817_v1 = vld [vmem:[#allocation16 + $0x1e8] sm:$0xff]   ;;  %v6820_v8 = vld [vmem:[#allocation16 + $0x130] sm:$0xff]  }
 0x857   : > { %3441 = vrot.lane.b32.xlu0 %v3428_v58, %s7208_s23  ;;  %v3542_v27 = vrot.slane %v3534_v24, 1  ;;  %v3543_v7 = vrot.slane %v3536_v25, 1  ;;  %v6815_v57 = vld [vmem:[#allocation16 + $0x1a0] sm:$0xff]   ;;  %v6819_v5 = vld [vmem:[#allocation16 + $0x1a8] sm:$0xff]   ;;  %v6821_v9 = vld [vmem:[#allocation16 + $0x1f0] sm:$0xff]  }
 0x858   : > { %v3547_v28 = vsel %vm1317_vm5, %v3545_v26, %v3546_v22  ;;  %v6822_v11 = vld [vmem:[#allocation16 + $0x178] sm:$0xff]   ;;  %v3491_v12 = vld [vmem:[#allocation3 + $0x20] sm:$0x3]  ;;  %v6823_v13 = vld [vmem:[#allocation16 + $0x1b0] sm:$0xff]  }
 0x859   : > { %3523 = vrot.lane.b32.xlu1 %v3520_v18, %s7208_s23  ;;  %v3544_v6 = vsel %vm1317_vm5, %v3542_v27, %v3543_v7  ;;  %v6824_v59 = vld [vmem:[#allocation16 + $0x138] sm:$0xff]   ;;  %v3489_v16 = vld [vmem:[#allocation3] sm:$0xfc]  ;;  %v3493_v19 = vpack.c.bf16 %v3491_v12, %v3491_v12  ;;  %v6827_v58 = vld [vmem:[#allocation16 + $0x200] sm:$0xff]  }
 0x85a   : > { %v6825_v14 = vld [vmem:[#allocation16 + $0x1f8] sm:$0xff]   ;;  %v3492_v17 = vpack.c.bf16 %v7845_v4, %v3489_v16  ;;  %v6828_v18 = vld [vmem:[#allocation16 + $0x208] sm:$0xff]   ;;  %v6829_v26 = vld [vmem:[#allocation16 + $0x210] sm:$0xff]  }
 0x85b   : > { %3521 = vrot.lane.b32.xlu0 %v3517_v3, %s7208_s23  ;;  %v6826_v20 = vld [vmem:[#allocation16 + $0x1b8] sm:$0xff]   ;;  %v3497_v24 = vrot.slane %v3493_v19, 1  ;;  %v6831_v3 = vld [vmem:[#allocation16 + $0x220] sm:$0xff]   ;;  %v6832_v27 = vld [vmem:[#allocation16 + $0x228] sm:$0xff]  }
 0x85c   : > { %v3496_v23 = vrot.slane %v3492_v17, 1  ;;  %v6830_v22 = vld [vmem:[#allocation16 + $0x218] sm:$0xff]   ;;  %v6833_v7 = vld [vmem:[#allocation16 + $0x230] sm:$0xff]   ;;  %v6835_v19 = vld [vmem:[#allocation18 + $0x40] sm:$0xff]  }
 0x85d   : > { %3550 = vrot.lane.b32.xlu1 %v3547_v28, %s7211_s17  ;;  %v6834_v28 = vld [vmem:[#allocation16 + $0x238] sm:$0xff]  }
 0x85e   : > { %v3498_v4 = vsel %vm1317_vm5, %v3496_v23, %v3497_v24  ;;  %v6838_v23 = vld [vmem:[#allocation18 + $0x48] sm:$0xff]   ;;  %v6839_v24 = vld [vmem:[#allocation18 + $0x80] sm:$0xff]  }
 0x85f   : > { %3548 = vrot.lane.b32.xlu0 %v3544_v6, %s7211_s17 }
 0x8bb   : > { %v3369_v29 = vpop.permute.xlu1 %3368 }
 0x8bc   : > { %v3367_v30 = vpop.permute.xlu0 %3366 }
 0x8bd   : > { %v3370_v32 = vsel %vm1188_vm7, %v3367_v30, %v3369_v29 }
 0x8be   : > { %4179 = vmatprep.mubr.bf16.mxu1 %v3370_v32  ;;  %v5746_v32 = vld [vmem:[%s8090_s20] ss:$0 sm:$0xff] }
 0x8bf   : > { %4180 = vmatmul.mubr.bf16.vlgmr.msra.gmra.mrb[32].mxu1 %v7849_v61  ;;  %v3384_v35 = vpop.permute.xlu1 %3383 }
 0x8c0   : > { %6194 = vmatpush3.bf16.msra.mxu1 %v6796_v31  ;;  %v3382_v36 = vpop.permute.xlu0 %3381 }
 0x8c1   : > { %v3385_v39 = vsel %vm1204_vm10, %v3382_v36, %v3384_v35  ;;  %6195 = vmatprep.subr.bf16.mxu1 %v6798_v33 }
 0x8c2   : > { %4221 = vmatmul.mubr.bf16.vlgmr.msra.gmra.mrb[24].mxu0 %v3385_v39 }
 0x8c3   : > { %6216 = vmatpush3.bf16.msra.mxu0 %v6799_v34  ;;  %v3485_v42 = vpop.permute.xlu1 %3484 }
 0x8c4   : > { %6196 = vmatpush3.bf16.msra.mxu1 %v6800_v37  ;;  %v3483_v43 = vpop.permute.xlu0 %3482  ;;  %6217 = vmatprep.subr.bf16.mxu0 %v6801_v38 }
 0x8c5   : > { %6197 = vmatprep.subr.bf16.mxu1 %v6802_v40  ;;  %v3486_v61 = vsel %vm1204_vm10, %v3483_v43, %v3485_v42 }
 0x8c6   : > { %4261 = vmatprep.mubr.bf16.mxu1 %v3486_v61 }
 0x8c7   : > { %6218 = vmatpush3.bf16.msra.mxu0 %v6803_v41  ;;  %v3444_v48 = vpop.permute.xlu1 %3443 }
 0x8c8   : > { %6198 = vmatpush3.bf16.msra.mxu1 %v6804_v44  ;;  %6219 = vmatprep.subr.bf16.mxu0 %v6805_v45 }
 0x8c9   : > { %6199 = vmatprep.subr.bf16.mxu1 %v6806_v46  ;;  %v3442_v51 = vpop.permute.xlu0 %3441 }
 0x8ca   : > { %v3445_v25 = vsel %vm1188_vm7, %v3442_v51, %v3444_v48 }
 0x8cb   : > { %6220 = vmatpush3.bf16.msra.mxu0 %v6807_v47  ;;  %v3524_v54 = vpop.permute.xlu1 %3523 }
 0x8cc   : > { %6200 = vmatpush3.bf16.msra.mxu1 %v6808_v49  ;;  %6221 = vmatprep.subr.bf16.mxu0 %v6809_v50 }
 0x8cd   : > { %6201 = vmatprep.subr.bf16.mxu1 %v6810_v10  ;;  %v3522_v56 = vpop.permute.xlu0 %3521 }
 0x8ce   : > { %v3525_v60 = vsel %vm1188_vm7, %v3522_v56, %v3524_v54 }
 0x8cf   : > { %6222 = vmatpush3.bf16.msra.mxu0 %v6811_v62  ;;  %4302 = vmatprep.mubr.bf16.mxu0 %v3525_v60  ;;  %v3551_v6 = vpop.permute.xlu1 %3550 }
 0x8d0   : > { %6202 = vmatpush3.bf16.msra.mxu1 %v6812_v52  ;;  %6223 = vmatprep.subr.bf16.mxu0 %v6813_v53 }
 0x8d1   : > { %6203 = vmatprep.subr.bf16.mxu1 %v6814_v55  ;;  %v3549_v29 = vpop.permute.xlu0 %3548 }
 0x8d2   : > { %v3552_v30 = vsel %vm1204_vm10, %v3549_v29, %v3551_v6  ;;  %v6848_v6 = vld [vmem:[#allocation18 + $0x18] sm:$0xff]  }
 0x8d3   : > { %6224 = vmatpush3.bf16.msra.mxu0 %v6815_v57  ;;  %v6851_v29 = vld [vmem:[#allocation18 + $0x98] sm:$0xff]  }
 0x8d4   : > { %6204 = vmatpush3.bf16.msra.mxu1 %v6816_v63  ;;  %6225 = vmatprep.subr.bf16.mxu0 %v6817_v1 }
 0x8d5   : > { %6205 = vmatprep.subr.bf16.mxu1 %v6818_v2 }
 0x8d7   : > { %6226 = vmatpush3.bf16.msra.mxu0 %v6819_v5 }
 0x8d8   : > { %6206 = vmatpush3.bf16.msra.mxu1 %v6820_v8  ;;  %6227 = vmatprep.subr.bf16.mxu0 %v6821_v9 }
 0x8d9   : > { %6207 = vmatprep.subr.bf16.mxu1 %v6822_v11 }
 0x8db   : > { %6228 = vmatpush3.bf16.msra.mxu0 %v6823_v13 }
 0x8dc   : > { %6208 = vmatpush3.bf16.msra.mxu1 %v6824_v59  ;;  %6229 = vmatprep.subr.bf16.mxu0 %v6825_v14 }
 0x8dd   : > { %6413 = vmatprep.subr.bf16.mxu1 %v7202_v0 }
 0x8df   : > { %4262 = vmatmul.mubr.bf16.vlgmr.msra.gmra.mrb[36].mxu1 %v3445_v25  ;;  %6230 = vmatpush3.bf16.msra.mxu0 %v6826_v20  ;;  %v6836_v20 = vld [vmem:[#allocation18] sm:$0xff]   ;;  %v6841_v25 = vld [vmem:[#allocation18 + $0xc8] sm:$0xff]  }
 0x8e0   : > { %6414 = vmatpush3.bf16.msra.mxu1 %v6827_v58  ;;  %6429 = vmatprep.mubr.msk.bf16.mxu1 %vm7209_vm8, %v7202_v0  ;;  %v6837_v58 = vld [vmem:[#allocation18 + $0xc0] sm:$0xff]  }
 0x8e1   : > { %6415 = vmatprep.subr.bf16.mxu1 %v7202_v0  ;;  %6246 = vmatprep.subr.bf16.mxu0 %v6835_v19 }
 0x8e2   : > { %4303 = vmatmul.mubr.bf16.vlgmr.msra.gmra.mrb[28].mxu0 %v3498_v4  ;;  %v6843_v4 = vld [vmem:[#allocation18 + $0x88] sm:$0xff]  }
 0x8e3   : > { %6247 = vmatpush3.bf16.msra.mxu0 %v6836_v20 }
 0x8e4   : > { %6416 = vmatpush3.bf16.msra.mxu1 %v6828_v18  ;;  %v6840_v18 = vld [vmem:[#allocation18 + $0x8] sm:$0xff]   ;;  %6248 = vmatprep.subr.bf16.mxu0 %v6838_v23 }
 0x8e5   : > { %6417 = vmatprep.subr.bf16.mxu1 %v7202_v0 }
 0x8e7   : > { %6249 = vmatpush3.bf16.msra.mxu0 %v6840_v18 }
 0x8e8   : > { %6418 = vmatpush3.bf16.msra.mxu1 %v6829_v26  ;;  %v6842_v26 = vld [vmem:[#allocation18 + $0x50] sm:$0xff]  }
 0x8e9   : > { %6419 = vmatprep.subr.bf16.mxu1 %v7202_v0  ;;  %6250 = vmatprep.subr.bf16.mxu0 %v6842_v26 }
 0x8ec   : > { %6420 = vmatpush3.bf16.msra.mxu1 %v6830_v22  ;;  %v6845_v22 = vld [vmem:[#allocation18 + $0xd0] sm:$0xff]  }
 0x8ed   : > { %6421 = vmatprep.subr.bf16.mxu1 %v7202_v0 }
 0x8f0   : > { %6422 = vmatpush3.bf16.msra.mxu1 %v6831_v3  ;;  %v6844_v3 = vld [vmem:[#allocation18 + $0x10] sm:$0xff]  }
 0x8f1   : > { %6423 = vmatprep.subr.bf16.mxu1 %v7202_v0  ;;  %6251 = vmatpush3.bf16.msra.mxu0 %v6844_v3 }
 0x8f4   : > { %6424 = vmatpush3.bf16.msra.mxu1 %v6832_v27  ;;  %v6847_v27 = vld [vmem:[#allocation18 + $0x90] sm:$0xff]  }
 0x8f5   : > { %6425 = vmatprep.subr.bf16.mxu1 %v7202_v0 }
 0x8f8   : > { %6426 = vmatpush3.bf16.msra.mxu1 %v6833_v7  ;;  %v6846_v7 = vld [vmem:[#allocation18 + $0x58] sm:$0xff]  }
 0x8f9   : > { %6427 = vmatprep.subr.bf16.mxu1 %v7202_v0  ;;  %6252 = vmatprep.subr.bf16.mxu0 %v6846_v7 }
 0x8fa   : > { %6253 = vmatpush3.bf16.msra.mxu0 %v6848_v6 }
 0x8fc   : > { %6428 = vmatpush3.bf16.msra.mxu1 %v6834_v28  ;;  %v6849_v28 = vld [vmem:[#allocation18 + $0xd8] sm:$0xff]  }
 0x8fd   : > { %6268 = vmatprep.subr.bf16.mxu1 %v6837_v58 }
 0x8ff   : > { %6430 = vmatmul.mubr.bf16.vlgmr.msra.gmra.mrb[40].mxu1 %v3552_v30  ;;  %v6850_v30 = vld [vmem:[#allocation18 + $0x60] sm:$0xff]  }
 0x900   : > { %6269 = vmatpush3.bf16.msra.mxu1 %v6839_v24  ;;  %6254 = vmatprep.subr.bf16.mxu0 %v6850_v30 }
 0x901   : > { %6270 = vmatprep.subr.bf16.mxu1 %v6841_v25 }
 0x904   : > { %6271 = vmatpush3.bf16.msra.mxu1 %v6843_v4 }
 0x905   : > { %6272 = vmatprep.subr.bf16.mxu1 %v6845_v22 }
 0x908   : > { %6273 = vmatpush3.bf16.msra.mxu1 %v6847_v27 }
 0x909   : > { %6274 = vmatprep.subr.bf16.mxu1 %v6849_v28 }
 0x90c   : > { %6275 = vmatpush3.bf16.msra.mxu1 %v6851_v29 }
 0x992   : > { %v6165_v31 = vpop.f32.mrb[32].mxu1 }
 0x993   : > { %v6166_v33 = vpop.f32.mrb[33].mxu1 }
 0x994   : > { %v6167_v34 = vadd.f32 %v6166_v33, %v6165_v31  ;;  %v6168_v35 = vpop.f32.mrb[34].mxu1  ;;  %v6853_v31 = vld [vmem:[#allocation18 + $0xe0] sm:$0xff]  }
 0x995   : > { %v6169_v36 = vpop.f32.mrb[35].mxu1  ;;  %v6187_v37 = vpop.f32.mrb[24].mxu0  ;;  %v6855_v33 = vld [vmem:[#allocation18 + $0xa0] sm:$0xff]   ;;  %6276 = vmatprep.subr.bf16.mxu1 %v6853_v31 }
 0x996   : > { %v4182_v38 = vadd.f32 %v6167_v34, %v5746_v32  ;;  %v6170_v39 = vadd.f32 %v6169_v36, %v6168_v35  ;;  %v6188_v40 = vpop.f32.mrb[25].mxu0  ;;  %v6854_v34 = vld [vmem:[#allocation18 + $0x68] sm:$0xff]   ;;  %6277 = vmatpush3.bf16.msra.mxu1 %v6855_v33 }
 0x997   : > { %v6189_v41 = vadd.f32 %v6188_v40, %v6187_v37  ;;  %v6190_v42 = vpop.f32.mrb[26].mxu0  ;;  %v6857_v35 = vld [vmem:[#allocation18 + $0xe8] sm:$0xff]   ;;  %v6860_v40 = vld [vmem:[#allocation18 + $0x30] sm:$0xff]  }
 0x998   : > { %v4185_v43 = vadd.f32 %v6170_v39, %v5746_v32  ;;  %v6191_v44 = vpop.f32.mrb[27].mxu0  ;;  %v6852_v32 = vld [vmem:[#allocation18 + $0x20] sm:$0xff]   ;;  %v6856_v36 = vld [vmem:[#allocation18 + $0x28] sm:$0xff]   ;;  %6278 = vmatprep.subr.bf16.mxu1 %v6857_v35  ;;  %v6861_v39 = vld [vmem:[#allocation18 + $0xf0] sm:$0xff]  }
 0x999   : > { %v4223_v45 = vadd.f32 %v6189_v41, %v4182_v38  ;;  %v6192_v61 = vadd.f32 %v6191_v44, %v6190_v42  ;;  %6255 = vmatpush3.bf16.msra.mxu0 %v6852_v32  ;;  %v6859_v37 = vld [vmem:[#allocation18 + $0xa8] sm:$0xff]   ;;  %v6858_v38 = vld [vmem:[#allocation18 + $0x70] sm:$0xff]   ;;  %v6862_v42 = vld [vmem:[#allocation18 + $0x78] sm:$0xff]  }
 0x99a   : > { %6256 = vmatprep.subr.bf16.mxu0 %v6854_v34  ;;  %6279 = vmatpush3.bf16.msra.mxu1 %v6859_v37  ;;  %v6863_v41 = vld [vmem:[#allocation18 + $0xb0] sm:$0xff]  }
 0x99b   : > { %v4226_v46 = vadd.f32 %v6192_v61, %v4185_v43  ;;  %6280 = vmatprep.subr.bf16.mxu1 %v6861_v39  ;;  %v6864_v43 = vld [vmem:[#allocation18 + $0x38] sm:$0xff]  }
 0x99c   : > { %v6866_v61 = vld [vmem:[#allocation18 + $0xb8] sm:$0xff]  }
 0x99d   : > { %6257 = vmatpush3.bf16.msra.mxu0 %v6856_v36 }
 0x99e   : > { %6258 = vmatprep.subr.bf16.mxu0 %v6858_v38  ;;  %6281 = vmatpush3.bf16.msra.mxu1 %v6863_v41 }
 0x9a1   : > { %6259 = vmatpush3.bf16.msra.mxu0 %v6860_v40 }
 0x9a2   : > { %6260 = vmatprep.subr.bf16.mxu0 %v6862_v42 }
 0x9a5   : > { %6261 = vmatpush3.bf16.msra.mxu0 %v6864_v43 }
 0x9b2   : > { %v6209_v47 = vpop.f32.mrb[36].mxu1 }
 0x9b3   : > { %v6210_v48 = vpop.f32.mrb[37].mxu1 }
 0x9b4   : > { %v6211_v49 = vadd.f32 %v6210_v48, %v6209_v47  ;;  %v6212_v50 = vpop.f32.mrb[38].mxu1 }
 0x9b5   : > { %v6213_v10 = vpop.f32.mrb[39].mxu1  ;;  %v6231_v51 = vpop.f32.mrb[28].mxu0 }
 0x9b6   : > { %v4264_v62 = vadd.f32 %v6211_v49, %v4223_v45  ;;  %v6214_v52 = vadd.f32 %v6213_v10, %v6212_v50  ;;  %v6232_v53 = vpop.f32.mrb[29].mxu0  ;;  %v6865_v45 = vld [vmem:[#allocation18 + $0xf8] sm:$0xff]   ;;  %v6869_v49 = vld [vmem:[#allocation18 + $0x1c0] sm:$0xff]  }
 0x9b7   : > { %v6233_v54 = vadd.f32 %v6232_v53, %v6231_v51  ;;  %v6234_v55 = vpop.f32.mrb[30].mxu0  ;;  %6282 = vmatprep.subr.bf16.mxu1 %v6865_v45 }
 0x9b8   : > { %v4267_v56 = vadd.f32 %v6214_v52, %v4226_v46  ;;  %v6235_v57 = vpop.f32.mrb[31].mxu0  ;;  %v6867_v46 = vld [vmem:[#allocation18 + $0x140] sm:$0xff]   ;;  %6283 = vmatpush3.bf16.msra.mxu1 %v6866_v61 }
 0x9b9   : > { %v6236_v60 = vadd.f32 %v6235_v57, %v6234_v55  ;;  %v4305_v63 = vadd.f32 %v6233_v54, %v4264_v62  ;;  %6290 = vmatprep.subr.bf16.mxu0 %v6867_v46  ;;  %6312 = vmatprep.subr.bf16.mxu1 %v6869_v49 }
 0x9bb   : > { %v4308_v1 = vadd.f32 %v6236_v60, %v4267_v56 }
 0x9d2   : > { %v4345_v2 = vpop.f32.mrb[40].mxu1 }
 0x9d3   : > { %v4346_v5 = vadd.f32 %v4345_v2, %v4305_v63  ;;  %v6431_v8 = vpop.f32.mrb[41].mxu1 }
 0x9d4   : > { %v4348_v9 = vpop.f32.mrb[42].mxu1 }
 0x9d5   : > { %v4352_v11 = vmax.f32 %v4346_v5, 0.0  ;;  %v4349_v12 = vadd.f32 %v4348_v9, %v4308_v1  ;;  %v6432_v13 = vpop.f32.mrb[43].mxu1 }
 0x9d7   : > { %v4356_v59 = vrot.slane %v4352_v11, 7  ;;  %v4353_v14 = vmax.f32 %v4349_v12, 0.0 }
 0x9d9   : > { %v4357_v16 = vrot.slane %v4353_v14, 7  ;;  %4359 = vrot.lane.b32.xlu0 %v4356_v59, %s7210_s2 }
 0x9db   : > { %v4358_v17 = vsel %vm1148_vm14, %v4356_v59, %v4357_v16 }
 0x9dc   : > { %4361 = vrot.lane.b32.xlu1 %v4358_v17, %s7210_s2 }
 0x9dd   : > { %4363 = vrot.lane.b32.xlu0 %v4357_v16, %s7210_s2 }
 0xa4b   : > { %v4360_v44 = vpop.permute.xlu0 %4359 }
 0xa4c   : > { %4369 = vst.msk [vmem:[#allocation4 + $0x8] sm:$0xfe] %vm1163_vm0, %v4360_v44 }
 0xa4d   : > { %4368 = vst.msk [vmem:[#allocation4] sm:$0xfe] %vm1161_vm15, %v4360_v44 }
 0xa4e   : > { %v4362_v47 = vpop.permute.xlu1 %4361 }
 0xa4f   : > { %4371 = vst.msk [vmem:[#allocation4 + $0x18] sm:$0xff] %vm618_vm9, %v4362_v47  ;;  %v4364_v48 = vpop.permute.xlu0 %4363 }
 0xa50   : > { %4370 = vst.msk [vmem:[#allocation4 + $0x10] sm:$0xff] %vm1165_vm1, %v4362_v47 }
 0xa51   : > { %4372 = vst.msk [vmem:[#allocation4 + $0x20] sm:$0x1] %vm1168_vm2, %v4364_v48 }
 0xa52   : > { %4373 = vst.msk [vmem:[#allocation4 + $0x28] sm:$0x1] %vm1170_vm3, %v4364_v48 }
 0xa53   : > { %v4379_v50 = vld [vmem:[#allocation4 + $0x8] sm:$0xff] }
 0xa54   : > { %v4378_v10 = vld [vmem:[#allocation4] sm:$0xff]  ;;  %v4469_v62 = vld [vmem:[#allocation4 + $0x8] sm:$0xfe] }
 0xa55   : > { %v4408_v51 = vld [vmem:[#allocation4] sm:$0xfe]  ;;  %v4428_v23 = vld [vmem:[#allocation4 + $0x8] sm:$0xfe] }
 0xa56   : > { %v7915_v52 = vld [vmem:[#allocation4 + $0x18] sm:$0xff]  ;;  %v4468_v54 = vld [vmem:[#allocation4] sm:$0xfe]  ;;  %v4522_v35 = vld [vmem:[#allocation4 + $0x8] sm:$0xfc] }
 0xa57   : > { %v7917_v53 = vld [vmem:[#allocation4 + $0x10] sm:$0xff]  ;;  %v4383_v55 = vpack.c.bf16 %v7915_v52, %v4379_v50  ;;  %v4475_v1 = vpack.c.bf16 %v7915_v52, %v4469_v62  ;;  %v4434_v4 = vpack.c.bf16 %v7915_v52, %v4428_v23  ;;  %v4427_v30 = vld [vmem:[#allocation4] sm:$0xfe]  ;;  %v4528_v40 = vpack.c.bf16 %v7915_v52, %v4522_v35  ;;  %v6876_v35 = vld [vmem:[#allocation18 + $0x110] sm:$0xff]  }
 0xa58   : > { %v7921_v56 = vpack.c.bf16 %v7917_v53, %v4378_v10  ;;  %v4410_v57 = vld [vmem:[#allocation4 + $0x20] sm:$0x1]  ;;  %v4411_v60 = vpack.c.bf16 %v7917_v53, %v4408_v51  ;;  %v4474_v9 = vpack.c.bf16 %v7917_v53, %v4468_v54  ;;  %v4433_v34 = vpack.c.bf16 %v7917_v53, %v4427_v30  ;;  %v4521_v48 = vld [vmem:[#allocation4] sm:$0xfc] }
 0xa59   : > { %v4473_v63 = vld [vmem:[#allocation4 + $0x28] sm:$0x1]  ;;  %v4472_v2 = vld [vmem:[#allocation4 + $0x20] sm:$0x1]  ;;  %v4412_v5 = vpack.c.bf16 %v4410_v57, %v4410_v57  ;;  %4388 = vrot.lane.b32.xlu0 %v4383_v55, %s7208_s23  ;;  %v4491_v59 = vshrl.u32 %v4475_v1, 16  ;;  %v4493_v14 = vshll.u32 %v4475_v1, 16  ;;  %v4527_v51 = vpack.c.bf16 %v7917_v53, %v4521_v48 }
 0xa5a   : > { %v4477_v8 = vpack.c.bf16 %v4473_v63, %v4473_v63  ;;  %v4476_v11 = vpack.c.bf16 %v4472_v2, %v4472_v2  ;;  %4386 = vrot.lane.b32.xlu1 %v7921_v56, %s7208_s23  ;;  %v4414_v12 = vshrl.u32 %v4411_v60, 16  ;;  %v4416_v13 = vshll.u32 %v4411_v60, 16  ;;  %v4432_v16 = vld [vmem:[#allocation4 + $0x28] sm:$0x1]  ;;  %v4431_v7 = vld [vmem:[#allocation4 + $0x20] sm:$0x1] }
 0xa5b   : > { %v4421_v17 = vshll.u32 %v4412_v5, 16  ;;  %v4479_v20 = vshrl.u32 %v4474_v9, 16  ;;  %v4481_v58 = vshll.u32 %v4474_v9, 16  ;;  %v4495_v25 = vrot.slane %v4493_v14, 1  ;;  %v4526_v36 = vld [vmem:[#allocation4 + $0x28] sm:$0x3] }
 0xa5c   : > { %v4498_v19 = vshll.u32 %v4477_v8, 16  ;;  %v4418_v24 = vrot.slane %v4416_v13, 1  ;;  %v4486_v18 = vshll.u32 %v4476_v11, 16  ;;  %v4436_v27 = vpack.c.bf16 %v4432_v16, %v4432_v16  ;;  %v4525_v45 = vld [vmem:[#allocation4 + $0x20] sm:$0x3] }
 0xa5d   : > { %v4423_v26 = vrot.slane %v4421_v17, 1  ;;  %v4483_v3 = vrot.slane %v4481_v58, 1  ;;  %4403 = vrot.lane.b32.xlu0 %v4383_v55, %s7211_s17  ;;  %v4496_v6 = vor.u32 %v4495_v25, %v4491_v59  ;;  %v4452_v32 = vshll.u32 %v4434_v4, 16  ;;  %v4553_v49 = vld [vmem:[#allocation4 + $0x28] sm:$0x3] }
 0xa5e   : > { %v4500_v22 = vrot.slane %v4498_v19, 1  ;;  %4401 = vrot.lane.b32.xlu1 %v7921_v56, %s7211_s17  ;;  %v4419_v28 = vor.u32 %v4418_v24, %v4414_v12  ;;  %v4488_v29 = vrot.slane %v4486_v18, 1  ;;  %v4457_v33 = vshll.u32 %v4436_v27, 16  ;;  %v4549_v60 = vld [vmem:[#allocation4 + $0x8] sm:$0xfc] }
 0xa5f   : > { %v4484_v31 = vor.u32 %v4483_v3, %v4479_v20  ;;  %v4435_v39 = vpack.c.bf16 %v4431_v7, %v4431_v7  ;;  %v4450_v42 = vshrl.u32 %v4434_v4, 16  ;;  %v4454_v43 = vrot.slane %v4452_v32, 1  ;;  %v4552_v8 = vld [vmem:[#allocation4 + $0x20] sm:$0x3]  ;;  %v4548_v12 = vld [vmem:[#allocation4] sm:$0xfc] }
 0xa60   : > { %v4424_v37 = vsel %vm1213_vm4, %v4419_v28, %v4423_v26  ;;  %v4501_v38 = vsel %vm1213_vm4, %v4496_v6, %v4500_v22  ;;  %v4459_v44 = vrot.slane %v4457_v33, 1  ;;  %v4440_v61 = vshll.u32 %v4433_v34, 16  ;;  %v6868_v26 = vld [vmem:[#allocation18 + $0x100] sm:$0xff]   ;;  %v6870_v3 = vld [vmem:[#allocation18 + $0x148] sm:$0xff]  }
 0xa61   : > { %5240 = vmatprep.mubr.bf16.mxu1 %v4424_v37  ;;  %v4489_v41 = vsel %vm1213_vm4, %v4484_v31, %v4488_v29  ;;  %4504 = vrot.lane.b32.xlu0 %v4501_v38, %s7211_s17  ;;  %v4445_v46 = vshll.u32 %v4435_v39, 16  ;;  %v4530_v47 = vpack.c.bf16 %v4526_v36, %v4526_v36  ;;  %v4455_v50 = vor.u32 %v4454_v43, %v4450_v42  ;;  %v6871_v27 = vld [vmem:[#allocation18 + $0x180] sm:$0xff]   ;;  %v6872_v6 = vld [vmem:[#allocation18 + $0x108] sm:$0xff]   ;;  %v6874_v31 = vld [vmem:[#allocation18 + $0x150] sm:$0xff]  }
 0xa62   : > { %4502 = vrot.lane.b32.xlu1 %v4489_v41, %s7211_s17  ;;  %v4438_v10 = vshrl.u32 %v4433_v34, 16  ;;  %v4442_v62 = vrot.slane %v4440_v61, 1  ;;  %v4538_v55 = vrot.slane %v4528_v40, 1  ;;  %v4529_v57 = vpack.c.bf16 %v4525_v45, %v4525_v45  ;;  %v6873_v29 = vld [vmem:[#allocation18 + $0x1c8] sm:$0xff]   ;;  %v6877_v36 = vld [vmem:[#allocation18 + $0x1d0] sm:$0xff]   ;;  %v6878_v37 = vld [vmem:[#allocation18 + $0x158] sm:$0xff]  }
 0xa63   : > { %v4447_v54 = vrot.slane %v4445_v46, 1  ;;  %v4460_v63 = vsel %vm1213_vm4, %v4455_v50, %v4459_v44  ;;  %v4539_v1 = vrot.slane %v4530_v47, 1  ;;  %v4555_v2 = vpack.c.bf16 %v7915_v52, %v4549_v60  ;;  %v6875_v32 = vld [vmem:[#allocation18 + $0x188] sm:$0xff]   ;;  %v6879_v38 = vld [vmem:[#allocation18 + $0x190] sm:$0xff]   ;;  %v6880_v40 = vld [vmem:[#allocation18 + $0x118] sm:$0xff]  }
 0xa64   : > { %v4557_v5 = vpack.c.bf16 %v4553_v49, %v4553_v49  ;;  %v4443_v9 = vor.u32 %v4442_v62, %v4438_v10  ;;  %v4535_v11 = vrot.slane %v4527_v51, 1  ;;  %v4536_v59 = vrot.slane %v4529_v57, 1  ;;  %v6881_v41 = vld [vmem:[#allocation18 + $0x1d8] sm:$0xff]   ;;  %v6882_v42 = vld [vmem:[#allocation18 + $0x160] sm:$0xff]   ;;  %v6886_v47 = vld [vmem:[#allocation18 + $0x168] sm:$0xff]  }
 0xa65   : > { %4463 = vrot.lane.b32.xlu0 %v4460_v63, %s7208_s23  ;;  %v4554_v14 = vpack.c.bf16 %v7917_v53, %v4548_v12  ;;  %v4556_v16 = vpack.c.bf16 %v4552_v8, %v4552_v8  ;;  %v4540_v17 = vsel %vm1317_vm5, %v4538_v55, %v4539_v1  ;;  %v4565_v19 = vrot.slane %v4555_v2, 1  ;;  %v6883_v44 = vld [vmem:[#allocation18 + $0x198] sm:$0xff]   ;;  %v6884_v45 = vld [vmem:[#allocation18 + $0x120] sm:$0xff]   ;;  %v6888_v10 = vld [vmem:[#allocation18 + $0x128] sm:$0xff]  }
 0xa66   : > { %v4448_v13 = vsel %vm1213_vm4, %v4443_v9, %v4447_v54  ;;  %v4566_v20 = vrot.slane %v4557_v5, 1  ;;  %v4537_v52 = vsel %vm1317_vm5, %v4535_v11, %v4536_v59  ;;  %v6885_v61 = vld [vmem:[#allocation18 + $0x1e0] sm:$0xff]   ;;  %v6889_v51 = vld [vmem:[#allocation18 + $0x1e8] sm:$0xff]   ;;  %v6890_v62 = vld [vmem:[#allocation18 + $0x170] sm:$0xff]  }
 0xa67   : > { %4461 = vrot.lane.b32.xlu1 %v4448_v13, %s7208_s23  ;;  %v4562_v58 = vrot.slane %v4554_v14, 1  ;;  %v4563_v23 = vrot.slane %v4556_v16, 1  ;;  %v6887_v49 = vld [vmem:[#allocation18 + $0x1a0] sm:$0xff]   ;;  %v6891_v54 = vld [vmem:[#allocation18 + $0x1a8] sm:$0xff]   ;;  %v6892_v55 = vld [vmem:[#allocation18 + $0x130] sm:$0xff]  }
 0xa68   : > { %v4567_v24 = vsel %vm1317_vm5, %v4565_v19, %v4566_v20  ;;  %v6893_v57 = vld [vmem:[#allocation18 + $0x1f0] sm:$0xff]   ;;  %v6894_v60 = vld [vmem:[#allocation18 + $0x178] sm:$0xff]   ;;  %v6899_v13 = vld [vmem:[#allocation18 + $0x200] sm:$0xff]  }
 0xa69   : > { %4543 = vrot.lane.b32.xlu0 %v4540_v17, %s7208_s23  ;;  %v4564_v25 = vsel %vm1317_vm5, %v4562_v58, %v4563_v23  ;;  %v4511_v63 = vld [vmem:[#allocation4 + $0x20] sm:$0x3]  ;;  %v6895_v1 = vld [vmem:[#allocation18 + $0x1b0] sm:$0xff]   ;;  %v4509_v8 = vld [vmem:[#allocation4] sm:$0xfc] }
 0xa6a   : > { %v6896_v2 = vld [vmem:[#allocation18 + $0x138] sm:$0xff]   ;;  %v4512_v9 = vpack.c.bf16 %v7917_v53, %v4509_v8  ;;  %v4513_v11 = vpack.c.bf16 %v4511_v63, %v4511_v63  ;;  %v6900_v17 = vld [vmem:[#allocation18 + $0x208] sm:$0xff]   ;;  %v6901_v19 = vld [vmem:[#allocation18 + $0x210] sm:$0xff]  }
 0xa6b   : > { %4541 = vrot.lane.b32.xlu1 %v4537_v52, %s7208_s23  ;;  %v6897_v5 = vld [vmem:[#allocation18 + $0x1f8] sm:$0xff]   ;;  %v6903_v52 = vld [vmem:[#allocation18 + $0x220] sm:$0xff]   ;;  %v6904_v58 = vld [vmem:[#allocation18 + $0x228] sm:$0xff]  }
 0xa6c   : > { %v6898_v12 = vld [vmem:[#allocation18 + $0x1b8] sm:$0xff]   ;;  %v4516_v59 = vrot.slane %v4512_v9, 1  ;;  %v4517_v14 = vrot.slane %v4513_v11, 1  ;;  %v6905_v23 = vld [vmem:[#allocation18 + $0x230] sm:$0xff]  }
 0xa6d   : > { %4570 = vrot.lane.b32.xlu0 %v4567_v24, %s7211_s17  ;;  %v6902_v20 = vld [vmem:[#allocation18 + $0x218] sm:$0xff]  }
 0xa6e   : > { %v4518_v53 = vsel %vm1317_vm5, %v4516_v59, %v4517_v14  ;;  %v6906_v24 = vld [vmem:[#allocation18 + $0x238] sm:$0xff]  }
 0xa6f   : > { %4568 = vrot.lane.b32.xlu1 %v4564_v25, %s7211_s17 }
 0xacb   : > { %v4389_v18 = vpop.permute.xlu0 %4388 }
 0xacc   : > { %v4387_v4 = vpop.permute.xlu1 %4386 }
 0xacd   : > { %v4390_v22 = vsel %vm1188_vm7, %v4387_v4, %v4389_v18 }
 0xace   : > { %5199 = vmatprep.mubr.bf16.mxu0 %v4390_v22  ;;  %v5819_v22 = vld [vmem:[%s8091_s25] ss:$0 sm:$0xff] }
 0xacf   : > { %5200 = vmatmul.mubr.bf16.vlgmr.msra.gmra.mrb[32].mxu0 %v7921_v56  ;;  %v4404_v7 = vpop.permute.xlu0 %4403 }
 0xad0   : > { %6291 = vmatpush3.bf16.msra.mxu0 %v6868_v26  ;;  %v4402_v28 = vpop.permute.xlu1 %4401 }
 0xad1   : > { %v4405_v30 = vsel %vm1204_vm10, %v4402_v28, %v4404_v7  ;;  %6292 = vmatprep.subr.bf16.mxu0 %v6870_v3 }
 0xad2   : > { %5241 = vmatmul.mubr.bf16.vlgmr.msra.gmra.mrb[44].mxu1 %v4405_v30 }
 0xad3   : > { %6313 = vmatpush3.bf16.msra.mxu1 %v6871_v27  ;;  %v4505_v33 = vpop.permute.xlu0 %4504 }
 0xad4   : > { %6293 = vmatpush3.bf16.msra.mxu0 %v6872_v6  ;;  %v4503_v34 = vpop.permute.xlu1 %4502  ;;  %6314 = vmatprep.subr.bf16.mxu1 %v6873_v29 }
 0xad5   : > { %6294 = vmatprep.subr.bf16.mxu0 %v6874_v31  ;;  %v4506_v56 = vsel %vm1204_vm10, %v4503_v34, %v4505_v33 }
 0xad6   : > { %5281 = vmatprep.mubr.bf16.mxu0 %v4506_v56 }
 0xad7   : > { %6315 = vmatpush3.bf16.msra.mxu1 %v6875_v32  ;;  %v4464_v39 = vpop.permute.xlu0 %4463 }
 0xad8   : > { %6295 = vmatpush3.bf16.msra.mxu0 %v6876_v35  ;;  %6316 = vmatprep.subr.bf16.mxu1 %v6877_v36 }
 0xad9   : > { %6296 = vmatprep.subr.bf16.mxu0 %v6878_v37  ;;  %v4462_v43 = vpop.permute.xlu1 %4461 }
 0xada   : > { %v4465_v16 = vsel %vm1188_vm7, %v4462_v43, %v4464_v39 }
 0xadb   : > { %6317 = vmatpush3.bf16.msra.mxu1 %v6879_v38  ;;  %v4544_v46 = vpop.permute.xlu0 %4543 }
 0xadc   : > { %6297 = vmatpush3.bf16.msra.mxu0 %v6880_v40  ;;  %6318 = vmatprep.subr.bf16.mxu1 %v6881_v41 }
 0xadd   : > { %6298 = vmatprep.subr.bf16.mxu0 %v6882_v42  ;;  %v4542_v48 = vpop.permute.xlu1 %4541 }
 0xade   : > { %v4545_v50 = vsel %vm1188_vm7, %v4542_v48, %v4544_v46 }
 0xadf   : > { %6319 = vmatpush3.bf16.msra.mxu1 %v6883_v44  ;;  %5322 = vmatprep.mubr.bf16.mxu1 %v4545_v50  ;;  %v4571_v25 = vpop.permute.xlu0 %4570 }
 0xae0   : > { %6299 = vmatpush3.bf16.msra.mxu0 %v6884_v45  ;;  %6320 = vmatprep.subr.bf16.mxu1 %v6885_v61 }
 0xae1   : > { %6300 = vmatprep.subr.bf16.mxu0 %v6886_v47  ;;  %v4569_v18 = vpop.permute.xlu1 %4568 }
 0xae2   : > { %v4572_v4 = vsel %vm1204_vm10, %v4569_v18, %v4571_v25 }
 0xae3   : > { %6321 = vmatpush3.bf16.msra.mxu1 %v6887_v49 }
 0xae4   : > { %6301 = vmatpush3.bf16.msra.mxu0 %v6888_v10  ;;  %6322 = vmatprep.subr.bf16.mxu1 %v6889_v51 }
 0xae5   : > { %6302 = vmatprep.subr.bf16.mxu0 %v6890_v62 }
 0xae7   : > { %6323 = vmatpush3.bf16.msra.mxu1 %v6891_v54 }
 0xae8   : > { %6303 = vmatpush3.bf16.msra.mxu0 %v6892_v55  ;;  %6324 = vmatprep.subr.bf16.mxu1 %v6893_v57 }
 0xae9   : > { %6304 = vmatprep.subr.bf16.mxu0 %v6894_v60 }
 0xaeb   : > { %6325 = vmatpush3.bf16.msra.mxu1 %v6895_v1 }
 0xaec   : > { %6305 = vmatpush3.bf16.msra.mxu0 %v6896_v2  ;;  %6326 = vmatprep.subr.bf16.mxu1 %v6897_v5 }
 0xaed   : > { %6433 = vmatprep.subr.bf16.mxu0 %v7202_v0 }
 0xaef   : > { %5282 = vmatmul.mubr.bf16.vlgmr.msra.gmra.mrb[36].mxu0 %v4465_v16  ;;  %6327 = vmatpush3.bf16.msra.mxu1 %v6898_v12 }
 0xaf0   : > { %6434 = vmatpush3.bf16.msra.mxu0 %v6899_v13  ;;  %6449 = vmatprep.mubr.msk.bf16.mxu0 %vm7209_vm8, %v7202_v0 }
 0xaf1   : > { %6435 = vmatprep.subr.bf16.mxu0 %v7202_v0 }
 0xaf2   : > { %5323 = vmatmul.mubr.bf16.vlgmr.msra.gmra.mrb[48].mxu1 %v4518_v53 }
 0xaf4   : > { %6436 = vmatpush3.bf16.msra.mxu0 %v6900_v17 }
 0xaf5   : > { %6437 = vmatprep.subr.bf16.mxu0 %v7202_v0 }
 0xaf8   : > { %6438 = vmatpush3.bf16.msra.mxu0 %v6901_v19 }
 0xaf9   : > { %6439 = vmatprep.subr.bf16.mxu0 %v7202_v0 }
 0xafc   : > { %6440 = vmatpush3.bf16.msra.mxu0 %v6902_v20 }
 0xafd   : > { %6441 = vmatprep.subr.bf16.mxu0 %v7202_v0 }
 0xb00   : > { %6442 = vmatpush3.bf16.msra.mxu0 %v6903_v52 }
 0xb01   : > { %6443 = vmatprep.subr.bf16.mxu0 %v7202_v0 }
 0xb04   : > { %6444 = vmatpush3.bf16.msra.mxu0 %v6904_v58 }
 0xb05   : > { %6445 = vmatprep.subr.bf16.mxu0 %v7202_v0 }
 0xb08   : > { %6446 = vmatpush3.bf16.msra.mxu0 %v6905_v23 }
 0xb09   : > { %6447 = vmatprep.subr.bf16.mxu0 %v7202_v0 }
 0xb0c   : > { %6448 = vmatpush3.bf16.msra.mxu0 %v6906_v24 }
 0xb0f   : > { %6450 = vmatmul.mubr.bf16.vlgmr.msra.gmra.mrb[40].mxu0 %v4572_v4 }
 0xba2   : > { %v6262_v26 = vpop.f32.mrb[32].mxu0 }
 0xba3   : > { %v6263_v3 = vpop.f32.mrb[33].mxu0 }
 0xba4   : > { %v6264_v27 = vadd.f32 %v6263_v3, %v6262_v26  ;;  %v6265_v7 = vpop.f32.mrb[34].mxu0 }
 0xba5   : > { %v6266_v28 = vpop.f32.mrb[35].mxu0  ;;  %v6284_v6 = vpop.f32.mrb[44].mxu1 }
 0xba6   : > { %v5202_v29 = vadd.f32 %v6264_v27, %v5819_v22  ;;  %v6267_v30 = vadd.f32 %v6266_v28, %v6265_v7  ;;  %v6285_v31 = vpop.f32.mrb[45].mxu1 }
 0xba7   : > { %v6286_v0 = vadd.f32 %v6285_v31, %v6284_v6  ;;  %v6287_v32 = vpop.f32.mrb[46].mxu1 }
 0xba8   : > { %v5205_v33 = vadd.f32 %v6267_v30, %v5819_v22  ;;  %v6288_v34 = vpop.f32.mrb[47].mxu1 }
 0xba9   : > { %v5243_v35 = vadd.f32 %v6286_v0, %v5202_v29  ;;  %v6289_v36 = vadd.f32 %v6288_v34, %v6287_v32 }
 0xbab   : > { %v5246_v56 = vadd.f32 %v6289_v36, %v5205_v33 }
 0xbc2   : > { %v6306_v37 = vpop.f32.mrb[36].mxu0 }
 0xbc3   : > { %v6307_v38 = vpop.f32.mrb[37].mxu0 }
 0xbc4   : > { %v6308_v39 = vadd.f32 %v6307_v38, %v6306_v37  ;;  %v6309_v40 = vpop.f32.mrb[38].mxu0 }
 0xbc5   : > { %v6310_v41 = vpop.f32.mrb[39].mxu0  ;;  %v6328_v42 = vpop.f32.mrb[48].mxu1 }
 0xbc6   : > { %v5284_v43 = vadd.f32 %v6308_v39, %v5243_v35  ;;  %v6311_v44 = vadd.f32 %v6310_v41, %v6309_v40  ;;  %v6329_v45 = vpop.f32.mrb[49].mxu1 }
 0xbc7   : > { %v6330_v61 = vadd.f32 %v6329_v45, %v6328_v42  ;;  %v6331_v46 = vpop.f32.mrb[50].mxu1 }
 0xbc8   : > { %v5287_v47 = vadd.f32 %v6311_v44, %v5246_v56  ;;  %v6332_v48 = vpop.f32.mrb[51].mxu1 }
 0xbc9   : > { %v6333_v49 = vadd.f32 %v6332_v48, %v6331_v46  ;;  %v5325_v50 = vadd.f32 %v6330_v61, %v5284_v43 }
 0xbcb   : > { %v5328_v10 = vadd.f32 %v6333_v49, %v5287_v47 }
 0xbe2   : > { %v5365_v51 = vpop.f32.mrb[40].mxu0 }
 0xbe3   : > { %v5366_v62 = vadd.f32 %v5365_v51, %v5325_v50  ;;  %v6451_v54 = vpop.f32.mrb[41].mxu0 }
 0xbe4   : > { %v5368_v55 = vpop.f32.mrb[42].mxu0 }
 0xbe5   : > { %v5372_v57 = vadd.f32 %v7826_v15, %v5366_v62  ;;  %v5369_v60 = vadd.f32 %v5368_v55, %v5328_v10  ;;  %v6452_v63 = vpop.f32.mrb[43].mxu0 }
 0xbe7   : > { %5374 = vst [vmem:[%s594_s24] sm:$0xff] %v5372_v57  ;;  %v5373_v1 = vadd.f32 %v7830_v21, %v5369_v60 }
 0xbe9   : > { %5375 = vst [vmem:[%s594_s24 + $0x8] sm:$0xff] %v5373_v1 }
 0xbea   : > { %7120 = shalt.err (!%p7117_p7)
}
 0xbeb   : > { %s7121_s8 = scalar_lea.hbm %s7987_s4, 256  ;;  %s7125_s17 = scalar_lea.hbm %s8092_s7, 512 }
 0xbec   : > { %p7122_p11 = scmp.ne.s32.totalorder %s7987_s4, %s7121_s8  ;;  %p7126_p12 = scmp.lt.u32.totalorder %s7987_s4, %s8092_s7 }
 0xbed   : > { %p7127_p1 = scmp.lt.u32.totalorder %s7125_s17, %s7121_s8  ;;  %p7129_p0 = scmp.lt.u32.totalorder %s7121_s8, %s7987_s4 }
 0xbee   : > { %p7123_p8 = pnand %p7122_p11, %p8093_p2 }
 0xbef   : > { %p7128_p13 = por %p7127_p1, %p7126_p12 }
 0xbf0   : > { %p7124_p4 = pneg %p7123_p8 }
 0xbf1   : > { %p7130_p6 = por %p7129_p0, %p7128_p13 }
 0xbf3   : > { %p7131_p10 = pnand %p7130_p6, %p7124_p4 }
 0xbf5   : > { %7134 = shalt.err (!%p7131_p10)
}
 0xbf6   : > { %s7213_s22 = smov 128  }
 0xbf7   : > { %6485 = dma.vmem_to_hbm [thread:$0]  (%p8093_p2), %s7981_s11, 256, %s7987_s4, %s5377_s14, %s7213_s22, %s7213_s22, %s7210_s2  }
 0xbf8 PF: > { %s5405_s12 = sand.u32 1, %s7177_s29   ;;  %p8094_p5 = scmp.ne.s32.totalorder %s8076_s27, 0 }
 0xbf9   : > { %p8095_p9 = scmp.ge.s32.totalorder %s7189_s16, 2  ;;  %s5406_s0 = scalar_lea.sflag [#allocation9], %s5405_s12 }
 0xbfb   : > { %p6511_p3 = pnand %p8095_p9, %p8094_p5 }
 0xbfd   : > { %7172 = dma.done.wait (!%p6511_p3), %s5406_s0, 256  }
 0xbfe   : > { %7174 = vsyncadd (!%p6511_p3), %s5406_s0, 4294967040  ;;  %p32_p7 = scmp.ge.s32.totalorder %s7462_s21, 4   ;;  %s8096_s29 = smov %s7181_s30 }
 0xbff   : > { %s8097_s30 = smov %s7185_s15  ;;  %s8098_s15 = smov %s7474_s9 }
 0xc00   : > { %s8099_s16 = smov %s7462_s21  ;;  %34 = sbr.rel (!%p32_p7) target bundleno = 22 (0x16), region = 156 }
 0xc07   :  { %5411 = vsyncpa [#allocation8], 1 }
 0xc08   :  { %5413 = vsyncpa [#allocation8 + $0x1], 1 }
 0xc09   :  { %5414 = vsyncpa [#allocation11], 1 }
 0xc0a   :  { %5416 = vsyncpa [#allocation11 + $0x1], 1 }
 0xc0b   :  { %5417 = vsyncpa [#allocation14], 1 }
 0xc0c   :  { %5418 = vsyncpa [#allocation17], 1 }
 0xc0d   :  { %5419 = vsyncpa [#allocation9], 1 }
 0xc0e   :  { %5421 = vsyncpa [#allocation9 + $0x1], 1 }

</bundles_post_ra>
